<compile_context>
chip_gen: v7x
topology: tpu7x:2x2x1
jax: 0.10.0
libtpu: 0.0.40
codegen_flags: <defaults>
</compile_context>

<pallas_src>
import math

import jax
import jax.numpy as jnp
from jax import lax
from jax.experimental import pallas as pl
from jax.experimental.pallas import tpu as pltpu


def _round_up(x, m):
    return ((x + m - 1) // m) * m


def _cdiv(a, b):
    return (a + b - 1) // b


def _make_conv_kernel(KH, KW, Wp, TM, n_m_blocks):
    # Static tap shifts in flat (row-major padded image) coordinates.
    shifts = [(kh, kw, kh * Wp + kw) for kh in range(KH) for kw in range(KW)]

    def kernel(x_ref, w_ref, b_ref, o_ref, win_ref):
        # x_ref:   (S, Cin)          bf16  flat row-major padded image slab
        # w_ref:   (KH, KW, Cin, TN) bf16  full weight for this Cout tile (resident)
        # b_ref:   (1, TN)           f32   bias tile
        # o_ref:   (TM, TN)          f32   output tile (flat output rows x Cout tile)
        # win_ref: (WIN, Cin)        bf16  scratch: slab window for this M tile
        if n_m_blocks == 1:
            base = 0
        else:
            base = pl.multiple_of(pl.program_id(2) * TM, 16)

        # One (aligned) dynamic copy of the slab window; all 16 tap slices below
        # are then fully static.
        win_ref[...] = x_ref[pl.ds(base, win_ref.shape[0]), :]

        # Accumulate directly into the resident f32 output block (no acc scratch),
        # initialized with the broadcast bias.
        o_ref[...] = jnp.broadcast_to(b_ref[...], o_ref.shape)
        for kh, kw, sh in shifts:
            lhs = win_ref[pl.ds(sh, TM), :]                      # (TM, Cin) bf16
            o_ref[...] += jnp.dot(lhs, w_ref[kh, kw],
                                  preferred_element_type=jnp.float32)

    return kernel


def conv2d_forward(x_nchw, weight_oihw, bias=None, stride=1, padding=1):
    """Forward of nn.Conv2d(nch_in, nch_out, kernel_size=4, stride=1, padding=1, bias=True).

    x_nchw:      (N, Cin, H, W)      float32
    weight_oihw: (Cout, Cin, KH, KW) float32 (PyTorch layout)
    bias:        (Cout,)             float32 (or None)
    returns:     (N, Cout, Ho, Wo)   float32
    """
    N, Cin, H, W = x_nchw.shape
    Cout, Cin_w, KH, KW = weight_oihw.shape
    assert Cin_w == Cin
    if bias is None:
        bias = jnp.zeros((Cout,), jnp.float32)

    # Stride-1 output extents.  stride > 1 is handled by subsampling the
    # stride-1 result afterwards (out_s[i, j] == out_1[i*s, j*s]); the module's
    # default / spec configuration is stride=1 which hits the direct path.
    Ho = H + 2 * padding - KH + 1
    Wo = W + 2 * padding - KW + 1
    assert Ho > 0 and Wo > 0
    Wp = W + 2 * padding

    # ---- matmul-facing dims ----
    # Flat output rows over the FULL padded width: the Wp-Wo garbage columns per
    # row cost a little extra MXU work (negligible for real image sizes) but make
    # every tap a single contiguous shifted window — no gathers, no reshapes.
    Mrows = Ho * Wp
    Cout_pad = _round_up(Cout, 128)          # lane-dense output columns
    TN = 256 if Cout_pad % 256 == 0 else 128  # 256-wide N tile for v6e/v7x MXU

    # ---- M tiling: TM multiple of 16, large, minimal padding waste ----
    n_m_blocks = max(1, _cdiv(Mrows, 1024))
    if N * (Cout_pad // TN) * n_m_blocks < 2 and Mrows >= 32:
        n_m_blocks = 2                        # keep both v7x TensorCores busy
    TM = _round_up(_cdiv(Mrows, n_m_blocks), 16)
    Mrows_pad = TM * n_m_blocks

    # ---- slab sizing: window per M tile = TM rows + tap halo ----
    WIN = _round_up(TM + (KH - 1) * Wp + (KW - 1), 16)
    S = _cdiv((Mrows_pad - TM) + WIN, Wp) * Wp   # flat slab rows per image
    Hp_ext = S // Wp                              # padded height (>= H + 2*padding)

    # ---- glue: NCHW -> NHWC (bf16), spatial zero-pad, flatten rows ----
    x_nhwc = jnp.transpose(x_nchw, (0, 2, 3, 1)).astype(jnp.bfloat16)
    x_p = jnp.pad(
        x_nhwc,
        ((0, 0), (padding, Hp_ext - H - padding), (padding, padding), (0, 0)),
    )
    x_slab = x_p.reshape(N, S, Cin)

    # weights: OIHW -> (KH, KW, Cin, Cout_pad) bf16; bias -> (1, Cout_pad) f32
    w_k = jnp.transpose(weight_oihw, (2, 3, 1, 0)).astype(jnp.bfloat16)
    w_k = jnp.pad(w_k, ((0, 0), (0, 0), (0, 0), (0, Cout_pad - Cout)))
    b2d = jnp.pad(bias.astype(jnp.float32).reshape(1, Cout),
                  ((0, 0), (0, Cout_pad - Cout)))

    grid = (N, Cout_pad // TN, n_m_blocks)
    kernel = _make_conv_kernel(KH, KW, Wp, TM, n_m_blocks)

    # ---- VMEM budget: double-buffered inputs/outputs + scratch, <= 56 MiB ----
    est = (2 * S * Cin * 2                    # x slab (bf16, 2 buffers)
           + 2 * KH * KW * Cin * TN * 2       # weight tile (bf16, 2 buffers)
           + 2 * TN * 4                       # bias tile
           + 2 * TM * TN * 4                  # output tile (f32, 2 buffers)
           + WIN * Cin * 2)                   # window scratch
    vmem_limit = int(min(56 * 2**20, max(32 * 2**20, int(1.5 * est) + (4 << 20))))

    cost = pl.CostEstimate(
        flops=2 * N * Mrows_pad * KH * KW * Cin * Cout_pad,
        transcendentals=0,
        bytes_accessed=(x_slab.size * 2 * (Cout_pad // TN)
                        + w_k.size * 2 * N
                        + b2d.size * 4
                        + N * Mrows_pad * Cout_pad * 4),
    )

    out_raw = pl.pallas_call(
        kernel,
        out_shape=jax.ShapeDtypeStruct((N, Mrows_pad, Cout_pad), jnp.float32),
        grid_spec=pltpu.PrefetchScalarGridSpec(
            num_scalar_prefetch=0,
            grid=grid,
            in_specs=[
                # Full padded slab per image: block index depends only on n, so it
                # is DMA'd once per image (per Cout tile), not per M tile / tap.
                pl.BlockSpec((None, S, Cin), lambda n, j, m: (n, 0, 0)),
                # Full weight for this Cout tile: resident across all M steps.
                pl.BlockSpec((KH, KW, Cin, TN), lambda n, j, m: (0, 0, 0, j)),
                pl.BlockSpec((1, TN), lambda n, j, m: (0, j)),
            ],
            out_specs=pl.BlockSpec((None, TM, TN), lambda n, j, m: (n, m, j)),
            scratch_shapes=[pltpu.VMEM((WIN, Cin), jnp.bfloat16)],
        ),
        compiler_params=pltpu.CompilerParams(
            # Every output block is written by exactly one grid step, so all
            # three axes are safe to mark parallel (megacore sharding on v7x).
            dimension_semantics=("parallel", "parallel", "parallel"),
            vmem_limit_bytes=vmem_limit,
        ),
        cost_estimate=cost,
    )(x_slab, w_k, b2d)

    # ---- glue: strip padding (free reshape + one fused slice/transpose) ----
    out = out_raw[:, :Mrows, :Cout].reshape(N, Ho, Wp, Cout)[:, :, :Wo, :]
    if stride > 1:
        Ho_s = (H + 2 * padding - KH) // stride + 1
        Wo_s = (W + 2 * padding - KW) // stride + 1
        out = out[:, ::stride, ::stride, :][:, :Ho_s, :Wo_s, :]
    return jnp.transpose(out, (0, 3, 1, 2))


if __name__ == "__main__":
    key = jax.random.PRNGKey(0)
    k_x, k_w, k_b = jax.random.split(key, 3)

    # Small shapes consistent with the module: batch=2, nch_in=4, spatial=16x16,
    # nch_out=8, kernel_size=4, stride=1, padding=1 => output (2, 8, 15, 15).
    N, Cin, H, W = 2, 4, 16, 16
    Cout, Ksz = 8, 4

    x = jax.random.normal(k_x, (N, Cin, H, W), dtype=jnp.float32)

    # PyTorch-like uniform(-1/sqrt(fan_in), 1/sqrt(fan_in)) init for weight & bias.
    fan_in = Cin * Ksz * Ksz
    bound = 1.0 / (fan_in ** 0.5)
    w = jax.random.uniform(k_w, (Cout, Cin, Ksz, Ksz), jnp.float32, -bound, bound)
    b = jax.random.uniform(k_b, (Cout,), jnp.float32, -bound, bound)

    out = conv2d_forward(x, w, b, stride=1, padding=1)
    jax.block_until_ready(out)
    assert out.shape == (N, Cout, H - 1, W - 1), out.shape

    # Reference check (bf16 MXU operands with f32 accumulation => loose tolerance).
    ref = lax.conv_general_dilated(
        x, w, window_strides=(1, 1), padding=((1, 1), (1, 1)),
        dimension_numbers=("NCHW", "OIHW", "NCHW"),
    ) + b.reshape(1, Cout, 1, 1)
    max_err = float(jnp.max(jnp.abs(out - ref)))
    assert jnp.allclose(out, ref, rtol=5e-2, atol=5e-2), max_err

    print("KERNEL_OK")
</pallas_src>

<mosaic_0001>
module attributes {stable_mosaic.version = 11 : i64} {
  func.func @kernel(%arg0: i32, %arg1: i32, %arg2: i32, %arg3: memref<1x342x4xbf16, #tpu.memory_space<vmem>>, %arg4: memref<4x4x4x128xbf16, #tpu.memory_space<vmem>>, %arg5: memref<1x128xf32, #tpu.memory_space<vmem>>, %arg6: memref<1x272x128xf32, #tpu.memory_space<vmem>>, %arg7: memref<336x4xbf16, #tpu.memory_space<vmem>>) attributes {dimension_semantics = [#tpu.dimension_semantics<parallel>, #tpu.dimension_semantics<parallel>, #tpu.dimension_semantics<parallel>], iteration_bounds = array<i64: 2, 1, 1>, scalar_prefetch = 0 : i64, scratch_operands = 1 : i64, tpu.core_type = #tpu.core_type<tc>, window_params = [{transform_indices = @transform_0, window_bounds = array<i64: 1, 342, 4>}, {transform_indices = @transform_1, window_bounds = array<i64: 4, 4, 4, 128>}, {transform_indices = @transform_2, window_bounds = array<i64: 1, 128>}, {transform_indices = @transform_3, window_bounds = array<i64: 1, 272, 128>}]} {
    %c0 = arith.constant 0 : index
    %c0_0 = arith.constant 0 : index
    %c0_1 = arith.constant 0 : index
    %0 = vector.load %arg3[%c0, %c0_0, %c0_1] : memref<1x342x4xbf16, #tpu.memory_space<vmem>>, vector<1x336x4xbf16>
    %1 = vector.shape_cast %0 : vector<1x336x4xbf16> to vector<336x4xbf16>
    %c0_2 = arith.constant 0 : index
    %c0_3 = arith.constant 0 : index
    %2 = vector.load %arg7[%c0_2, %c0_3] : memref<336x4xbf16, #tpu.memory_space<vmem>>, vector<336x4xbf16>
    tpu.vector_store %arg7[%c0_2, %c0_3], %1 {strides = array<i32>} : memref<336x4xbf16, #tpu.memory_space<vmem>>, vector<336x4xbf16>,
    %c0_4 = arith.constant 0 : index
    %c0_5 = arith.constant 0 : index
    %3 = vector.load %arg5[%c0_4, %c0_5] : memref<1x128xf32, #tpu.memory_space<vmem>>, vector<1x128xf32>
    %4 = vector.shape_cast %3 : vector<1x128xf32> to vector<1x128xf32>
    %5 = vector.broadcast %4 : vector<1x128xf32> to vector<272x128xf32>
    %c0_6 = arith.constant 0 : index
    %c0_7 = arith.constant 0 : index
    %c0_8 = arith.constant 0 : index
    %6 = vector.load %arg6[%c0_6, %c0_7, %c0_8] : memref<1x272x128xf32, #tpu.memory_space<vmem>>, vector<1x272x128xf32>
    %7 = vector.shape_cast %6 : vector<1x272x128xf32> to vector<272x128xf32>
    %8 = vector.shape_cast %5 : vector<272x128xf32> to vector<1x272x128xf32>
    tpu.vector_store %arg6[%c0_6, %c0_7, %c0_8], %8 {strides = array<i32>} : memref<1x272x128xf32, #tpu.memory_space<vmem>>, vector<1x272x128xf32>,
    %c0_9 = arith.constant 0 : index
    %c0_10 = arith.constant 0 : index
    %9 = vector.load %arg7[%c0_9, %c0_10] : memref<336x4xbf16, #tpu.memory_space<vmem>>, vector<272x4xbf16>
    %c0_11 = arith.constant 0 : index
    %c0_12 = arith.constant 0 : index
    %c0_13 = arith.constant 0 : index
    %10 = vector.load %arg6[%c0_11, %c0_12, %c0_13] : memref<1x272x128xf32, #tpu.memory_space<vmem>>, vector<1x272x128xf32>
    %11 = vector.shape_cast %10 : vector<1x272x128xf32> to vector<272x128xf32>
    %c0_14 = arith.constant 0 : index
    %c0_15 = arith.constant 0 : index
    %c0_16 = arith.constant 0 : index
    %c0_17 = arith.constant 0 : index
    %12 = vector.load %arg4[%c0_14, %c0_15, %c0_16, %c0_17] : memref<4x4x4x128xbf16, #tpu.memory_space<vmem>>, vector<1x1x4x128xbf16>
    %13 = vector.shape_cast %12 : vector<1x1x4x128xbf16> to vector<4x128xbf16>
    %cst = arith.constant dense<0.000000e+00> : vector<272x128xf32>
    %14 = tpu.matmul %9, %13, %cst {dimension_numbers = #tpu.dot_dimension_numbers<[1], [0], [0], [1], [0, 0, 1, 1], [], []>} : vector<272x4xbf16>, vector<4x128xbf16>, vector<272x128xf32> -> vector<272x128xf32>
    %15 = arith.addf %11, %14 : vector<272x128xf32>
    %c0_18 = arith.constant 0 : index
    %c0_19 = arith.constant 0 : index
    %c0_20 = arith.constant 0 : index
    %16 = vector.load %arg6[%c0_18, %c0_19, %c0_20] : memref<1x272x128xf32, #tpu.memory_space<vmem>>, vector<1x272x128xf32>
    %17 = vector.shape_cast %16 : vector<1x272x128xf32> to vector<272x128xf32>
    %18 = vector.shape_cast %15 : vector<272x128xf32> to vector<1x272x128xf32>
    tpu.vector_store %arg6[%c0_18, %c0_19, %c0_20], %18 {strides = array<i32>} : memref<1x272x128xf32, #tpu.memory_space<vmem>>, vector<1x272x128xf32>,
    %c1 = arith.constant 1 : index
    %c0_21 = arith.constant 0 : index
    %19 = vector.load %arg7[%c1, %c0_21] : memref<336x4xbf16, #tpu.memory_space<vmem>>, vector<272x4xbf16>
    %c0_22 = arith.constant 0 : index
    %c0_23 = arith.constant 0 : index
    %c0_24 = arith.constant 0 : index
    %20 = vector.load %arg6[%c0_22, %c0_23, %c0_24] : memref<1x272x128xf32, #tpu.memory_space<vmem>>, vector<1x272x128xf32>
    %21 = vector.shape_cast %20 : vector<1x272x128xf32> to vector<272x128xf32>
    %c0_25 = arith.constant 0 : index
    %c1_26 = arith.constant 1 : index
    %c0_27 = arith.constant 0 : index
    %c0_28 = arith.constant 0 : index
    %22 = vector.load %arg4[%c0_25, %c1_26, %c0_27, %c0_28] : memref<4x4x4x128xbf16, #tpu.memory_space<vmem>>, vector<1x1x4x128xbf16>
    %23 = vector.shape_cast %22 : vector<1x1x4x128xbf16> to vector<4x128xbf16>
    %cst_29 = arith.constant dense<0.000000e+00> : vector<272x128xf32>
    %24 = tpu.matmul %19, %23, %cst_29 {dimension_numbers = #tpu.dot_dimension_numbers<[1], [0], [0], [1], [0, 0, 1, 1], [], []>} : vector<272x4xbf16>, vector<4x128xbf16>, vector<272x128xf32> -> vector<272x128xf32>
    %25 = arith.addf %21, %24 : vector<272x128xf32>
    %c0_30 = arith.constant 0 : index
    %c0_31 = arith.constant 0 : index
    %c0_32 = arith.constant 0 : index
    %26 = vector.load %arg6[%c0_30, %c0_31, %c0_32] : memref<1x272x128xf32, #tpu.memory_space<vmem>>, vector<1x272x128xf32>
    %27 = vector.shape_cast %26 : vector<1x272x128xf32> to vector<272x128xf32>
    %28 = vector.shape_cast %25 : vector<272x128xf32> to vector<1x272x128xf32>
    tpu.vector_store %arg6[%c0_30, %c0_31, %c0_32], %28 {strides = array<i32>} : memref<1x272x128xf32, #tpu.memory_space<vmem>>, vector<1x272x128xf32>,
    %c2 = arith.constant 2 : index
    %c0_33 = arith.constant 0 : index
    %29 = vector.load %arg7[%c2, %c0_33] : memref<336x4xbf16, #tpu.memory_space<vmem>>, vector<272x4xbf16>
    %c0_34 = arith.constant 0 : index
    %c0_35 = arith.constant 0 : index
    %c0_36 = arith.constant 0 : index
    %30 = vector.load %arg6[%c0_34, %c0_35, %c0_36] : memref<1x272x128xf32, #tpu.memory_space<vmem>>, vector<1x272x128xf32>
    %31 = vector.shape_cast %30 : vector<1x272x128xf32> to vector<272x128xf32>
    %c0_37 = arith.constant 0 : index
    %c2_38 = arith.constant 2 : index
    %c0_39 = arith.constant 0 : index
    %c0_40 = arith.constant 0 : index
    %32 = vector.load %arg4[%c0_37, %c2_38, %c0_39, %c0_40] : memref<4x4x4x128xbf16, #tpu.memory_space<vmem>>, vector<1x1x4x128xbf16>
    %33 = vector.shape_cast %32 : vector<1x1x4x128xbf16> to vector<4x128xbf16>
    %cst_41 = arith.constant dense<0.000000e+00> : vector<272x128xf32>
    %34 = tpu.matmul %29, %33, %cst_41 {dimension_numbers = #tpu.dot_dimension_numbers<[1], [0], [0], [1], [0, 0, 1, 1], [], []>} : vector<272x4xbf16>, vector<4x128xbf16>, vector<272x128xf32> -> vector<272x128xf32>
    %35 = arith.addf %31, %34 : vector<272x128xf32>
    %c0_42 = arith.constant 0 : index
    %c0_43 = arith.constant 0 : index
    %c0_44 = arith.constant 0 : index
    %36 = vector.load %arg6[%c0_42, %c0_43, %c0_44] : memref<1x272x128xf32, #tpu.memory_space<vmem>>, vector<1x272x128xf32>
    %37 = vector.shape_cast %36 : vector<1x272x128xf32> to vector<272x128xf32>
    %38 = vector.shape_cast %35 : vector<272x128xf32> to vector<1x272x128xf32>
    tpu.vector_store %arg6[%c0_42, %c0_43, %c0_44], %38 {strides = array<i32>} : memref<1x272x128xf32, #tpu.memory_space<vmem>>, vector<1x272x128xf32>,
    %c3 = arith.constant 3 : index
    %c0_45 = arith.constant 0 : index
    %39 = vector.load %arg7[%c3, %c0_45] : memref<336x4xbf16, #tpu.memory_space<vmem>>, vector<272x4xbf16>
    %c0_46 = arith.constant 0 : index
    %c0_47 = arith.constant 0 : index
    %c0_48 = arith.constant 0 : index
    %40 = vector.load %arg6[%c0_46, %c0_47, %c0_48] : memref<1x272x128xf32, #tpu.memory_space<vmem>>, vector<1x272x128xf32>
    %41 = vector.shape_cast %40 : vector<1x272x128xf32> to vector<272x128xf32>
    %c0_49 = arith.constant 0 : index
    %c3_50 = arith.constant 3 : index
    %c0_51 = arith.constant 0 : index
    %c0_52 = arith.constant 0 : index
    %42 = vector.load %arg4[%c0_49, %c3_50, %c0_51, %c0_52] : memref<4x4x4x128xbf16, #tpu.memory_space<vmem>>, vector<1x1x4x128xbf16>
    %43 = vector.shape_cast %42 : vector<1x1x4x128xbf16> to vector<4x128xbf16>
    %cst_53 = arith.constant dense<0.000000e+00> : vector<272x128xf32>
    %44 = tpu.matmul %39, %43, %cst_53 {dimension_numbers = #tpu.dot_dimension_numbers<[1], [0], [0], [1], [0, 0, 1, 1], [], []>} : vector<272x4xbf16>, vector<4x128xbf16>, vector<272x128xf32> -> vector<272x128xf32>
    %45 = arith.addf %41, %44 : vector<272x128xf32>
    %c0_54 = arith.constant 0 : index
    %c0_55 = arith.constant 0 : index
    %c0_56 = arith.constant 0 : index
    %46 = vector.load %arg6[%c0_54, %c0_55, %c0_56] : memref<1x272x128xf32, #tpu.memory_space<vmem>>, vector<1x272x128xf32>
    %47 = vector.shape_cast %46 : vector<1x272x128xf32> to vector<272x128xf32>
    %48 = vector.shape_cast %45 : vector<272x128xf32> to vector<1x272x128xf32>
    tpu.vector_store %arg6[%c0_54, %c0_55, %c0_56], %48 {strides = array<i32>} : memref<1x272x128xf32, #tpu.memory_space<vmem>>, vector<1x272x128xf32>,
    %c18 = arith.constant 18 : index
    %c0_57 = arith.constant 0 : index
    %49 = vector.load %arg7[%c18, %c0_57] : memref<336x4xbf16, #tpu.memory_space<vmem>>, vector<272x4xbf16>
    %c0_58 = arith.constant 0 : index
    %c0_59 = arith.constant 0 : index
    %c0_60 = arith.constant 0 : index
    %50 = vector.load %arg6[%c0_58, %c0_59, %c0_60] : memref<1x272x128xf32, #tpu.memory_space<vmem>>, vector<1x272x128xf32>
    %51 = vector.shape_cast %50 : vector<1x272x128xf32> to vector<272x128xf32>
    %c1_61 = arith.constant 1 : index
    %c0_62 = arith.constant 0 : index
    %c0_63 = arith.constant 0 : index
    %c0_64 = arith.constant 0 : index
    %52 = vector.load %arg4[%c1_61, %c0_62, %c0_63, %c0_64] : memref<4x4x4x128xbf16, #tpu.memory_space<vmem>>, vector<1x1x4x128xbf16>
    %53 = vector.shape_cast %52 : vector<1x1x4x128xbf16> to vector<4x128xbf16>
    %cst_65 = arith.constant dense<0.000000e+00> : vector<272x128xf32>
    %54 = tpu.matmul %49, %53, %cst_65 {dimension_numbers = #tpu.dot_dimension_numbers<[1], [0], [0], [1], [0, 0, 1, 1], [], []>} : vector<272x4xbf16>, vector<4x128xbf16>, vector<272x128xf32> -> vector<272x128xf32>
    %55 = arith.addf %51, %54 : vector<272x128xf32>
    %c0_66 = arith.constant 0 : index
    %c0_67 = arith.constant 0 : index
    %c0_68 = arith.constant 0 : index
    %56 = vector.load %arg6[%c0_66, %c0_67, %c0_68] : memref<1x272x128xf32, #tpu.memory_space<vmem>>, vector<1x272x128xf32>
    %57 = vector.shape_cast %56 : vector<1x272x128xf32> to vector<272x128xf32>
    %58 = vector.shape_cast %55 : vector<272x128xf32> to vector<1x272x128xf32>
    tpu.vector_store %arg6[%c0_66, %c0_67, %c0_68], %58 {strides = array<i32>} : memref<1x272x128xf32, #tpu.memory_space<vmem>>, vector<1x272x128xf32>,
    %c19 = arith.constant 19 : index
    %c0_69 = arith.constant 0 : index
    %59 = vector.load %arg7[%c19, %c0_69] : memref<336x4xbf16, #tpu.memory_space<vmem>>, vector<272x4xbf16>
    %c0_70 = arith.constant 0 : index
    %c0_71 = arith.constant 0 : index
    %c0_72 = arith.constant 0 : index
    %60 = vector.load %arg6[%c0_70, %c0_71, %c0_72] : memref<1x272x128xf32, #tpu.memory_space<vmem>>, vector<1x272x128xf32>
    %61 = vector.shape_cast %60 : vector<1x272x128xf32> to vector<272x128xf32>
    %c1_73 = arith.constant 1 : index
    %c1_74 = arith.constant 1 : index
    %c0_75 = arith.constant 0 : index
    %c0_76 = arith.constant 0 : index
    %62 = vector.load %arg4[%c1_73, %c1_74, %c0_75, %c0_76] : memref<4x4x4x128xbf16, #tpu.memory_space<vmem>>, vector<1x1x4x128xbf16>
    %63 = vector.shape_cast %62 : vector<1x1x4x128xbf16> to vector<4x128xbf16>
    %cst_77 = arith.constant dense<0.000000e+00> : vector<272x128xf32>
    %64 = tpu.matmul %59, %63, %cst_77 {dimension_numbers = #tpu.dot_dimension_numbers<[1], [0], [0], [1], [0, 0, 1, 1], [], []>} : vector<272x4xbf16>, vector<4x128xbf16>, vector<272x128xf32> -> vector<272x128xf32>
    %65 = arith.addf %61, %64 : vector<272x128xf32>
    %c0_78 = arith.constant 0 : index
    %c0_79 = arith.constant 0 : index
    %c0_80 = arith.constant 0 : index
    %66 = vector.load %arg6[%c0_78, %c0_79, %c0_80] : memref<1x272x128xf32, #tpu.memory_space<vmem>>, vector<1x272x128xf32>
    %67 = vector.shape_cast %66 : vector<1x272x128xf32> to vector<272x128xf32>
    %68 = vector.shape_cast %65 : vector<272x128xf32> to vector<1x272x128xf32>
    tpu.vector_store %arg6[%c0_78, %c0_79, %c0_80], %68 {strides = array<i32>} : memref<1x272x128xf32, #tpu.memory_space<vmem>>, vector<1x272x128xf32>,
    %c20 = arith.constant 20 : index
    %c0_81 = arith.constant 0 : index
    %69 = vector.load %arg7[%c20, %c0_81] : memref<336x4xbf16, #tpu.memory_space<vmem>>, vector<272x4xbf16>
    %c0_82 = arith.constant 0 : index
    %c0_83 = arith.constant 0 : index
    %c0_84 = arith.constant 0 : index
    %70 = vector.load %arg6[%c0_82, %c0_83, %c0_84] : memref<1x272x128xf32, #tpu.memory_space<vmem>>, vector<1x272x128xf32>
    %71 = vector.shape_cast %70 : vector<1x272x128xf32> to vector<272x128xf32>
    %c1_85 = arith.constant 1 : index
    %c2_86 = arith.constant 2 : index
    %c0_87 = arith.constant 0 : index
    %c0_88 = arith.constant 0 : index
    %72 = vector.load %arg4[%c1_85, %c2_86, %c0_87, %c0_88] : memref<4x4x4x128xbf16, #tpu.memory_space<vmem>>, vector<1x1x4x128xbf16>
    %73 = vector.shape_cast %72 : vector<1x1x4x128xbf16> to vector<4x128xbf16>
    %cst_89 = arith.constant dense<0.000000e+00> : vector<272x128xf32>
    %74 = tpu.matmul %69, %73, %cst_89 {dimension_numbers = #tpu.dot_dimension_numbers<[1], [0], [0], [1], [0, 0, 1, 1], [], []>} : vector<272x4xbf16>, vector<4x128xbf16>, vector<272x128xf32> -> vector<272x128xf32>
    %75 = arith.addf %71, %74 : vector<272x128xf32>
    %c0_90 = arith.constant 0 : index
    %c0_91 = arith.constant 0 : index
    %c0_92 = arith.constant 0 : index
    %76 = vector.load %arg6[%c0_90, %c0_91, %c0_92] : memref<1x272x128xf32, #tpu.memory_space<vmem>>, vector<1x272x128xf32>
    %77 = vector.shape_cast %76 : vector<1x272x128xf32> to vector<272x128xf32>
    %78 = vector.shape_cast %75 : vector<272x128xf32> to vector<1x272x128xf32>
    tpu.vector_store %arg6[%c0_90, %c0_91, %c0_92], %78 {strides = array<i32>} : memref<1x272x128xf32, #tpu.memory_space<vmem>>, vector<1x272x128xf32>,
    %c21 = arith.constant 21 : index
    %c0_93 = arith.constant 0 : index
    %79 = vector.load %arg7[%c21, %c0_93] : memref<336x4xbf16, #tpu.memory_space<vmem>>, vector<272x4xbf16>
    %c0_94 = arith.constant 0 : index
    %c0_95 = arith.constant 0 : index
    %c0_96 = arith.constant 0 : index
    %80 = vector.load %arg6[%c0_94, %c0_95, %c0_96] : memref<1x272x128xf32, #tpu.memory_space<vmem>>, vector<1x272x128xf32>
    %81 = vector.shape_cast %80 : vector<1x272x128xf32> to vector<272x128xf32>
    %c1_97 = arith.constant 1 : index
    %c3_98 = arith.constant 3 : index
    %c0_99 = arith.constant 0 : index
    %c0_100 = arith.constant 0 : index
    %82 = vector.load %arg4[%c1_97, %c3_98, %c0_99, %c0_100] : memref<4x4x4x128xbf16, #tpu.memory_space<vmem>>, vector<1x1x4x128xbf16>
    %83 = vector.shape_cast %82 : vector<1x1x4x128xbf16> to vector<4x128xbf16>
    %cst_101 = arith.constant dense<0.000000e+00> : vector<272x128xf32>
    %84 = tpu.matmul %79, %83, %cst_101 {dimension_numbers = #tpu.dot_dimension_numbers<[1], [0], [0], [1], [0, 0, 1, 1], [], []>} : vector<272x4xbf16>, vector<4x128xbf16>, vector<272x128xf32> -> vector<272x128xf32>
    %85 = arith.addf %81, %84 : vector<272x128xf32>
    %c0_102 = arith.constant 0 : index
    %c0_103 = arith.constant 0 : index
    %c0_104 = arith.constant 0 : index
    %86 = vector.load %arg6[%c0_102, %c0_103, %c0_104] : memref<1x272x128xf32, #tpu.memory_space<vmem>>, vector<1x272x128xf32>
    %87 = vector.shape_cast %86 : vector<1x272x128xf32> to vector<272x128xf32>
    %88 = vector.shape_cast %85 : vector<272x128xf32> to vector<1x272x128xf32>
    tpu.vector_store %arg6[%c0_102, %c0_103, %c0_104], %88 {strides = array<i32>} : memref<1x272x128xf32, #tpu.memory_space<vmem>>, vector<1x272x128xf32>,
    %c36 = arith.constant 36 : index
    %c0_105 = arith.constant 0 : index
    %89 = vector.load %arg7[%c36, %c0_105] : memref<336x4xbf16, #tpu.memory_space<vmem>>, vector<272x4xbf16>
    %c0_106 = arith.constant 0 : index
    %c0_107 = arith.constant 0 : index
    %c0_108 = arith.constant 0 : index
    %90 = vector.load %arg6[%c0_106, %c0_107, %c0_108] : memref<1x272x128xf32, #tpu.memory_space<vmem>>, vector<1x272x128xf32>
    %91 = vector.shape_cast %90 : vector<1x272x128xf32> to vector<272x128xf32>
    %c2_109 = arith.constant 2 : index
    %c0_110 = arith.constant 0 : index
    %c0_111 = arith.constant 0 : index
    %c0_112 = arith.constant 0 : index
    %92 = vector.load %arg4[%c2_109, %c0_110, %c0_111, %c0_112] : memref<4x4x4x128xbf16, #tpu.memory_space<vmem>>, vector<1x1x4x128xbf16>
    %93 = vector.shape_cast %92 : vector<1x1x4x128xbf16> to vector<4x128xbf16>
    %cst_113 = arith.constant dense<0.000000e+00> : vector<272x128xf32>
    %94 = tpu.matmul %89, %93, %cst_113 {dimension_numbers = #tpu.dot_dimension_numbers<[1], [0], [0], [1], [0, 0, 1, 1], [], []>} : vector<272x4xbf16>, vector<4x128xbf16>, vector<272x128xf32> -> vector<272x128xf32>
    %95 = arith.addf %91, %94 : vector<272x128xf32>
    %c0_114 = arith.constant 0 : index
    %c0_115 = arith.constant 0 : index
    %c0_116 = arith.constant 0 : index
    %96 = vector.load %arg6[%c0_114, %c0_115, %c0_116] : memref<1x272x128xf32, #tpu.memory_space<vmem>>, vector<1x272x128xf32>
    %97 = vector.shape_cast %96 : vector<1x272x128xf32> to vector<272x128xf32>
    %98 = vector.shape_cast %95 : vector<272x128xf32> to vector<1x272x128xf32>
    tpu.vector_store %arg6[%c0_114, %c0_115, %c0_116], %98 {strides = array<i32>} : memref<1x272x128xf32, #tpu.memory_space<vmem>>, vector<1x272x128xf32>,
    %c37 = arith.constant 37 : index
    %c0_117 = arith.constant 0 : index
    %99 = vector.load %arg7[%c37, %c0_117] : memref<336x4xbf16, #tpu.memory_space<vmem>>, vector<272x4xbf16>
    %c0_118 = arith.constant 0 : index
    %c0_119 = arith.constant 0 : index
    %c0_120 = arith.constant 0 : index
    %100 = vector.load %arg6[%c0_118, %c0_119, %c0_120] : memref<1x272x128xf32, #tpu.memory_space<vmem>>, vector<1x272x128xf32>
    %101 = vector.shape_cast %100 : vector<1x272x128xf32> to vector<272x128xf32>
    %c2_121 = arith.constant 2 : index
    %c1_122 = arith.constant 1 : index
    %c0_123 = arith.constant 0 : index
    %c0_124 = arith.constant 0 : index
    %102 = vector.load %arg4[%c2_121, %c1_122, %c0_123, %c0_124] : memref<4x4x4x128xbf16, #tpu.memory_space<vmem>>, vector<1x1x4x128xbf16>
    %103 = vector.shape_cast %102 : vector<1x1x4x128xbf16> to vector<4x128xbf16>
    %cst_125 = arith.constant dense<0.000000e+00> : vector<272x128xf32>
    %104 = tpu.matmul %99, %103, %cst_125 {dimension_numbers = #tpu.dot_dimension_numbers<[1], [0], [0], [1], [0, 0, 1, 1], [], []>} : vector<272x4xbf16>, vector<4x128xbf16>, vector<272x128xf32> -> vector<272x128xf32>
    %105 = arith.addf %101, %104 : vector<272x128xf32>
    %c0_126 = arith.constant 0 : index
    %c0_127 = arith.constant 0 : index
    %c0_128 = arith.constant 0 : index
    %106 = vector.load %arg6[%c0_126, %c0_127, %c0_128] : memref<1x272x128xf32, #tpu.memory_space<vmem>>, vector<1x272x128xf32>
    %107 = vector.shape_cast %106 : vector<1x272x128xf32> to vector<272x128xf32>
    %108 = vector.shape_cast %105 : vector<272x128xf32> to vector<1x272x128xf32>
    tpu.vector_store %arg6[%c0_126, %c0_127, %c0_128], %108 {strides = array<i32>} : memref<1x272x128xf32, #tpu.memory_space<vmem>>, vector<1x272x128xf32>,
    %c38 = arith.constant 38 : index
    %c0_129 = arith.constant 0 : index
    %109 = vector.load %arg7[%c38, %c0_129] : memref<336x4xbf16, #tpu.memory_space<vmem>>, vector<272x4xbf16>
    %c0_130 = arith.constant 0 : index
    %c0_131 = arith.constant 0 : index
    %c0_132 = arith.constant 0 : index
    %110 = vector.load %arg6[%c0_130, %c0_131, %c0_132] : memref<1x272x128xf32, #tpu.memory_space<vmem>>, vector<1x272x128xf32>
    %111 = vector.shape_cast %110 : vector<1x272x128xf32> to vector<272x128xf32>
    %c2_133 = arith.constant 2 : index
    %c2_134 = arith.constant 2 : index
    %c0_135 = arith.constant 0 : index
    %c0_136 = arith.constant 0 : index
    %112 = vector.load %arg4[%c2_133, %c2_134, %c0_135, %c0_136] : memref<4x4x4x128xbf16, #tpu.memory_space<vmem>>, vector<1x1x4x128xbf16>
    %113 = vector.shape_cast %112 : vector<1x1x4x128xbf16> to vector<4x128xbf16>
    %cst_137 = arith.constant dense<0.000000e+00> : vector<272x128xf32>
    %114 = tpu.matmul %109, %113, %cst_137 {dimension_numbers = #tpu.dot_dimension_numbers<[1], [0], [0], [1], [0, 0, 1, 1], [], []>} : vector<272x4xbf16>, vector<4x128xbf16>, vector<272x128xf32> -> vector<272x128xf32>
    %115 = arith.addf %111, %114 : vector<272x128xf32>
    %c0_138 = arith.constant 0 : index
    %c0_139 = arith.constant 0 : index
    %c0_140 = arith.constant 0 : index
    %116 = vector.load %arg6[%c0_138, %c0_139, %c0_140] : memref<1x272x128xf32, #tpu.memory_space<vmem>>, vector<1x272x128xf32>
    %117 = vector.shape_cast %116 : vector<1x272x128xf32> to vector<272x128xf32>
    %118 = vector.shape_cast %115 : vector<272x128xf32> to vector<1x272x128xf32>
    tpu.vector_store %arg6[%c0_138, %c0_139, %c0_140], %118 {strides = array<i32>} : memref<1x272x128xf32, #tpu.memory_space<vmem>>, vector<1x272x128xf32>,
    %c39 = arith.constant 39 : index
    %c0_141 = arith.constant 0 : index
    %119 = vector.load %arg7[%c39, %c0_141] : memref<336x4xbf16, #tpu.memory_space<vmem>>, vector<272x4xbf16>
    %c0_142 = arith.constant 0 : index
    %c0_143 = arith.constant 0 : index
    %c0_144 = arith.constant 0 : index
    %120 = vector.load %arg6[%c0_142, %c0_143, %c0_144] : memref<1x272x128xf32, #tpu.memory_space<vmem>>, vector<1x272x128xf32>
    %121 = vector.shape_cast %120 : vector<1x272x128xf32> to vector<272x128xf32>
    %c2_145 = arith.constant 2 : index
    %c3_146 = arith.constant 3 : index
    %c0_147 = arith.constant 0 : index
    %c0_148 = arith.constant 0 : index
    %122 = vector.load %arg4[%c2_145, %c3_146, %c0_147, %c0_148] : memref<4x4x4x128xbf16, #tpu.memory_space<vmem>>, vector<1x1x4x128xbf16>
    %123 = vector.shape_cast %122 : vector<1x1x4x128xbf16> to vector<4x128xbf16>
    %cst_149 = arith.constant dense<0.000000e+00> : vector<272x128xf32>
    %124 = tpu.matmul %119, %123, %cst_149 {dimension_numbers = #tpu.dot_dimension_numbers<[1], [0], [0], [1], [0, 0, 1, 1], [], []>} : vector<272x4xbf16>, vector<4x128xbf16>, vector<272x128xf32> -> vector<272x128xf32>
    %125 = arith.addf %121, %124 : vector<272x128xf32>
    %c0_150 = arith.constant 0 : index
    %c0_151 = arith.constant 0 : index
    %c0_152 = arith.constant 0 : index
    %126 = vector.load %arg6[%c0_150, %c0_151, %c0_152] : memref<1x272x128xf32, #tpu.memory_space<vmem>>, vector<1x272x128xf32>
    %127 = vector.shape_cast %126 : vector<1x272x128xf32> to vector<272x128xf32>
    %128 = vector.shape_cast %125 : vector<272x128xf32> to vector<1x272x128xf32>
    tpu.vector_store %arg6[%c0_150, %c0_151, %c0_152], %128 {strides = array<i32>} : memref<1x272x128xf32, #tpu.memory_space<vmem>>, vector<1x272x128xf32>,
    %c54 = arith.constant 54 : index
    %c0_153 = arith.constant 0 : index
    %129 = vector.load %arg7[%c54, %c0_153] : memref<336x4xbf16, #tpu.memory_space<vmem>>, vector<272x4xbf16>
    %c0_154 = arith.constant 0 : index
    %c0_155 = arith.constant 0 : index
    %c0_156 = arith.constant 0 : index
    %130 = vector.load %arg6[%c0_154, %c0_155, %c0_156] : memref<1x272x128xf32, #tpu.memory_space<vmem>>, vector<1x272x128xf32>
    %131 = vector.shape_cast %130 : vector<1x272x128xf32> to vector<272x128xf32>
    %c3_157 = arith.constant 3 : index
    %c0_158 = arith.constant 0 : index
    %c0_159 = arith.constant 0 : index
    %c0_160 = arith.constant 0 : index
    %132 = vector.load %arg4[%c3_157, %c0_158, %c0_159, %c0_160] : memref<4x4x4x128xbf16, #tpu.memory_space<vmem>>, vector<1x1x4x128xbf16>
    %133 = vector.shape_cast %132 : vector<1x1x4x128xbf16> to vector<4x128xbf16>
    %cst_161 = arith.constant dense<0.000000e+00> : vector<272x128xf32>
    %134 = tpu.matmul %129, %133, %cst_161 {dimension_numbers = #tpu.dot_dimension_numbers<[1], [0], [0], [1], [0, 0, 1, 1], [], []>} : vector<272x4xbf16>, vector<4x128xbf16>, vector<272x128xf32> -> vector<272x128xf32>
    %135 = arith.addf %131, %134 : vector<272x128xf32>
    %c0_162 = arith.constant 0 : index
    %c0_163 = arith.constant 0 : index
    %c0_164 = arith.constant 0 : index
    %136 = vector.load %arg6[%c0_162, %c0_163, %c0_164] : memref<1x272x128xf32, #tpu.memory_space<vmem>>, vector<1x272x128xf32>
    %137 = vector.shape_cast %136 : vector<1x272x128xf32> to vector<272x128xf32>
    %138 = vector.shape_cast %135 : vector<272x128xf32> to vector<1x272x128xf32>
    tpu.vector_store %arg6[%c0_162, %c0_163, %c0_164], %138 {strides = array<i32>} : memref<1x272x128xf32, #tpu.memory_space<vmem>>, vector<1x272x128xf32>,
    %c55 = arith.constant 55 : index
    %c0_165 = arith.constant 0 : index
    %139 = vector.load %arg7[%c55, %c0_165] : memref<336x4xbf16, #tpu.memory_space<vmem>>, vector<272x4xbf16>
    %c0_166 = arith.constant 0 : index
    %c0_167 = arith.constant 0 : index
    %c0_168 = arith.constant 0 : index
    %140 = vector.load %arg6[%c0_166, %c0_167, %c0_168] : memref<1x272x128xf32, #tpu.memory_space<vmem>>, vector<1x272x128xf32>
    %141 = vector.shape_cast %140 : vector<1x272x128xf32> to vector<272x128xf32>
    %c3_169 = arith.constant 3 : index
    %c1_170 = arith.constant 1 : index
    %c0_171 = arith.constant 0 : index
    %c0_172 = arith.constant 0 : index
    %142 = vector.load %arg4[%c3_169, %c1_170, %c0_171, %c0_172] : memref<4x4x4x128xbf16, #tpu.memory_space<vmem>>, vector<1x1x4x128xbf16>
    %143 = vector.shape_cast %142 : vector<1x1x4x128xbf16> to vector<4x128xbf16>
    %cst_173 = arith.constant dense<0.000000e+00> : vector<272x128xf32>
    %144 = tpu.matmul %139, %143, %cst_173 {dimension_numbers = #tpu.dot_dimension_numbers<[1], [0], [0], [1], [0, 0, 1, 1], [], []>} : vector<272x4xbf16>, vector<4x128xbf16>, vector<272x128xf32> -> vector<272x128xf32>
    %145 = arith.addf %141, %144 : vector<272x128xf32>
    %c0_174 = arith.constant 0 : index
    %c0_175 = arith.constant 0 : index
    %c0_176 = arith.constant 0 : index
    %146 = vector.load %arg6[%c0_174, %c0_175, %c0_176] : memref<1x272x128xf32, #tpu.memory_space<vmem>>, vector<1x272x128xf32>
    %147 = vector.shape_cast %146 : vector<1x272x128xf32> to vector<272x128xf32>
    %148 = vector.shape_cast %145 : vector<272x128xf32> to vector<1x272x128xf32>
    tpu.vector_store %arg6[%c0_174, %c0_175, %c0_176], %148 {strides = array<i32>} : memref<1x272x128xf32, #tpu.memory_space<vmem>>, vector<1x272x128xf32>,
    %c56 = arith.constant 56 : index
    %c0_177 = arith.constant 0 : index
    %149 = vector.load %arg7[%c56, %c0_177] : memref<336x4xbf16, #tpu.memory_space<vmem>>, vector<272x4xbf16>
    %c0_178 = arith.constant 0 : index
    %c0_179 = arith.constant 0 : index
    %c0_180 = arith.constant 0 : index
    %150 = vector.load %arg6[%c0_178, %c0_179, %c0_180] : memref<1x272x128xf32, #tpu.memory_space<vmem>>, vector<1x272x128xf32>
    %151 = vector.shape_cast %150 : vector<1x272x128xf32> to vector<272x128xf32>
    %c3_181 = arith.constant 3 : index
    %c2_182 = arith.constant 2 : index
    %c0_183 = arith.constant 0 : index
    %c0_184 = arith.constant 0 : index
    %152 = vector.load %arg4[%c3_181, %c2_182, %c0_183, %c0_184] : memref<4x4x4x128xbf16, #tpu.memory_space<vmem>>, vector<1x1x4x128xbf16>
    %153 = vector.shape_cast %152 : vector<1x1x4x128xbf16> to vector<4x128xbf16>
    %cst_185 = arith.constant dense<0.000000e+00> : vector<272x128xf32>
    %154 = tpu.matmul %149, %153, %cst_185 {dimension_numbers = #tpu.dot_dimension_numbers<[1], [0], [0], [1], [0, 0, 1, 1], [], []>} : vector<272x4xbf16>, vector<4x128xbf16>, vector<272x128xf32> -> vector<272x128xf32>
    %155 = arith.addf %151, %154 : vector<272x128xf32>
    %c0_186 = arith.constant 0 : index
    %c0_187 = arith.constant 0 : index
    %c0_188 = arith.constant 0 : index
    %156 = vector.load %arg6[%c0_186, %c0_187, %c0_188] : memref<1x272x128xf32, #tpu.memory_space<vmem>>, vector<1x272x128xf32>
    %157 = vector.shape_cast %156 : vector<1x272x128xf32> to vector<272x128xf32>
    %158 = vector.shape_cast %155 : vector<272x128xf32> to vector<1x272x128xf32>
    tpu.vector_store %arg6[%c0_186, %c0_187, %c0_188], %158 {strides = array<i32>} : memref<1x272x128xf32, #tpu.memory_space<vmem>>, vector<1x272x128xf32>,
    %c57 = arith.constant 57 : index
    %c0_189 = arith.constant 0 : index
    %159 = vector.load %arg7[%c57, %c0_189] : memref<336x4xbf16, #tpu.memory_space<vmem>>, vector<272x4xbf16>
    %c0_190 = arith.constant 0 : index
    %c0_191 = arith.constant 0 : index
    %c0_192 = arith.constant 0 : index
    %160 = vector.load %arg6[%c0_190, %c0_191, %c0_192] : memref<1x272x128xf32, #tpu.memory_space<vmem>>, vector<1x272x128xf32>
    %161 = vector.shape_cast %160 : vector<1x272x128xf32> to vector<272x128xf32>
    %c3_193 = arith.constant 3 : index
    %c3_194 = arith.constant 3 : index
    %c0_195 = arith.constant 0 : index
    %c0_196 = arith.constant 0 : index
    %162 = vector.load %arg4[%c3_193, %c3_194, %c0_195, %c0_196] : memref<4x4x4x128xbf16, #tpu.memory_space<vmem>>, vector<1x1x4x128xbf16>
    %163 = vector.shape_cast %162 : vector<1x1x4x128xbf16> to vector<4x128xbf16>
    %cst_197 = arith.constant dense<0.000000e+00> : vector<272x128xf32>
    %164 = tpu.matmul %159, %163, %cst_197 {dimension_numbers = #tpu.dot_dimension_numbers<[1], [0], [0], [1], [0, 0, 1, 1], [], []>} : vector<272x4xbf16>, vector<4x128xbf16>, vector<272x128xf32> -> vector<272x128xf32>
    %165 = arith.addf %161, %164 : vector<272x128xf32>
    %c0_198 = arith.constant 0 : index
    %c0_199 = arith.constant 0 : index
    %c0_200 = arith.constant 0 : index
    %166 = vector.load %arg6[%c0_198, %c0_199, %c0_200] : memref<1x272x128xf32, #tpu.memory_space<vmem>>, vector<1x272x128xf32>
    %167 = vector.shape_cast %166 : vector<1x272x128xf32> to vector<272x128xf32>
    %168 = vector.shape_cast %165 : vector<272x128xf32> to vector<1x272x128xf32>
    tpu.vector_store %arg6[%c0_198, %c0_199, %c0_200], %168 {strides = array<i32>} : memref<1x272x128xf32, #tpu.memory_space<vmem>>, vector<1x272x128xf32>,
    return
  }
  func.func @transform_0(%arg0: i32, %arg1: i32, %arg2: i32) -> (i32, i32, i32) {
    %c0_i32 = arith.constant 0 : i32
    %c0_i32_0 = arith.constant 0 : i32
    %c0_i32_1 = arith.constant 0 : i32
    return %arg0, %c0_i32, %c0_i32_0 : i32, i32, i32
  }
  func.func @transform_1(%arg0: i32, %arg1: i32, %arg2: i32) -> (i32, i32, i32, i32) {
    %c0_i32 = arith.constant 0 : i32
    %c0_i32_0 = arith.constant 0 : i32
    %c0_i32_1 = arith.constant 0 : i32
    %c0_i32_2 = arith.constant 0 : i32
    return %c0_i32, %c0_i32_0, %c0_i32_1, %arg1 : i32, i32, i32, i32
  }
  func.func @transform_2(%arg0: i32, %arg1: i32, %arg2: i32) -> (i32, i32) {
    %c0_i32 = arith.constant 0 : i32
    %c0_i32_0 = arith.constant 0 : i32
    return %c0_i32, %arg1 : i32, i32
  }
  func.func @transform_3(%arg0: i32, %arg1: i32, %arg2: i32) -> (i32, i32, i32) {
    %c0_i32 = arith.constant 0 : i32
    return %arg0, %arg2, %arg1 : i32, i32, i32
  }
}

</mosaic_0001>

<bundles_post_ra>
// kernel: tpu_custom_call.1
= control target key start
LH: loop header
LB: loop body
LE: loop exit
PB: predicated region body
PF: predicated region fallthrough
CT: control target
= control target key end

     0   :  { %8 = vsyncpa [#allocation4], 0  ;;  %s12777_s0 = inlined_call_operand.vmem [shape: bf16[2,342,4], index: 0, kind: input, shape index: {}]   ;;  %s12778_s1 = inlined_call_operand.vmem [shape: bf16[4,4,4,128], index: 1, kind: input, shape index: {}]   ;;  %s12779_s2 = inlined_call_operand.vmem [shape: f32[1,128], index: 2, kind: input, shape index: {}]   ;;  %s12780_s3 = inlined_call_operand.hbm [shape: f32[2,272,128], index: 3, kind: output, shape index: {}]  }
   0x1   :  { %10 = vsyncpa [#allocation4 + $0x1], 0  ;;  %s10815_s12 = smov 0   ;;  %s10817_s13 = smov 0  }
   0x2   :  { %s10819_s14 = smov 0   ;;  %s10821_s15 = smov 0  }
   0x3   :  { %s10823_s16 = smov 0   ;;  %s10825_s17 = smov 0  }
   0x4 LB: > { %s7743_s18 = sadd.s32 4294967295, %s10788_s17   ;;  %s7744_s19 = sadd.s32 4294967294, %s10788_s17   ;;  %s10788_s17 = sphi %s10825_s17, %s16_s17   ;;  %s10784_s16 = sphi %s10823_s16, %s12787_s16   ;;  %s10780_s15 = sphi %s10821_s15, %s12786_s15   ;;  %s10776_s14 = sphi %s10819_s14, %s12785_s14   ;;  %s10772_s13 = sphi %s10817_s13, %s12784_s13   ;;  %s10768_s12 = sphi %s10815_s12, %s12783_s12  }
   0x5   : > { %s35_s20 = sadd.s32 1, %s10784_s16  ;;  %s124_s21 = sadd.s32 1, %s10776_s14 }
   0x6   : > { %p37_p0 = scmp.ge.s32.totalorder %s35_s20, 2  ;;  %p134_p1 = scmp.ne.s32.totalorder %s10776_s14, %s10772_s13 }
   0x7   : > { %p135_p2 = scmp.eq.s32.totalorder %s7743_s18, 1  ;;  %p140_p3 = scmp.ne.s32.totalorder %s10772_s13, %s10768_s12 }
   0x8   : > { %s12789_s20 = smov (%p37_p0, %s35_s20), 0  ;;  %p141_p5 = scmp.eq.s32.totalorder %s7744_s19, 1 }
   0x9   : > { %p10855_p4 = por %p135_p2, %p134_p1  ;;  %s117_s23 = ssub.s32 %s10784_s16, %s12789_s20 }
   0xa   : > { %p7749_p6 = scmp.ge.s32.totalorder %s10788_s17, 1  ;;  %p122_p7 = scmp.eq.s32.totalorder %s117_s23, 0 }
   0xb   : > { %p10862_p8 = por %p141_p5, %p140_p3  ;;  %p180_p9 = scmp.lt.s32.totalorder %s10788_s17, 3 }
   0xc   : > { %s10868_s25 = scalar_select %p122_p7, %s10776_s14, %s124_s21  }
   0xd   : > { %p181_p10 = pnand %p7749_p6, %p180_p9 }
   0xe   : > { %v507_v0 = vld [vmem:[%s12778_s1] sm:$0x3] (!%p181_p10)  ;;  %vm559_vm0 = vcmask (!%p181_p10), 1041408   ;;  %p211_p11 = scmp.lt.s32.totalorder (!%p181_p10), %s10780_s15, 1  ;;  %v10790_v1 = vmov (!%p181_p10), 0.0   ;;  %vm10791_vm1 = vmmov (!%p181_p10), 0  }
   0xf   : > { %184 = sbr.rel (%p181_p10) target bundleno = 1351 (0x547), region = 32  ;;  %8351 = vmatprep.subr.bf16.mxu1 (!%p181_p10), %v10790_v1  ;;  %v561_v2 = vsel (!%p181_p10), %vm559_vm0, %v507_v0, 0  ;;  %8353 = vmatprep.mubr.msk.bf16.mxu1 (!%p181_p10), %vm10791_vm1, %v10790_v1  ;;  %v7916_v3 = vld [vmem:[%s12778_s1 + $0x10] sm:$0x3] (!%p181_p10)  ;;  %vm393_vm2 = vcmask (!%p181_p10), 31744   ;;  %vm3168_vm3 = vcmask (!%p181_p10), 1045504  }
  0x10   : > { %8352 = vmatpush3.bf16.msra.mxu1 (!%p181_p10), %v561_v2  ;;  %8911 = vmatprep.subr.bf16.mxu0 (!%p181_p10), %v10790_v1  ;;  %v4161_v4 = vsel (!%p181_p10), %vm559_vm0, %v7916_v3, 0  ;;  %v7790_v8 = vld [vmem:[%s12778_s1 + $0x2] sm:$0x3] (!%p181_p10)  ;;  %v7934_v15 = vld [vmem:[%s12778_s1 + $0x12] sm:$0x3] (!%p181_p10)  ;;  %vm1358_vm6 = vcmask (!%p181_p10), 1046528  }
  0x11   : > { %8421 = vmatprep.subr.bf16.mxu1 (!%p181_p10), %v10790_v1  ;;  %8912 = vmatpush3.bf16.msra.mxu0 (!%p181_p10), %v4161_v4  ;;  %v1047_v14 = vsel (!%p181_p10), %vm559_vm0, %v7790_v8, 0  ;;  %v4667_v24 = vsel (!%p181_p10), %vm559_vm0, %v7934_v15, 0  ;;  %vm3549_vm4 = vsmask.f32 (!%p181_p10), 5376  ;;  %vm854_vm5 = vsmask.f32 (!%p181_p10), 7424 }
  0x12   : > { %8913 = vmatprep.mubr.msk.bf16.mxu0 (!%p181_p10), %vm10791_vm1, %v10790_v1  ;;  %8981 = vmatprep.subr.bf16.mxu0 (!%p181_p10), %v10790_v1  ;;  %vm4978_vm7 = vcmask (!%p181_p10), 1044480   ;;  %vm1739_vm8 = vsmask.f32 (!%p181_p10), 6400  ;;  %vm5359_vm9 = vsmask.f32 (!%p181_p10), 4352  ;;  %vm6788_vm10 = vcmask (!%p181_p10), 1043456  }
  0x13   : > { %vm7169_vm11 = vsmask.f32 (!%p181_p10), 3328  ;;  %s208_s29 = sand.u32 (!%p181_p10), 1, %s10772_s13   ;;  %s10629_s8 = smul.u32 (!%p181_p10), 4352, %s10780_s15 }
  0x14   : > { %s10627_s5 = smul.u32 (!%p181_p10), 272, %s208_s29  ;;  %s10792_s19 = smov (!%p181_p10), [#allocation3]  }
  0x15   : > { %s12723_s11 = scalar_lea.hbm (!%p181_p10), %s12780_s3, %s10629_s8  ;;  %s10714_s21 = sshll.u32 (!%p181_p10), %s10792_s19, 4  ;;  %s10715_s21 = int_to_ptr.vmem [resolvable:$false] %s10714_s21 }
  0x16   : > { %s212_s30 = scalar_select %p211_p11, %s10780_s15, 1 }
  0x17   : > { %s12652_s6 = scalar_lea.vmem [#allocation3], %s10627_s5  ;;  %s12731_s15 = scalar_lea.sflag [#allocation4], %s208_s29 }
  0x18   : > { %s10628_s4 = smul.u32 172, %s212_s30  ;;  %s7639_s9 = sshll.u32 %s12652_s6, 4  ;;  %s12725_s9 = int_to_ptr.vmem [resolvable:$true] %s7639_s9 }
  0x19   : > { %s10710_s18 = scalar_lea.vmem %s12725_s9, 4352  ;;  %s10716_s23 = scalar_lea.vmem %s10715_s21, 8704 }
  0x1a   : > { %s10891_s7 = scalar_lea.vmem %s12777_s0, %s10628_s4  ;;  %p10711_p12 = scmp.ne.s32.totalorder %s12725_s9, %s10710_s18 }
  0x1b   : > { %v10689_v5 = vld [vmem:[%s10891_s7] sm:$0xff]   ;;  %v10690_v6 = vld [vmem:[%s10891_s7 + $0x10] sm:$0xff]   ;;  %v10691_v7 = vld [vmem:[%s10891_s7 + $0x18] sm:$0xff]   ;;  %p10717_p1 = scmp.lt.s32.totalorder %s12725_s9, %s10715_s21  ;;  %p10718_p2 = scmp.lt.s32.totalorder %s10716_s23, %s10710_s18 }
  0x1c   : > { %394 = vst.msk [vmem:[#allocation2] sm:$0xff] %vm393_vm2, %v10689_v5  ;;  %v10692_v9 = vld [vmem:[%s10891_s7 + $0x8] sm:$0xff]   ;;  %396 = vst.msk [vmem:[#allocation2 + $0x10] sm:$0xff] %vm393_vm2, %v10690_v6  ;;  %v10693_v10 = vld [vmem:[%s10891_s7 + $0x20] sm:$0xff]   ;;  %p10712_p13 = pnand %p10711_p12, %p10855_p4 }
  0x1d   : > { %397 = vst.msk [vmem:[#allocation2 + $0x18] sm:$0xff] %vm393_vm2, %v10691_v7  ;;  %395 = vst.msk [vmem:[#allocation2 + $0x8] sm:$0xff] %vm393_vm2, %v10692_v9  ;;  %v10694_v11 = vld [vmem:[%s10891_s7 + $0x28] sm:$0xff]   ;;  %v10695_v12 = vld [vmem:[%s10891_s7 + $0x30] sm:$0xff]   ;;  %p10719_p3 = por %p10718_p2, %p10717_p1 }
  0x1e   : > { %398 = vst.msk [vmem:[#allocation2 + $0x20] sm:$0xff] %vm393_vm2, %v10693_v10  ;;  %399 = vst.msk [vmem:[#allocation2 + $0x28] sm:$0xff] %vm393_vm2, %v10694_v11  ;;  %v10696_v13 = vld [vmem:[%s10891_s7 + $0x38] sm:$0xff]   ;;  %v10697_v16 = vld [vmem:[%s10891_s7 + $0x40] sm:$0xff]   ;;  %p10713_p0 = pneg %p10712_p13 }
  0x1f   : > { %400 = vst.msk [vmem:[#allocation2 + $0x30] sm:$0xff] %vm393_vm2, %v10695_v12  ;;  %401 = vst.msk [vmem:[#allocation2 + $0x38] sm:$0xff] %vm393_vm2, %v10696_v13  ;;  %v10698_v18 = vld [vmem:[%s10891_s7 + $0x48] sm:$0xff]   ;;  %v10699_v23 = vld [vmem:[%s10891_s7 + $0x50] sm:$0xff]  }
  0x20   : > { %402 = vst.msk [vmem:[#allocation2 + $0x40] sm:$0xff] %vm393_vm2, %v10697_v16  ;;  %403 = vst.msk [vmem:[#allocation2 + $0x48] sm:$0xff] %vm393_vm2, %v10698_v18  ;;  %v10700_v26 = vld [vmem:[%s10891_s7 + $0x58] sm:$0xff]   ;;  %v10701_v29 = vld [vmem:[%s10891_s7 + $0x60] sm:$0xff]   ;;  %p10720_p5 = pnand %p10719_p3, %p10713_p0 }
  0x21   : > { %404 = vst.msk [vmem:[#allocation2 + $0x50] sm:$0xff] %vm393_vm2, %v10699_v23  ;;  %405 = vst.msk [vmem:[#allocation2 + $0x58] sm:$0xff] %vm393_vm2, %v10700_v26  ;;  %v10702_v31 = vld [vmem:[%s10891_s7 + $0x68] sm:$0xff]   ;;  %v10703_v32 = vld [vmem:[%s10891_s7 + $0x70] sm:$0xff]  }
  0x22   : > { %406 = vst.msk [vmem:[#allocation2 + $0x60] sm:$0xff] %vm393_vm2, %v10701_v29  ;;  %407 = vst.msk [vmem:[#allocation2 + $0x68] sm:$0xff] %vm393_vm2, %v10702_v31  ;;  %v10704_v33 = vld [vmem:[%s10891_s7 + $0x78] sm:$0xff]   ;;  %v10705_v35 = vld [vmem:[%s10891_s7 + $0x80] sm:$0xff]  }
  0x23   : > { %v10916_v17 = vld [vmem:[#allocation2] sm:$0xff]  ;;  %v4002_v19 = vld [vmem:[#allocation2 + $0x10] sm:$0xfc]  ;;  %408 = vst.msk [vmem:[#allocation2 + $0x70] sm:$0xff] %vm393_vm2, %v10703_v32  ;;  %409 = vst.msk [vmem:[#allocation2 + $0x78] sm:$0xff] %vm393_vm2, %v10704_v33 }
  0x24   : > { %8354 = vmatmul.mubr.msk.bf16.vlgmr.msra.gmra.mrb[0].mxu1 %vm393_vm2, %v10916_v17  ;;  %v10923_v20 = vld [vmem:[#allocation2 + $0x18] sm:$0xff]  ;;  %v4074_v21 = vrot.slane %v4002_v19, 2  ;;  %v10938_v28 = vld [vmem:[#allocation2 + $0x8] sm:$0xff]  ;;  %v10706_v37 = vld [vmem:[%s10891_s7 + $0x88] sm:$0xff]   ;;  %410 = vst.msk [vmem:[#allocation2 + $0x80] sm:$0xff] %vm393_vm2, %v10705_v35 }
  0x25   : > { %8422 = vmatpush3.bf16.msra.mxu1 %v1047_v14  ;;  %8357 = vmatprep.mubr.msk.bf16.mxu1 %vm10791_vm1, %v10790_v1  ;;  %v4075_v22 = vrot.slane %v10923_v20, 2  ;;  %v10932_v25 = vld [vmem:[#allocation2 + $0x20] sm:$0xff]  ;;  %v10958_v36 = vld [vmem:[#allocation2 + $0x28] sm:$0xff]  ;;  %v10962_v38 = vld [vmem:[#allocation2 + $0x10] sm:$0xff]  ;;  %411 = vst.msk [vmem:[#allocation2 + $0x88] sm:$0xff] %vm393_vm2, %v10706_v37  ;;  %v4463_v44 = vshrl.u32 %v10923_v20, 16 }
  0x26   : > { %8491 = vmatprep.subr.bf16.mxu1 %v10790_v1  ;;  %v4077_v30 = vrot.slane %v10932_v25, 2  ;;  %v10707_v39 = vld [vmem:[%s10891_s7 + $0x90] sm:$0xff]   ;;  %v4079_v40 = vrot.slane %v10958_v36, 2  ;;  %v10708_v41 = vld [vmem:[%s10891_s7 + $0x98] sm:$0xff]   ;;  %v10979_v43 = vld [vmem:[#allocation2 + $0x30] sm:$0xff]  ;;  %v4466_v45 = vshll.u32 %v10923_v20, 16 }
  0x27   : > { %v4076_v27 = vsel %vm3168_vm3, %v4074_v21, %v4075_v22  ;;  %412 = vst.msk [vmem:[#allocation2 + $0x90] sm:$0xff] %vm393_vm2, %v10707_v39  ;;  %413 = vst.msk [vmem:[#allocation2 + $0x98] sm:$0xff] %vm393_vm2, %v10708_v41  ;;  %v4081_v46 = vrot.slane %v10979_v43, 2  ;;  %v4465_v47 = vrot.slane %v4463_v44, 2  ;;  %v4472_v49 = vshrl.u32 %v10932_v25, 16  ;;  %v10998_v58 = vld [vmem:[#allocation2 + $0x38] sm:$0xff] }
  0x28   : > { %8914 = vmatmul.mubr.msk.bf16.vlgmr.msra.gmra.mrb[0].mxu0 %vm393_vm2, %v4076_v27  ;;  %v4078_v34 = vsel %vm3168_vm3, %v4075_v22, %v4077_v30  ;;  %v4080_v42 = vsel %vm3168_vm3, %v4077_v30, %v4079_v40  ;;  %v4468_v48 = vrot.slane %v4466_v45, 3  ;;  %v4475_v50 = vshll.u32 %v10932_v25, 16  ;;  %v11024_v12 = vld [vmem:[#allocation2 + $0x40] sm:$0xff]  ;;  %v11066_v39 = vld [vmem:[#allocation2 + $0x50] sm:$0xff] }
  0x29   : > { %8917 = vmatprep.mubr.msk.bf16.mxu0 %vm10791_vm1, %v10790_v1  ;;  %8982 = vmatpush3.bf16.msra.mxu0 %v4667_v24  ;;  %v4474_v51 = vrot.slane %v4472_v49, 2  ;;  %v4481_v53 = vshrl.u32 %v10958_v36, 16  ;;  %v4484_v54 = vshll.u32 %v10958_v36, 16  ;;  %v4082_v55 = vsel %vm3168_vm3, %v4079_v40, %v4081_v46 }
  0x2a   : > { %9051 = vmatprep.subr.bf16.mxu0 %v10790_v1  ;;  %v4477_v52 = vrot.slane %v4475_v50, 3  ;;  %v10996_v56 = vor.u32 %v4468_v48, %v4465_v47  ;;  %v11000_v59 = vrot.slane %v4466_v45, 1  ;;  %v889_v2 = vrot.slane %v4475_v50, 1 }
  0x2b   : > { %v4483_v60 = vrot.slane %v4481_v53, 2  ;;  %v4486_v61 = vrot.slane %v4484_v54, 3  ;;  %v4083_v3 = vrot.slane %v10998_v58, 2  ;;  %v4490_v4 = vshrl.u32 %v10979_v43, 16 }
  0x2c   : > { %8358 = vmatmul.mubr.msk.bf16.gmra.mrb[4].mxu1 %vm393_vm2, %v10938_v28  ;;  %v4478_v57 = vor.u32 %v4477_v52, %v4474_v51  ;;  %v885_v0 = vor.u32 %v4463_v44, %v11000_v59  ;;  %v4493_v5 = vshll.u32 %v10979_v43, 16  ;;  %v893_v14 = vor.u32 %v4472_v49, %v889_v2  ;;  %v11101_v52 = vld [vmem:[#allocation2 + $0x60] sm:$0xff] }
  0x2d   : > { %8361 = vmatprep.mubr.msk.bf16.mxu1 %vm10791_vm1, %v10790_v1  ;;  %v4487_v63 = vor.u32 %v4486_v61, %v4483_v60  ;;  %v4492_v8 = vrot.slane %v4490_v4, 2  ;;  %v4084_v10 = vsel %vm3168_vm3, %v4081_v46, %v4083_v3  ;;  %v897_v15 = vrot.slane %v4484_v54, 1  ;;  %v11084_v46 = vld [vmem:[#allocation2 + $0x58] sm:$0xff]  ;;  %v11123_v60 = vld [vmem:[#allocation2 + $0x70] sm:$0xff] }
  0x2e   : > { %v11004_v62 = vsel %vm3549_vm4, %v10996_v56, %v4478_v57  ;;  %v11017_v7 = vsel %vm854_vm5, %v885_v0, %v889_v2  ;;  %v4495_v9 = vrot.slane %v4493_v5, 3  ;;  %v4085_v16 = vrot.slane %v11024_v12, 2  ;;  %v11134_v0 = vld [vmem:[#allocation2 + $0x78] sm:$0xff] }
  0x2f   : > { %v11014_v6 = vsel %vm3549_vm4, %v4478_v57, %v4487_v63  ;;  %v4499_v18 = vshrl.u32 %v10998_v58, 16  ;;  %v4502_v19 = vshll.u32 %v10998_v58, 16  ;;  %v901_v27 = vor.u32 %v4481_v53, %v897_v15 }
  0x30   : > { %8918 = vmatmul.mubr.msk.bf16.gmra.mrb[4].mxu0 %vm393_vm2, %v4078_v34  ;;  %v4496_v11 = vor.u32 %v4495_v9, %v4492_v8  ;;  %v4086_v23 = vsel %vm3168_vm3, %v4083_v3, %v4085_v16  ;;  %v905_v29 = vrot.slane %v4493_v5, 1  ;;  %v4508_v31 = vshrl.u32 %v11024_v12, 16  ;;  %v11156_v9 = vld [vmem:[#allocation2 + $0x88] sm:$0xff] }
  0x31   : > { %8921 = vmatprep.mubr.msk.bf16.mxu0 %vm10791_vm1, %v10790_v1  ;;  %v4501_v21 = vrot.slane %v4499_v18, 2  ;;  %v4504_v22 = vrot.slane %v4502_v19, 3  ;;  %v4511_v32 = vshll.u32 %v11024_v12, 16  ;;  %v4091_v49 = vrot.slane %v11084_v46, 2 }
  0x32   : > { %v11027_v13 = vsel %vm3549_vm4, %v4487_v63, %v4496_v11  ;;  %v11055_v33 = vsel %vm854_vm5, %v901_v27, %v905_v29  ;;  %v4510_v34 = vrot.slane %v4508_v31, 2  ;;  %v909_v41 = vor.u32 %v4490_v4, %v905_v29  ;;  %v11145_v4 = vld [vmem:[#allocation2 + $0x80] sm:$0xff] }
  0x33   : > { %v4505_v24 = vor.u32 %v4504_v22, %v4501_v21  ;;  %v4513_v35 = vrot.slane %v4511_v32, 3  ;;  %v11087_v48 = vrot.slane %v4511_v32, 1  ;;  %v4093_v53 = vrot.slane %v11101_v52, 2  ;;  %v4400_v21 = vld [vmem:[#allocation2 + $0x10] sm:$0xfc] }
  0x34   : > { %8362 = vmatmul.mubr.msk.bf16.gmra.mrb[8].mxu1 %vm393_vm2, %v10962_v38  ;;  %v4097_v61 = vrot.slane %v11123_v60, 2  ;;  %v4099_v2 = vrot.slane %v11134_v0, 2  ;;  %v4101_v5 = vrot.slane %v11145_v4, 2  ;;  %v856_v22 = vshrl.u32 %v10916_v17, 16 }
  0x35   : > { %8365 = vmatprep.mubr.msk.bf16.mxu1 %vm10791_vm1, %v10790_v1  ;;  %v11046_v26 = vsel %vm3549_vm4, %v4496_v11, %v4505_v24  ;;  %v11064_v37 = vor.u32 %v4513_v35, %v4510_v34  ;;  %v4094_v54 = vsel %vm3168_vm3, %v4091_v49, %v4093_v53  ;;  %v4455_v29 = vshrl.u32 %v4400_v21, 16 }
  0x36   : > { %v4100_v3 = vsel %vm3168_vm3, %v4097_v61, %v4099_v2  ;;  %v4102_v8 = vsel %vm3168_vm3, %v4099_v2, %v4101_v5 }
  0x37   : > { %v11070_v40 = vsel %vm3549_vm4, %v4505_v24, %v11064_v37  ;;  %v863_v24 = vshll.u32 %v10938_v28, 16 }
  0x38   : > { %8922 = vmatmul.mubr.msk.bf16.gmra.mrb[8].mxu0 %vm393_vm2, %v4080_v42  ;;  %v913_v42 = vrot.slane %v4502_v19, 1  ;;  %v4019_v19 = vld [vmem:[#allocation2 + $0x98] sm:$0x3] }
  0x39   : > { %8925 = vmatprep.mubr.msk.bf16.mxu0 %vm10791_vm1, %v10790_v1  ;;  %v4107_v27 = vrot.slane %v4019_v19, 2  ;;  %v865_v34 = vrot.slane %v863_v24, 1  ;;  %v4544_v19 = vshrl.u32 %v11101_v52, 16 }
  0x3a   : > { %v11077_v44 = vsel %vm854_vm5, %v909_v41, %v913_v42  ;;  %v917_v47 = vor.u32 %v4499_v18, %v913_v42  ;;  %v7808_v41 = vld [vmem:[%s12778_s1 + $0x4] sm:$0x3] }
  0x3c   : > { %8366 = vmatmul.mubr.msk.bf16.gmra.mrb[12].mxu1 %vm393_vm2, %v10923_v20  ;;  %v11036_v20 = vsel %vm854_vm5, %v893_v14, %v897_v15  ;;  %v11094_v50 = vsel %vm854_vm5, %v917_v47, %v11087_v48  ;;  %v11167_v14 = vld [vmem:[#allocation2 + $0x90] sm:$0xff]  ;;  %v1446_v47 = vsel %vm559_vm0, %v7808_v41, 0 }
  0x3d   : > { %8369 = vmatprep.mubr.msk.bf16.mxu1 %vm10791_vm1, %v10790_v1  ;;  %v4105_v15 = vrot.slane %v11167_v14, 2 }
  0x3f   : > { %v4108_v35 = vsel %vm3168_vm3, %v4105_v15, %v4107_v27 }
  0x40   : > { %8926 = vmatmul.mubr.msk.bf16.gmra.mrb[12].mxu0 %vm393_vm2, %v4082_v55  ;;  %v11112_v55 = vld [vmem:[#allocation2 + $0x68] sm:$0xff] }
  0x41   : > { %8929 = vmatprep.mubr.msk.bf16.mxu0 %vm10791_vm1, %v10790_v1  ;;  %v4095_v57 = vrot.slane %v11112_v55, 2 }
  0x43   : > { %v4098_v63 = vsel %vm3168_vm3, %v4095_v57, %v4097_v61 }
  0x44   : > { %8370 = vmatmul.mubr.msk.bf16.gmra.mrb[16].mxu1 %vm393_vm2, %v10932_v25  ;;  %v11043_v25 = vld [vmem:[#allocation2 + $0x48] sm:$0xff] }
  0x45   : > { %8373 = vmatprep.mubr.msk.bf16.mxu1 %vm10791_vm1, %v10790_v1  ;;  %v4087_v30 = vrot.slane %v11043_v25, 2 }
  0x48   : > { %8930 = vmatmul.mubr.msk.bf16.gmra.mrb[16].mxu0 %vm393_vm2, %v4084_v10  ;;  %v4103_v10 = vrot.slane %v11156_v9, 2 }
  0x49   : > { %8933 = vmatprep.mubr.msk.bf16.mxu0 %vm10791_vm1, %v10790_v1 }
  0x4a   : > { %v4104_v11 = vsel %vm3168_vm3, %v4101_v5, %v4103_v10  ;;  %v4106_v18 = vsel %vm3168_vm3, %v4103_v10, %v4105_v15  ;;  %v4538_v10 = vshll.u32 %v11084_v46, 16 }
  0x4c   : > { %8374 = vmatmul.mubr.msk.bf16.gmra.mrb[20].mxu1 %vm393_vm2, %v10958_v36  ;;  %v4088_v36 = vsel %vm3168_vm3, %v4085_v16, %v4087_v30  ;;  %v858_v16 = vshll.u32 %v10916_v17, 16  ;;  %v4457_v17 = vrot.slane %v4455_v29, 2  ;;  %v4553_v29 = vshrl.u32 %v11112_v55, 16 }
  0x4d   : > { %8377 = vmatprep.mubr.msk.bf16.mxu1 %vm10791_vm1, %v10790_v1 }
  0x50   : > { %8934 = vmatmul.mubr.msk.bf16.gmra.mrb[20].mxu0 %vm393_vm2, %v4086_v23  ;;  %v860_v23 = vrot.slane %v858_v16, 1  ;;  %v4540_v16 = vrot.slane %v4538_v10, 3 }
  0x51   : > { %8937 = vmatprep.mubr.msk.bf16.mxu0 %vm10791_vm1, %v10790_v1 }
  0x52   : > { %v861_v32 = vor.u32 %v860_v23, %v856_v22  ;;  %v4546_v22 = vrot.slane %v4544_v19, 2 }
  0x54   : > { %8378 = vmatmul.mubr.msk.bf16.gmra.mrb[24].mxu1 %vm393_vm2, %v10979_v43  ;;  %v4089_v43 = vrot.slane %v11066_v39, 2  ;;  %v866_v42 = vsel %vm854_vm5, %v861_v32, %v865_v34 }
  0x55   : > { %8381 = vmatprep.mubr.msk.bf16.mxu1 %vm10791_vm1, %v10790_v1 }
  0x56   : > { %v4090_v45 = vsel %vm3168_vm3, %v4087_v30, %v4089_v43  ;;  %v4092_v51 = vsel %vm3168_vm3, %v4089_v43, %v4091_v49  ;;  %v4458_v30 = vshll.u32 %v4400_v21, 16  ;;  %v867_v43 = vshrl.u32 %v10938_v28, 16 }
  0x57   : > { %v4547_v21 = vshll.u32 %v11101_v52, 16 }
  0x58   : > { %8938 = vmatmul.mubr.msk.bf16.gmra.mrb[24].mxu0 %vm393_vm2, %v4088_v36  ;;  %v4460_v36 = vrot.slane %v4458_v30, 3  ;;  %v4556_v30 = vshll.u32 %v11112_v55, 16 }
  0x59   : > { %8941 = vmatprep.mubr.msk.bf16.mxu0 %vm10791_vm1, %v10790_v1  ;;  %v4549_v23 = vrot.slane %v4547_v21, 3 }
  0x5a   : > { %v4461_v49 = vor.u32 %v4460_v36, %v4457_v17  ;;  %v4555_v17 = vrot.slane %v4553_v29, 2  ;;  %v4558_v36 = vrot.slane %v4556_v30, 3 }
  0x5b   : > { %v4550_v27 = vor.u32 %v4549_v23, %v4546_v22 }
  0x5c   : > { %8382 = vmatmul.mubr.msk.bf16.gmra.mrb[28].mxu1 %vm393_vm2, %v10998_v58  ;;  %v4096_v58 = vsel %vm3168_vm3, %v4093_v53, %v4095_v57  ;;  %v869_v53 = vor.u32 %v867_v43, %v865_v34  ;;  %v4470_v57 = vsel %vm3549_vm4, %v4461_v49, %v10996_v56  ;;  %v945_v34 = vrot.slane %v4538_v10, 1 }
  0x5d   : > { %8385 = vmatprep.mubr.msk.bf16.mxu1 %vm10791_vm1, %v10790_v1  ;;  %v4562_v43 = vshrl.u32 %v11123_v60, 16  ;;  %v953_v49 = vrot.slane %v4547_v21, 1 }
  0x60   : > { %8942 = vmatmul.mubr.msk.bf16.gmra.mrb[28].mxu0 %vm393_vm2, %v4090_v45  ;;  %v871_v45 = vshll.u32 %v10962_v38, 16 }
  0x61   : > { %8945 = vmatprep.mubr.msk.bf16.mxu0 %vm10791_vm1, %v10790_v1 }
  0x64   : > { %8386 = vmatmul.mubr.msk.bf16.gmra.mrb[32].mxu1 %vm393_vm2, %v11024_v12 }
  0x65   : > { %8389 = vmatprep.mubr.msk.bf16.mxu1 %vm10791_vm1, %v10790_v1 }
  0x68   : > { %8946 = vmatmul.mubr.msk.bf16.gmra.mrb[32].mxu0 %vm393_vm2, %v4092_v51  ;;  %v7952_v51 = vld [vmem:[%s12778_s1 + $0x14] sm:$0x3] }
  0x69   : > { %8949 = vmatprep.mubr.msk.bf16.mxu0 %vm10791_vm1, %v10790_v1 }
  0x6c   : > { %8390 = vmatmul.mubr.msk.bf16.gmra.mrb[36].mxu1 %vm393_vm2, %v11043_v25 }
  0x6d   : > { %8393 = vmatprep.mubr.msk.bf16.mxu1 %vm10791_vm1, %v10790_v1 }
  0x70   : > { %8950 = vmatmul.mubr.msk.bf16.gmra.mrb[36].mxu0 %vm393_vm2, %v4094_v54  ;;  %v873_v54 = vrot.slane %v871_v45, 1  ;;  %v4565_v45 = vshll.u32 %v11123_v60, 16 }
  0x71   : > { %8953 = vmatprep.mubr.msk.bf16.mxu0 %vm10791_vm1, %v10790_v1 }
  0x72   : > { %v874_v61 = vsel %vm854_vm5, %v869_v53, %v873_v54  ;;  %v4564_v53 = vrot.slane %v4562_v43, 2 }
  0x74   : > { %8394 = vmatmul.mubr.msk.bf16.gmra.mrb[40].mxu1 %vm393_vm2, %v11066_v39 }
  0x75   : > { %8397 = vmatprep.mubr.msk.bf16.mxu1 %vm10791_vm1, %v10790_v1 }
  0x78   : > { %8954 = vmatmul.mubr.msk.bf16.gmra.mrb[40].mxu0 %vm393_vm2, %v4096_v58  ;;  %v5066_v58 = vsel %vm559_vm0, %v7952_v51, 0 }
  0x79   : > { %8957 = vmatprep.mubr.msk.bf16.mxu0 %vm10791_vm1, %v10790_v1 }
  0x7c   : > { %8398 = vmatmul.mubr.msk.bf16.gmra.mrb[44].mxu1 %vm393_vm2, %v11084_v46 }
  0x7d   : > { %8401 = vmatprep.mubr.msk.bf16.mxu1 %vm10791_vm1, %v10790_v1 }
  0x80   : > { %8958 = vmatmul.mubr.msk.bf16.gmra.mrb[44].mxu0 %vm393_vm2, %v4098_v63  ;;  %v875_v63 = vshrl.u32 %v10962_v38, 16 }
  0x81   : > { %8961 = vmatprep.mubr.msk.bf16.mxu0 %vm10791_vm1, %v10790_v1 }
  0x82   : > { %v877_v56 = vor.u32 %v875_v63, %v873_v54  ;;  %v4567_v54 = vrot.slane %v4565_v45, 3  ;;  %v4574_v63 = vshll.u32 %v11134_v0, 16 }
  0x84   : > { %8402 = vmatmul.mubr.msk.bf16.gmra.mrb[48].mxu1 %vm393_vm2, %v11101_v52  ;;  %v882_v2 = vsel %vm854_vm5, %v877_v56, %v11000_v59  ;;  %v4517_v59 = vshrl.u32 %v11043_v25, 16  ;;  %v957_v56 = vor.u32 %v4544_v19, %v953_v49 }
  0x85   : > { %8405 = vmatprep.mubr.msk.bf16.mxu1 %vm10791_vm1, %v10790_v1 }
  0x88   : > { %8962 = vmatmul.mubr.msk.bf16.gmra.mrb[48].mxu0 %vm393_vm2, %v4100_v3 }
  0x89   : > { %8965 = vmatprep.mubr.msk.bf16.mxu0 %vm10791_vm1, %v10790_v1 }
  0x8c   : > { %8406 = vmatmul.mubr.msk.bf16.gmra.mrb[52].mxu1 %vm393_vm2, %v11112_v55 }
  0x8d   : > { %8409 = vmatprep.mubr.msk.bf16.mxu1 %vm10791_vm1, %v10790_v1 }
  0x90   : > { %8966 = vmatmul.mubr.msk.bf16.gmra.mrb[52].mxu0 %vm393_vm2, %v4102_v8  ;;  %v4535_v8 = vshrl.u32 %v11084_v46, 16 }
  0x91   : > { %8969 = vmatprep.mubr.msk.bf16.mxu0 %vm10791_vm1, %v10790_v1 }
  0x92   : > { %v4537_v15 = vrot.slane %v4535_v8, 2 }
  0x94   : > { %8410 = vmatmul.mubr.msk.bf16.gmra.mrb[56].mxu1 %vm393_vm2, %v11123_v60 }
  0x95   : > { %8413 = vmatprep.mubr.msk.bf16.mxu1 %vm10791_vm1, %v10790_v1 }
  0x98   : > { %8970 = vmatmul.mubr.msk.bf16.gmra.mrb[56].mxu0 %vm393_vm2, %v4104_v11 }
  0x99   : > { %8973 = vmatprep.mubr.msk.bf16.mxu0 %vm10791_vm1, %v10790_v1 }
  0x9c   : > { %8414 = vmatmul.mubr.msk.bf16.gmra.mrb[60].mxu1 %vm393_vm2, %v11134_v0 }
  0x9d   : > { %8417 = vmatprep.mubr.msk.bf16.mxu1 %vm10791_vm1, %v10790_v1 }
  0xa0   : > { %8974 = vmatmul.mubr.msk.bf16.gmra.mrb[60].mxu0 %vm393_vm2, %v4106_v18 }
  0xa1   : > { %8977 = vmatprep.mubr.msk.bf16.mxu0 %vm10791_vm1, %v10790_v1 }
  0xa4   : > { %8418 = vmatmul.mubr.msk.bf16.gmra.mrb[64].mxu1 %vm393_vm2, %v11145_v4 }
  0xa5   : > { %8423 = vmatprep.mubr.msk.bf16.mxu1 %vm10791_vm1, %v10790_v1 }
  0xa8   : > { %8978 = vmatmul.mubr.msk.bf16.gmra.mrb[64].mxu0 %vm393_vm2, %v4108_v35 }
  0xa9   : > { %8983 = vmatprep.mubr.msk.bf16.mxu0 %vm10791_vm1, %v10790_v1 }
  0xac   : > { %8424 = vmatmul.mubr.msk.bf16.vlgmr.msra.gmra.mrb[0].mxu1 %vm393_vm2, %v866_v42  ;;  %v4559_v42 = vor.u32 %v4558_v36, %v4555_v17 }
  0xad   : > { %8492 = vmatpush3.bf16.msra.mxu1 %v1446_v47  ;;  %8427 = vmatprep.mubr.msk.bf16.mxu1 %vm10791_vm1, %v10790_v1  ;;  %v949_v47 = vor.u32 %v4535_v8, %v945_v34 }
  0xae   : > { %8561 = vmatprep.subr.bf16.mxu1 %v10790_v1  ;;  %v4560_v51 = vsel %vm3549_vm4, %v4550_v27, %v4559_v42 }
  0xb0   : > { %8984 = vmatmul.mubr.msk.bf16.vlgmr.msra.gmra.mrb[0].mxu0 %vm393_vm2, %v4470_v57  ;;  %v954_v57 = vsel %vm854_vm5, %v949_v47, %v953_v49 }
  0xb1   : > { %8987 = vmatprep.mubr.msk.bf16.mxu0 %vm10791_vm1, %v10790_v1  ;;  %9052 = vmatpush3.bf16.msra.mxu0 %v5066_v58  ;;  %v4568_v58 = vor.u32 %v4567_v54, %v4564_v53  ;;  %v1286_v54 = vld [vmem:[#allocation2] sm:$0xfe] }
  0xb2   : > { %9121 = vmatprep.subr.bf16.mxu0 %v10790_v1 }
  0xb4   : > { %8428 = vmatmul.mubr.msk.bf16.gmra.mrb[4].mxu1 %vm393_vm2, %v874_v61  ;;  %v4571_v61 = vshrl.u32 %v11134_v0, 16 }
  0xb5   : > { %8431 = vmatprep.mubr.msk.bf16.mxu1 %vm10791_vm1, %v10790_v1 }
  0xb8   : > { %8988 = vmatmul.mubr.msk.bf16.gmra.mrb[4].mxu0 %vm393_vm2, %v11004_v62  ;;  %v4520_v62 = vshll.u32 %v11043_v25, 16 }
  0xb9   : > { %8991 = vmatprep.mubr.msk.bf16.mxu0 %vm10791_vm1, %v10790_v1 }
  0xbc   : > { %8432 = vmatmul.mubr.msk.bf16.gmra.mrb[8].mxu1 %vm393_vm2, %v882_v2  ;;  %v961_v2 = vrot.slane %v4556_v30, 1  ;;  %v817_v30 = vld [vmem:[#allocation2 + $0x88] sm:$0x1] }
  0xbd   : > { %8435 = vmatprep.mubr.msk.bf16.mxu1 %vm10791_vm1, %v10790_v1 }
  0xc0   : > { %8992 = vmatmul.mubr.msk.bf16.gmra.mrb[8].mxu0 %vm393_vm2, %v11014_v6  ;;  %v4519_v6 = vrot.slane %v4517_v59, 2 }
  0xc1   : > { %8995 = vmatprep.mubr.msk.bf16.mxu0 %vm10791_vm1, %v10790_v1 }
  0xc4   : > { %8436 = vmatmul.mubr.msk.bf16.gmra.mrb[12].mxu1 %vm393_vm2, %v11017_v7  ;;  %v4522_v7 = vrot.slane %v4520_v62, 3 }
  0xc5   : > { %8439 = vmatprep.mubr.msk.bf16.mxu1 %vm10791_vm1, %v10790_v1 }
  0xc8   : > { %8996 = vmatmul.mubr.msk.bf16.gmra.mrb[12].mxu0 %vm393_vm2, %v11027_v13  ;;  %v4523_v13 = vor.u32 %v4522_v7, %v4519_v6  ;;  %v4576_v6 = vrot.slane %v4574_v63, 3  ;;  %v962_v7 = vsel %vm854_vm5, %v957_v56, %v961_v2  ;;  %v4906_v56 = vld [vmem:[#allocation2 + $0x10] sm:$0xf8] }
  0xc9   : > { %8999 = vmatprep.mubr.msk.bf16.mxu0 %vm10791_vm1, %v10790_v1 }
  0xcc   : > { %8440 = vmatmul.mubr.msk.bf16.gmra.mrb[16].mxu1 %vm393_vm2, %v11036_v20  ;;  %v4526_v20 = vshrl.u32 %v11066_v39, 16 }
  0xcd   : > { %8443 = vmatprep.mubr.msk.bf16.mxu1 %vm10791_vm1, %v10790_v1 }
  0xce   : > { %v4528_v3 = vrot.slane %v4526_v20, 2 }
  0xd0   : > { %9000 = vmatmul.mubr.msk.bf16.gmra.mrb[16].mxu0 %vm393_vm2, %v11046_v26  ;;  %v4529_v26 = vshll.u32 %v11066_v39, 16 }
  0xd1   : > { %9003 = vmatprep.mubr.msk.bf16.mxu0 %vm10791_vm1, %v10790_v1 }
  0xd2   : > { %v4531_v5 = vrot.slane %v4529_v26, 3 }
  0xd4   : > { %8444 = vmatmul.mubr.msk.bf16.gmra.mrb[20].mxu1 %vm393_vm2, %v11055_v33  ;;  %v4524_v33 = vsel %vm3549_vm4, %v11064_v37, %v4523_v13  ;;  %v925_v37 = vor.u32 %v4508_v31, %v11087_v48  ;;  %v937_v31 = vrot.slane %v4529_v26, 1  ;;  %v4583_v26 = vshll.u32 %v11145_v4, 16 }
  0xd5   : > { %8447 = vmatprep.mubr.msk.bf16.mxu1 %vm10791_vm1, %v10790_v1 }
  0xd6   : > { %v941_v32 = vor.u32 %v4526_v20, %v937_v31  ;;  %v4580_v20 = vshrl.u32 %v11145_v4, 16  ;;  %v4585_v8 = vrot.slane %v4583_v26, 3  ;;  %v985_v23 = vrot.slane %v4583_v26, 1 }
  0xd8   : > { %9004 = vmatmul.mubr.msk.bf16.gmra.mrb[20].mxu0 %vm393_vm2, %v11070_v40  ;;  %v4532_v40 = vor.u32 %v4531_v5, %v4528_v3  ;;  %v946_v41 = vsel %vm854_vm5, %v941_v32, %v945_v34  ;;  %v969_v3 = vrot.slane %v4565_v45, 1  ;;  %v4417_v32 = vld [vmem:[#allocation2 + $0x98] sm:$0x7] }
  0xd9   : > { %9007 = vmatprep.mubr.msk.bf16.mxu0 %vm10791_vm1, %v10790_v1  ;;  %v4607_v36 = vshrl.u32 %v4417_v32, 16 }
  0xda   : > { %v4533_v11 = vsel %vm3549_vm4, %v4523_v13, %v4532_v40 }
  0xdb   : > { %v4609_v47 = vrot.slane %v4607_v36, 2 }
  0xdc   : > { %8448 = vmatmul.mubr.msk.bf16.gmra.mrb[24].mxu1 %vm393_vm2, %v11077_v44  ;;  %v929_v44 = vrot.slane %v4520_v62, 1  ;;  %v4573_v62 = vrot.slane %v4571_v61, 2 }
  0xdd   : > { %8451 = vmatprep.mubr.msk.bf16.mxu1 %vm10791_vm1, %v10790_v1 }
  0xde   : > { %v930_v18 = vsel %vm854_vm5, %v925_v37, %v929_v44  ;;  %v933_v12 = vor.u32 %v4517_v59, %v929_v44  ;;  %v4569_v59 = vsel %vm3549_vm4, %v4559_v42, %v4568_v58  ;;  %v4577_v13 = vor.u32 %v4576_v6, %v4573_v62 }
  0xdf   : > { %v4589_v44 = vshrl.u32 %v11156_v9, 16  ;;  %v989_v42 = vor.u32 %v4580_v20, %v985_v23 }
  0xe0   : > { %9008 = vmatmul.mubr.msk.bf16.gmra.mrb[24].mxu0 %vm393_vm2, %v4524_v33  ;;  %v938_v24 = vsel %vm854_vm5, %v933_v12, %v937_v31  ;;  %v965_v33 = vor.u32 %v4553_v29, %v961_v2  ;;  %v4578_v5 = vsel %vm3549_vm4, %v4568_v58, %v4577_v13  ;;  %v4598_v31 = vshrl.u32 %v11167_v14, 16  ;;  %v11368_v2 = vld [vmem:[#allocation2 + $0x18] sm:$0xff] }
  0xe1   : > { %9011 = vmatprep.mubr.msk.bf16.mxu0 %vm10791_vm1, %v10790_v1  ;;  %v1360_v58 = vrot.slane %v10938_v28, 1  ;;  %v4979_v28 = vrot.slane %v4906_v56, 3  ;;  %v4980_v6 = vrot.slane %v11368_v2, 3 }
  0xe2   : > { %v970_v10 = vsel %vm854_vm5, %v965_v33, %v969_v3  ;;  %v11386_v33 = vld [vmem:[#allocation2 + $0x20] sm:$0xff] }
  0xe4   : > { %8452 = vmatmul.mubr.msk.bf16.gmra.mrb[28].mxu1 %vm393_vm2, %v11094_v50  ;;  %v4541_v50 = vor.u32 %v4540_v16, %v4537_v15  ;;  %v973_v15 = vor.u32 %v4562_v43, %v969_v3  ;;  %v977_v16 = vrot.slane %v4574_v63, 1  ;;  %v7826_v63 = vld [vmem:[%s12778_s1 + $0x6] sm:$0x3] }
  0xe5   : > { %8455 = vmatprep.mubr.msk.bf16.mxu1 %vm10791_vm1, %v10790_v1  ;;  %v1953_v62 = vsel %vm559_vm0, %v7826_v63, 0  ;;  %v11527_v63 = vld [vmem:[#allocation2 + $0x60] sm:$0xff] }
  0xe6   : > { %v4542_v48 = vsel %vm3549_vm4, %v4532_v40, %v4541_v50  ;;  %v4551_v35 = vsel %vm3549_vm4, %v4541_v50, %v4550_v27  ;;  %v4582_v40 = vrot.slane %v4580_v20, 2  ;;  %v4591_v50 = vrot.slane %v4589_v44, 2 }
  0xe7   : > { %v978_v21 = vsel %vm854_vm5, %v973_v15, %v977_v16  ;;  %v981_v22 = vor.u32 %v4571_v61, %v977_v16  ;;  %v4600_v27 = vrot.slane %v4598_v31, 2  ;;  %v4981_v20 = vsel %vm4978_vm7, %v4979_v28, %v4980_v6  ;;  %v11417_v15 = vld [vmem:[#allocation2 + $0x30] sm:$0xff]  ;;  %v11542_v28 = vld [vmem:[#allocation2 + $0x68] sm:$0xff] }
  0xe8   : > { %9012 = vmatmul.mubr.msk.bf16.gmra.mrb[28].mxu0 %vm393_vm2, %v4533_v11  ;;  %v4586_v37 = vor.u32 %v4585_v8, %v4582_v40  ;;  %v4592_v11 = vshll.u32 %v11156_v9, 16  ;;  %v11402_v8 = vld [vmem:[#allocation2 + $0x28] sm:$0xff]  ;;  %v1366_v44 = vrot.slane %v11386_v33, 1  ;;  %v1382_v56 = vrot.slane %v11527_v63, 1 }
  0xe9   : > { %9015 = vmatprep.mubr.msk.bf16.mxu0 %vm10791_vm1, %v10790_v1  ;;  %v986_v34 = vsel %vm854_vm5, %v981_v22, %v985_v23  ;;  %v11447_v23 = vld [vmem:[#allocation2 + $0x40] sm:$0xff] }
  0xea   : > { %v4594_v19 = vrot.slane %v4592_v11, 3 }
  0xec   : > { %8456 = vmatmul.mubr.msk.bf16.gmra.mrb[32].mxu1 %vm393_vm2, %v930_v18  ;;  %v4587_v18 = vsel %vm3549_vm4, %v4577_v13, %v4586_v37  ;;  %v4595_v12 = vor.u32 %v4594_v19, %v4591_v50  ;;  %v1362_v13 = vrot.slane %v10962_v38, 1  ;;  %v1364_v38 = vrot.slane %v11368_v2, 1 }
  0xed   : > { %8459 = vmatprep.mubr.msk.bf16.mxu1 %vm10791_vm1, %v10790_v1  ;;  %v1368_v50 = vrot.slane %v11402_v8, 1 }
  0xee   : > { %v1363_v3 = vsel %vm1358_vm6, %v1360_v58, %v1362_v13  ;;  %v1367_v16 = vsel %vm1358_vm6, %v1364_v38, %v1366_v44 }
  0xf0   : > { %9016 = vmatmul.mubr.msk.bf16.gmra.mrb[32].mxu0 %vm393_vm2, %v4542_v48  ;;  %v4601_v48 = vshll.u32 %v11167_v14, 16 }
  0xf1   : > { %9019 = vmatprep.mubr.msk.bf16.mxu0 %vm10791_vm1, %v10790_v1 }
  0xf2   : > { %v4603_v29 = vrot.slane %v4601_v48, 3  ;;  %v1370_v48 = vrot.slane %v11417_v15, 1 }
  0xf4   : > { %8460 = vmatmul.mubr.msk.bf16.gmra.mrb[36].mxu1 %vm393_vm2, %v938_v24  ;;  %v4596_v24 = vsel %vm3549_vm4, %v4586_v37, %v4595_v12  ;;  %v4604_v17 = vor.u32 %v4603_v29, %v4600_v27  ;;  %v4984_v37 = vrot.slane %v11402_v8, 3  ;;  %v11455_v27 = vrot.slane %v11447_v23, 3 }
  0xf5   : > { %8463 = vmatprep.mubr.msk.bf16.mxu1 %vm10791_vm1, %v10790_v1 }
  0xf6   : > { %v4605_v45 = vsel %vm3549_vm4, %v4595_v12, %v4604_v17  ;;  %v1369_v12 = vsel %vm1358_vm6, %v1366_v44, %v1368_v50 }
  0xf8   : > { %9020 = vmatmul.mubr.msk.bf16.gmra.mrb[36].mxu0 %vm393_vm2, %v4551_v35  ;;  %v991_v35 = vshll.u32 %v817_v30, 16 }
  0xf9   : > { %9023 = vmatprep.mubr.msk.bf16.mxu0 %vm10791_vm1, %v10790_v1 }
  0xfa   : > { %v993_v43 = vrot.slane %v991_v35, 1  ;;  %v1374_v35 = vrot.slane %v11447_v23, 1 }
  0xfc   : > { %8464 = vmatmul.mubr.msk.bf16.gmra.mrb[40].mxu1 %vm393_vm2, %v946_v41  ;;  %v4610_v41 = vshll.u32 %v4417_v32, 16 }
  0xfd   : > { %8467 = vmatprep.mubr.msk.bf16.mxu1 %vm10791_vm1, %v10790_v1 }
  0xfe   : > { %v4612_v49 = vrot.slane %v4610_v41, 3  ;;  %v4994_v41 = vrot.slane %v11066_v39, 3  ;;  %v4996_v39 = vrot.slane %v11084_v46, 3  ;;  %v4998_v46 = vrot.slane %v11101_v52, 3 }
  0xff   : > { %v5000_v52 = vrot.slane %v11112_v55, 3  ;;  %v5002_v55 = vrot.slane %v11123_v60, 3  ;;  %v5004_v60 = vrot.slane %v11134_v0, 3  ;;  %v5006_v0 = vrot.slane %v11145_v4, 3 }
 0x100   : > { %9024 = vmatmul.mubr.msk.bf16.gmra.mrb[40].mxu0 %vm393_vm2, %v4560_v51  ;;  %v994_v51 = vsel %vm854_vm5, %v989_v42, %v993_v43  ;;  %v4613_v53 = vor.u32 %v4612_v49, %v4609_v47  ;;  %v11497_v47 = vld [vmem:[#allocation2 + $0x50] sm:$0xff]  ;;  %v5008_v4 = vrot.slane %v11156_v9, 3  ;;  %v1303_v9 = vld [vmem:[#allocation2 + $0x88] sm:$0x1] }
 0x101   : > { %9027 = vmatprep.mubr.msk.bf16.mxu0 %vm10791_vm1, %v10790_v1  ;;  %v1378_v49 = vrot.slane %v11497_v47, 1 }
 0x102   : > { %v4614_v61 = vsel %vm3549_vm4, %v4604_v17, %v4613_v53 }
 0x104   : > { %8468 = vmatmul.mubr.msk.bf16.gmra.mrb[44].mxu1 %vm393_vm2, %v954_v57  ;;  %v1359_v57 = vrot.slane %v1286_v54, 1  ;;  %v11512_v54 = vld [vmem:[#allocation2 + $0x58] sm:$0xff] }
 0x105   : > { %8471 = vmatprep.mubr.msk.bf16.mxu1 %vm10791_vm1, %v10790_v1 }
 0x108   : > { %9028 = vmatmul.mubr.msk.bf16.gmra.mrb[44].mxu0 %vm393_vm2, %v4569_v59  ;;  %v1361_v59 = vsel %vm1358_vm6, %v1359_v57, %v1360_v58  ;;  %v1380_v57 = vrot.slane %v11512_v54, 1  ;;  %v4999_v58 = vsel %vm4978_vm7, %v4996_v39, %v4998_v46 }
 0x109   : > { %9031 = vmatprep.mubr.msk.bf16.mxu0 %vm10791_vm1, %v10790_v1 }
 0x10c   : > { %8472 = vmatmul.mubr.msk.bf16.gmra.mrb[48].mxu1 %vm393_vm2, %v962_v7  ;;  %v7970_v7 = vld [vmem:[%s12778_s1 + $0x16] sm:$0x3] }
 0x10d   : > { %8475 = vmatprep.mubr.msk.bf16.mxu1 %vm10791_vm1, %v10790_v1  ;;  %v5573_v26 = vsel %vm559_vm0, %v7970_v7, 0  ;;  %v5003_v7 = vsel %vm4978_vm7, %v5000_v52, %v5002_v55 }
 0x110   : > { %9032 = vmatmul.mubr.msk.bf16.gmra.mrb[48].mxu0 %vm393_vm2, %v4578_v5  ;;  %v11393_v5 = vrot.slane %v11386_v33, 3 }
 0x111   : > { %9035 = vmatprep.mubr.msk.bf16.mxu0 %vm10791_vm1, %v10790_v1 }
 0x112   : > { %v4983_v40 = vsel %vm4978_vm7, %v4980_v6, %v11393_v5  ;;  %v11415_v11 = vsel %vm4978_vm7, %v11393_v5, %v4984_v37  ;;  %v1384_v6 = vrot.slane %v11542_v28, 1 }
 0x114   : > { %8476 = vmatmul.mubr.msk.bf16.gmra.mrb[52].mxu1 %vm393_vm2, %v970_v10  ;;  %v1365_v10 = vsel %vm1358_vm6, %v1362_v13, %v1364_v38  ;;  %v11552_v13 = vsel %vm1358_vm6, %v1382_v56, %v1384_v6 }
 0x115   : > { %8479 = vmatprep.mubr.msk.bf16.mxu1 %vm10791_vm1, %v10790_v1 }
 0x118   : > { %9036 = vmatmul.mubr.msk.bf16.gmra.mrb[52].mxu0 %vm393_vm2, %v4587_v18  ;;  %v4986_v18 = vrot.slane %v11417_v15, 3 }
 0x119   : > { %9039 = vmatprep.mubr.msk.bf16.mxu0 %vm10791_vm1, %v10790_v1 }
 0x11a   : > { %v11430_v19 = vsel %vm4978_vm7, %v4984_v37, %v4986_v18  ;;  %v5007_v37 = vsel %vm4978_vm7, %v5004_v60, %v5006_v0 }
 0x11c   : > { %8480 = vmatmul.mubr.msk.bf16.gmra.mrb[56].mxu1 %vm393_vm2, %v978_v21  ;;  %v11432_v21 = vld [vmem:[#allocation2 + $0x38] sm:$0xff] }
 0x11d   : > { %8483 = vmatprep.mubr.msk.bf16.mxu1 %vm10791_vm1, %v10790_v1  ;;  %v4988_v31 = vrot.slane %v11432_v21, 3  ;;  %v1372_v29 = vrot.slane %v11432_v21, 1 }
 0x11f   : > { %v11445_v22 = vsel %vm4978_vm7, %v4986_v18, %v4988_v31  ;;  %v11463_v30 = vsel %vm4978_vm7, %v4988_v31, %v11455_v27  ;;  %v1373_v32 = vsel %vm1358_vm6, %v1370_v48, %v1372_v29  ;;  %v1375_v36 = vsel %vm1358_vm6, %v1372_v29, %v1374_v35 }
 0x120   : > { %9040 = vmatmul.mubr.msk.bf16.gmra.mrb[56].mxu0 %vm393_vm2, %v4596_v24  ;;  %v1371_v24 = vsel %vm1358_vm6, %v1368_v50, %v1370_v48  ;;  %v5009_v50 = vsel %vm4978_vm7, %v5006_v0, %v5008_v4  ;;  %v5010_v31 = vrot.slane %v11167_v14, 3  ;;  %v1685_v48 = vld [vmem:[#allocation2] sm:$0xfe]  ;;  %v1392_v29 = vrot.slane %v1303_v9, 1 }
 0x121   : > { %9043 = vmatprep.mubr.msk.bf16.mxu0 %vm10791_vm1, %v10790_v1 }
 0x124   : > { %8484 = vmatmul.mubr.msk.bf16.gmra.mrb[60].mxu1 %vm393_vm2, %v986_v34  ;;  %v4992_v34 = vrot.slane %v11043_v25, 3  ;;  %v11482_v25 = vld [vmem:[#allocation2 + $0x48] sm:$0xff] }
 0x125   : > { %8487 = vmatprep.mubr.msk.bf16.mxu1 %vm10791_vm1, %v10790_v1  ;;  %v11488_v42 = vrot.slane %v11482_v25, 1 }
 0x126   : > { %v4993_v17 = vsel %vm4978_vm7, %v11455_v27, %v4992_v34  ;;  %v4995_v43 = vsel %vm4978_vm7, %v4992_v34, %v4994_v41  ;;  %v1741_v34 = vshrl.u32 %v1685_v48, 16 }
 0x127   : > { %v11507_v53 = vsel %vm1358_vm6, %v11488_v42, %v1378_v49 }
 0x128   : > { %9044 = vmatmul.mubr.msk.bf16.gmra.mrb[60].mxu0 %vm393_vm2, %v4605_v45  ;;  %v1377_v45 = vsel %vm1358_vm6, %v1374_v35, %v11488_v42  ;;  %v1744_v35 = vshll.u32 %v1685_v48, 16 }
 0x129   : > { %9047 = vmatprep.mubr.msk.bf16.mxu0 %vm10791_vm1, %v10790_v1 }
 0x12c   : > { %8488 = vmatmul.mubr.msk.bf16.gmra.mrb[64].mxu1 %vm393_vm2, %v994_v51  ;;  %v4997_v51 = vsel %vm4978_vm7, %v4994_v41, %v4996_v39  ;;  %v5011_v41 = vsel %vm4978_vm7, %v5008_v4, %v5010_v31  ;;  %v1743_v39 = vrot.slane %v1741_v34, 1  ;;  %v7988_v34 = vld [vmem:[%s12778_s1 + $0x18] sm:$0x3] }
 0x12d   : > { %8493 = vmatprep.mubr.msk.bf16.mxu1 %vm10791_vm1, %v10790_v1 }
 0x130   : > { %9048 = vmatmul.mubr.msk.bf16.gmra.mrb[64].mxu0 %vm393_vm2, %v4614_v61  ;;  %v11522_v61 = vsel %vm1358_vm6, %v1378_v49, %v1380_v57  ;;  %v1746_v49 = vrot.slane %v1744_v35, 2 }
 0x131   : > { %9053 = vmatprep.mubr.msk.bf16.mxu0 %vm10791_vm1, %v10790_v1 }
 0x134   : > { %8494 = vmatmul.mubr.msk.bf16.vlgmr.msra.gmra.mrb[0].mxu1 %vm393_vm2, %v1361_v59  ;;  %v5001_v59 = vsel %vm4978_vm7, %v4998_v46, %v5000_v52  ;;  %v5369_v52 = vshrl.u32 %v11368_v2, 16 }
 0x135   : > { %8562 = vmatpush3.bf16.msra.mxu1 %v1953_v62  ;;  %8497 = vmatprep.mubr.msk.bf16.mxu1 %vm10791_vm1, %v10790_v1  ;;  %v11537_v62 = vsel %vm1358_vm6, %v1380_v57, %v1382_v56  ;;  %v5372_v56 = vshll.u32 %v11368_v2, 16  ;;  %v7844_v2 = vld [vmem:[%s12778_s1 + $0x8] sm:$0x3] }
 0x136   : > { %8631 = vmatprep.subr.bf16.mxu1 %v10790_v1 }
 0x138   : > { %9054 = vmatmul.mubr.msk.bf16.vlgmr.msra.gmra.mrb[0].mxu0 %vm393_vm2, %v4981_v20  ;;  %v11557_v20 = vld [vmem:[#allocation2 + $0x70] sm:$0xff] }
 0x139   : > { %9057 = vmatprep.mubr.msk.bf16.mxu0 %vm10791_vm1, %v10790_v1  ;;  %9122 = vmatpush3.bf16.msra.mxu0 %v5573_v26  ;;  %v1386_v26 = vrot.slane %v11557_v20, 1 }
 0x13a   : > { %9191 = vmatprep.subr.bf16.mxu0 %v10790_v1 }
 0x13b   : > { %v11567_v38 = vsel %vm1358_vm6, %v1384_v6, %v1386_v26  ;;  %v1747_v6 = vor.u32 %v1746_v49, %v1743_v39  ;;  %v5387_v49 = vshrl.u32 %v11402_v8, 16 }
 0x13c   : > { %8498 = vmatmul.mubr.msk.bf16.gmra.mrb[4].mxu1 %vm393_vm2, %v1363_v3  ;;  %v5005_v3 = vsel %vm4978_vm7, %v5002_v55, %v5004_v60 }
 0x13d   : > { %8501 = vmatprep.mubr.msk.bf16.mxu1 %vm10791_vm1, %v10790_v1 }
 0x140   : > { %9058 = vmatmul.mubr.msk.bf16.gmra.mrb[4].mxu0 %vm393_vm2, %v4983_v40  ;;  %v11572_v40 = vld [vmem:[#allocation2 + $0x78] sm:$0xff] }
 0x141   : > { %9061 = vmatprep.mubr.msk.bf16.mxu0 %vm10791_vm1, %v10790_v1 }
 0x144   : > { %8502 = vmatmul.mubr.msk.bf16.gmra.mrb[8].mxu1 %vm393_vm2, %v1365_v10  ;;  %v1388_v10 = vrot.slane %v11572_v40, 1 }
 0x145   : > { %8505 = vmatprep.mubr.msk.bf16.mxu1 %vm10791_vm1, %v10790_v1 }
 0x146   : > { %v11582_v44 = vsel %vm1358_vm6, %v1386_v26, %v1388_v10 }
 0x148   : > { %9062 = vmatmul.mubr.msk.bf16.gmra.mrb[8].mxu0 %vm393_vm2, %v11415_v11 }
 0x149   : > { %9065 = vmatprep.mubr.msk.bf16.mxu0 %vm10791_vm1, %v10790_v1 }
 0x14c   : > { %8506 = vmatmul.mubr.msk.bf16.gmra.mrb[12].mxu1 %vm393_vm2, %v1367_v16  ;;  %v11587_v16 = vld [vmem:[#allocation2 + $0x80] sm:$0xff] }
 0x14d   : > { %8509 = vmatprep.mubr.msk.bf16.mxu1 %vm10791_vm1, %v10790_v1  ;;  %v11594_v18 = vrot.slane %v11587_v16, 1 }
 0x14f   : > { %v1393_v14 = vsel %vm1358_vm6, %v11594_v18, %v1392_v29  ;;  %v5378_v29 = vshrl.u32 %v11386_v33, 16 }
 0x150   : > { %9066 = vmatmul.mubr.msk.bf16.gmra.mrb[12].mxu0 %vm393_vm2, %v11430_v19 }
 0x151   : > { %9069 = vmatprep.mubr.msk.bf16.mxu0 %vm10791_vm1, %v10790_v1 }
 0x154   : > { %8510 = vmatmul.mubr.msk.bf16.gmra.mrb[16].mxu1 %vm393_vm2, %v1369_v12  ;;  %v11600_v12 = vsel %vm1358_vm6, %v1388_v10, %v11594_v18  ;;  %v5371_v10 = vrot.slane %v5369_v52, 3 }
 0x155   : > { %8513 = vmatprep.mubr.msk.bf16.mxu1 %vm10791_vm1, %v10790_v1 }
 0x158   : > { %9070 = vmatmul.mubr.msk.bf16.gmra.mrb[16].mxu0 %vm393_vm2, %v11445_v22 }
 0x159   : > { %9073 = vmatprep.mubr.msk.bf16.mxu0 %vm10791_vm1, %v10790_v1 }
 0x15c   : > { %8514 = vmatmul.mubr.msk.bf16.gmra.mrb[20].mxu1 %vm393_vm2, %v1371_v24  ;;  %v1686_v24 = vld [vmem:[#allocation2 + $0x8] sm:$0xff] }
 0x15d   : > { %8517 = vmatprep.mubr.msk.bf16.mxu1 %vm10791_vm1, %v10790_v1 }
 0x160   : > { %9074 = vmatmul.mubr.msk.bf16.gmra.mrb[20].mxu0 %vm393_vm2, %v11463_v30 }
 0x161   : > { %9077 = vmatprep.mubr.msk.bf16.mxu0 %vm10791_vm1, %v10790_v1 }
 0x164   : > { %8518 = vmatmul.mubr.msk.bf16.gmra.mrb[24].mxu1 %vm393_vm2, %v1373_v32  ;;  %v4923_v32 = vld [vmem:[#allocation2 + $0x98] sm:$0x7] }
 0x165   : > { %8521 = vmatprep.mubr.msk.bf16.mxu1 %vm10791_vm1, %v10790_v1 }
 0x168   : > { %9078 = vmatmul.mubr.msk.bf16.gmra.mrb[24].mxu0 %vm393_vm2, %v4993_v17  ;;  %v1749_v17 = vshrl.u32 %v1686_v24, 16 }
 0x169   : > { %9081 = vmatprep.mubr.msk.bf16.mxu0 %vm10791_vm1, %v10790_v1 }
 0x16c   : > { %8522 = vmatmul.mubr.msk.bf16.gmra.mrb[28].mxu1 %vm393_vm2, %v1375_v36  ;;  %v1752_v36 = vshll.u32 %v1686_v24, 16 }
 0x16d   : > { %8525 = vmatprep.mubr.msk.bf16.mxu1 %vm10791_vm1, %v10790_v1 }
 0x16e   : > { %v1754_v46 = vrot.slane %v1752_v36, 2  ;;  %v5380_v36 = vrot.slane %v5378_v29, 3 }
 0x170   : > { %9082 = vmatmul.mubr.msk.bf16.gmra.mrb[28].mxu0 %vm393_vm2, %v4995_v43  ;;  %v5305_v43 = vld [vmem:[#allocation2 + $0x10] sm:$0xf8] }
 0x171   : > { %9085 = vmatprep.mubr.msk.bf16.mxu0 %vm10791_vm1, %v10790_v1  ;;  %v5361_v57 = vshrl.u32 %v5305_v43, 16 }
 0x174   : > { %8526 = vmatmul.mubr.msk.bf16.gmra.mrb[32].mxu1 %vm393_vm2, %v1377_v45  ;;  %v5012_v45 = vrot.slane %v4923_v32, 3  ;;  %v5381_v32 = vshll.u32 %v11386_v33, 16  ;;  %v5971_v33 = vsel %vm559_vm0, %v7988_v34, 0 }
 0x175   : > { %8529 = vmatprep.mubr.msk.bf16.mxu1 %vm10791_vm1, %v10790_v1 }
 0x176   : > { %v5013_v55 = vsel %vm4978_vm7, %v5010_v31, %v5012_v45  ;;  %v1772_v45 = vrot.slane %v5372_v56, 2 }
 0x178   : > { %9086 = vmatmul.mubr.msk.bf16.gmra.mrb[32].mxu0 %vm393_vm2, %v4997_v51  ;;  %v1751_v51 = vrot.slane %v1749_v17, 1 }
 0x179   : > { %9089 = vmatprep.mubr.msk.bf16.mxu0 %vm10791_vm1, %v10790_v1 }
 0x17c   : > { %8530 = vmatmul.mubr.msk.bf16.gmra.mrb[36].mxu1 %vm393_vm2, %v11507_v53 }
 0x17d   : > { %8533 = vmatprep.mubr.msk.bf16.mxu1 %vm10791_vm1, %v10790_v1 }
 0x180   : > { %9090 = vmatmul.mubr.msk.bf16.gmra.mrb[36].mxu0 %vm393_vm2, %v4999_v58  ;;  %v5364_v58 = vshll.u32 %v5305_v43, 16 }
 0x181   : > { %9093 = vmatprep.mubr.msk.bf16.mxu0 %vm10791_vm1, %v10790_v1 }
 0x182   : > { %v5366_v0 = vrot.slane %v5364_v58, 4  ;;  %v5389_v58 = vrot.slane %v5387_v49, 3 }
 0x184   : > { %8534 = vmatmul.mubr.msk.bf16.gmra.mrb[40].mxu1 %vm393_vm2, %v11522_v61 }
 0x185   : > { %8537 = vmatprep.mubr.msk.bf16.mxu1 %vm10791_vm1, %v10790_v1 }
 0x188   : > { %9094 = vmatmul.mubr.msk.bf16.gmra.mrb[40].mxu0 %vm393_vm2, %v5001_v59  ;;  %v11617_v59 = vld [vmem:[#allocation2 + $0x10] sm:$0xff] }
 0x189   : > { %9097 = vmatprep.mubr.msk.bf16.mxu0 %vm10791_vm1, %v10790_v1  ;;  %v1758_v60 = vshrl.u32 %v11617_v59, 16  ;;  %v1761_v26 = vshll.u32 %v11617_v59, 16 }
 0x18b   : > { %v1760_v9 = vrot.slane %v1758_v60, 1  ;;  %v1763_v31 = vrot.slane %v1761_v26, 2  ;;  %v5399_v60 = vshll.u32 %v11417_v15, 16 }
 0x18c   : > { %8538 = vmatmul.mubr.msk.bf16.gmra.mrb[44].mxu1 %vm393_vm2, %v11537_v62 }
 0x18d   : > { %8541 = vmatprep.mubr.msk.bf16.mxu1 %vm10791_vm1, %v10790_v1  ;;  %v11641_v35 = vor.u32 %v1763_v31, %v1760_v9  ;;  %v5408_v9 = vshll.u32 %v11432_v21, 16 }
 0x190   : > { %9098 = vmatmul.mubr.msk.bf16.gmra.mrb[44].mxu0 %vm393_vm2, %v5003_v7  ;;  %v1755_v7 = vor.u32 %v1754_v46, %v1751_v51  ;;  %v5390_v51 = vshll.u32 %v11402_v8, 16 }
 0x191   : > { %9101 = vmatprep.mubr.msk.bf16.mxu0 %vm10791_vm1, %v10790_v1 }
 0x192   : > { %v1756_v4 = vsel %vm1739_vm8, %v1747_v6, %v1755_v7  ;;  %v1765_v43 = vsel %vm1739_vm8, %v1755_v7, %v11641_v35  ;;  %v1781_v6 = vrot.slane %v5381_v32, 2  ;;  %v5396_v7 = vshrl.u32 %v11417_v15, 16 }
 0x194   : > { %8542 = vmatmul.mubr.msk.bf16.gmra.mrb[48].mxu1 %vm393_vm2, %v11552_v13  ;;  %v1796_v34 = vrot.slane %v5396_v7, 1 }
 0x195   : > { %8545 = vmatprep.mubr.msk.bf16.mxu1 %vm10791_vm1, %v10790_v1 }
 0x198   : > { %9102 = vmatmul.mubr.msk.bf16.gmra.mrb[48].mxu0 %vm393_vm2, %v5005_v3  ;;  %v5363_v3 = vrot.slane %v5361_v57, 3 }
 0x199   : > { %9105 = vmatprep.mubr.msk.bf16.mxu0 %vm10791_vm1, %v10790_v1 }
 0x19a   : > { %v5367_v48 = vor.u32 %v5366_v0, %v5363_v3  ;;  %v5398_v3 = vrot.slane %v5396_v7, 3  ;;  %v5401_v0 = vrot.slane %v5399_v60, 4 }
 0x19c   : > { %8546 = vmatmul.mubr.msk.bf16.gmra.mrb[52].mxu1 %vm393_vm2, %v11567_v38  ;;  %v5402_v15 = vor.u32 %v5401_v0, %v5398_v3 }
 0x19d   : > { %8549 = vmatprep.mubr.msk.bf16.mxu1 %vm10791_vm1, %v10790_v1 }
 0x1a0   : > { %9106 = vmatmul.mubr.msk.bf16.gmra.mrb[52].mxu0 %vm393_vm2, %v5007_v37  ;;  %v5374_v37 = vrot.slane %v5372_v56, 4 }
 0x1a1   : > { %9109 = vmatprep.mubr.msk.bf16.mxu0 %vm10791_vm1, %v10790_v1 }
 0x1a2   : > { %v5375_v24 = vor.u32 %v5374_v37, %v5371_v10  ;;  %v1787_v37 = vrot.slane %v5387_v49, 1 }
 0x1a4   : > { %8550 = vmatmul.mubr.msk.bf16.gmra.mrb[56].mxu1 %vm393_vm2, %v11582_v44  ;;  %v5376_v17 = vsel %vm5359_vm9, %v5367_v48, %v5375_v24 }
 0x1a5   : > { %8553 = vmatprep.mubr.msk.bf16.mxu1 %vm10791_vm1, %v10790_v1 }
 0x1a8   : > { %9110 = vmatmul.mubr.msk.bf16.gmra.mrb[56].mxu0 %vm393_vm2, %v5009_v50  ;;  %v2351_v50 = vsel %vm559_vm0, %v7844_v2, 0 }
 0x1a9   : > { %9113 = vmatprep.mubr.msk.bf16.mxu0 %vm10791_vm1, %v10790_v1 }
 0x1ac   : > { %8554 = vmatmul.mubr.msk.bf16.gmra.mrb[60].mxu1 %vm393_vm2, %v11600_v12 }
 0x1ad   : > { %8557 = vmatprep.mubr.msk.bf16.mxu1 %vm10791_vm1, %v10790_v1 }
 0x1b0   : > { %9114 = vmatmul.mubr.msk.bf16.gmra.mrb[60].mxu0 %vm393_vm2, %v5011_v41  ;;  %v5383_v41 = vrot.slane %v5381_v32, 4 }
 0x1b1   : > { %9117 = vmatprep.mubr.msk.bf16.mxu0 %vm10791_vm1, %v10790_v1 }
 0x1b2   : > { %v5384_v39 = vor.u32 %v5383_v41, %v5380_v36  ;;  %v5414_v36 = vshrl.u32 %v11447_v23, 16  ;;  %v5417_v41 = vshll.u32 %v11447_v23, 16 }
 0x1b4   : > { %8558 = vmatmul.mubr.msk.bf16.gmra.mrb[64].mxu1 %vm393_vm2, %v1393_v14  ;;  %v1769_v14 = vrot.slane %v5369_v52, 1  ;;  %v5385_v57 = vsel %vm5359_vm9, %v5375_v24, %v5384_v39  ;;  %v5392_v52 = vrot.slane %v5390_v51, 4  ;;  %v1817_v7 = vrot.slane %v5417_v41, 2 }
 0x1b5   : > { %8563 = vmatprep.mubr.msk.bf16.mxu1 %vm10791_vm1, %v10790_v1 }
 0x1b6   : > { %v1773_v46 = vor.u32 %v1772_v45, %v1769_v14  ;;  %v5393_v8 = vor.u32 %v5392_v52, %v5389_v58  ;;  %v5416_v14 = vrot.slane %v5414_v36, 3  ;;  %v5419_v45 = vrot.slane %v5417_v41, 4 }
 0x1b8   : > { %9118 = vmatmul.mubr.msk.bf16.gmra.mrb[64].mxu0 %vm393_vm2, %v5013_v55  ;;  %v1774_v56 = vsel %vm1739_vm8, %v11641_v35, %v1773_v46  ;;  %v1778_v55 = vrot.slane %v5378_v29, 1  ;;  %v5394_v2 = vsel %vm5359_vm9, %v5384_v39, %v5393_v8  ;;  %v5403_v48 = vsel %vm5359_vm9, %v5393_v8, %v5402_v15 }
 0x1b9   : > { %9123 = vmatprep.mubr.msk.bf16.mxu0 %vm10791_vm1, %v10790_v1  ;;  %v5410_v29 = vrot.slane %v5408_v9, 4  ;;  %v5420_v23 = vor.u32 %v5419_v45, %v5416_v14  ;;  %v1814_v8 = vrot.slane %v5414_v36, 1 }
 0x1ba   : > { %v1782_v26 = vor.u32 %v1781_v6, %v1778_v55 }
 0x1bb   : > { %v1818_v3 = vor.u32 %v1817_v7, %v1814_v8 }
 0x1bc   : > { %8564 = vmatmul.mubr.msk.bf16.vlgmr.msra.gmra.mrb[0].mxu1 %vm393_vm2, %v1756_v4  ;;  %v1783_v10 = vsel %vm1739_vm8, %v1773_v46, %v1782_v26  ;;  %v1790_v4 = vrot.slane %v5390_v51, 2  ;;  %v1808_v51 = vrot.slane %v5408_v9, 2  ;;  %v5423_v46 = vshrl.u32 %v11482_v25, 16 }
 0x1bd   : > { %8632 = vmatpush3.bf16.msra.mxu1 %v2351_v50  ;;  %8567 = vmatprep.mubr.msk.bf16.mxu1 %vm10791_vm1, %v10790_v1  ;;  %v5405_v50 = vshrl.u32 %v11432_v21, 16 }
 0x1be   : > { %8701 = vmatprep.subr.bf16.mxu1 %v10790_v1  ;;  %v1791_v31 = vor.u32 %v1790_v4, %v1787_v37 }
 0x1bf   : > { %v5407_v24 = vrot.slane %v5405_v50, 3  ;;  %v1805_v49 = vrot.slane %v5405_v50, 1 }
 0x1c0   : > { %9124 = vmatmul.mubr.msk.bf16.vlgmr.msra.gmra.mrb[0].mxu0 %vm393_vm2, %v5376_v17  ;;  %v1792_v32 = vsel %vm1739_vm8, %v1782_v26, %v1791_v31  ;;  %v1799_v17 = vrot.slane %v5399_v60, 2  ;;  %v5432_v26 = vshrl.u32 %v11497_v47, 16 }
 0x1c1   : > { %9127 = vmatprep.mubr.msk.bf16.mxu0 %vm10791_vm1, %v10790_v1  ;;  %9192 = vmatpush3.bf16.msra.mxu0 %v5971_v33  ;;  %v5411_v21 = vor.u32 %v5410_v29, %v5407_v24  ;;  %v1809_v58 = vor.u32 %v1808_v51, %v1805_v49 }
 0x1c2   : > { %9261 = vmatprep.subr.bf16.mxu0 %v10790_v1  ;;  %v1800_v33 = vor.u32 %v1799_v17, %v1796_v34 }
 0x1c3   : > { %v5421_v52 = vsel %vm5359_vm9, %v5411_v21, %v5420_v23  ;;  %v1819_v4 = vsel %vm1739_vm8, %v1809_v58, %v1818_v3 }
 0x1c4   : > { %8568 = vmatmul.mubr.msk.bf16.gmra.mrb[4].mxu1 %vm393_vm2, %v1765_v43  ;;  %v5412_v43 = vsel %vm5359_vm9, %v5402_v15, %v5411_v21  ;;  %v1801_v39 = vsel %vm1739_vm8, %v1791_v31, %v1800_v33  ;;  %v1810_v6 = vsel %vm1739_vm8, %v1800_v33, %v1809_v58  ;;  %v1823_v15 = vrot.slane %v5423_v46, 1 }
 0x1c5   : > { %8571 = vmatprep.mubr.msk.bf16.mxu1 %vm10791_vm1, %v10790_v1  ;;  %v5441_v31 = vshrl.u32 %v11512_v54, 16  ;;  %v1832_v21 = vrot.slane %v5432_v26, 1  ;;  %v5450_v33 = vshrl.u32 %v11527_v63, 16  ;;  %v5459_v58 = vshrl.u32 %v11542_v28, 16 }
 0x1c8   : > { %9128 = vmatmul.mubr.msk.bf16.gmra.mrb[4].mxu0 %vm393_vm2, %v5385_v57  ;;  %v5426_v57 = vshll.u32 %v11482_v25, 16 }
 0x1c9   : > { %9131 = vmatprep.mubr.msk.bf16.mxu0 %vm10791_vm1, %v10790_v1 }
 0x1ca   : > { %v5428_v55 = vrot.slane %v5426_v57, 4  ;;  %v1826_v50 = vrot.slane %v5426_v57, 2 }
 0x1cc   : > { %8572 = vmatmul.mubr.msk.bf16.gmra.mrb[8].mxu1 %vm393_vm2, %v1774_v56  ;;  %v5425_v56 = vrot.slane %v5423_v46, 3  ;;  %v1827_v24 = vor.u32 %v1826_v50, %v1823_v15 }
 0x1cd   : > { %8575 = vmatprep.mubr.msk.bf16.mxu1 %vm10791_vm1, %v10790_v1 }
 0x1ce   : > { %v5429_v60 = vor.u32 %v5428_v55, %v5425_v56  ;;  %v1828_v17 = vsel %vm1739_vm8, %v1818_v3, %v1827_v24  ;;  %v5468_v3 = vshrl.u32 %v11557_v20, 16 }
 0x1d0   : > { %9132 = vmatmul.mubr.msk.bf16.gmra.mrb[8].mxu0 %vm393_vm2, %v5394_v2  ;;  %v5435_v2 = vshll.u32 %v11497_v47, 16  ;;  %v5430_v0 = vsel %vm5359_vm9, %v5420_v23, %v5429_v60  ;;  %v1841_v23 = vrot.slane %v5441_v31, 1 }
 0x1d1   : > { %9135 = vmatprep.mubr.msk.bf16.mxu0 %vm10791_vm1, %v10790_v1 }
 0x1d2   : > { %v5437_v37 = vrot.slane %v5435_v2, 4  ;;  %v1835_v36 = vrot.slane %v5435_v2, 2 }
 0x1d4   : > { %8576 = vmatmul.mubr.msk.bf16.gmra.mrb[12].mxu1 %vm393_vm2, %v1783_v10  ;;  %v5434_v10 = vrot.slane %v5432_v26, 3  ;;  %v1836_v14 = vor.u32 %v1835_v36, %v1832_v21 }
 0x1d5   : > { %8579 = vmatprep.mubr.msk.bf16.mxu1 %vm10791_vm1, %v10790_v1 }
 0x1d6   : > { %v5438_v9 = vor.u32 %v5437_v37, %v5434_v10  ;;  %v1837_v51 = vsel %vm1739_vm8, %v1827_v24, %v1836_v14  ;;  %v5477_v24 = vshrl.u32 %v11572_v40, 16 }
 0x1d8   : > { %9136 = vmatmul.mubr.msk.bf16.gmra.mrb[12].mxu0 %vm393_vm2, %v5403_v48  ;;  %v5444_v48 = vshll.u32 %v11512_v54, 16  ;;  %v5439_v29 = vsel %vm5359_vm9, %v5429_v60, %v5438_v9  ;;  %v1850_v60 = vrot.slane %v5450_v33, 1 }
 0x1d9   : > { %9139 = vmatprep.mubr.msk.bf16.mxu0 %vm10791_vm1, %v10790_v1 }
 0x1da   : > { %v5446_v34 = vrot.slane %v5444_v48, 4  ;;  %v1844_v46 = vrot.slane %v5444_v48, 2 }
 0x1dc   : > { %8580 = vmatmul.mubr.msk.bf16.gmra.mrb[16].mxu1 %vm393_vm2, %v1792_v32  ;;  %v5443_v32 = vrot.slane %v5441_v31, 3  ;;  %v1845_v56 = vor.u32 %v1844_v46, %v1841_v23  ;;  %v11769_v46 = vld [vmem:[#allocation2 + $0x88] sm:$0xff] }
 0x1dd   : > { %8583 = vmatprep.mubr.msk.bf16.mxu1 %vm10791_vm1, %v10790_v1 }
 0x1de   : > { %v5447_v41 = vor.u32 %v5446_v34, %v5443_v32  ;;  %v1846_v7 = vsel %vm1739_vm8, %v1836_v14, %v1845_v56  ;;  %v5486_v14 = vshrl.u32 %v11587_v16, 16 }
 0x1e0   : > { %9140 = vmatmul.mubr.msk.bf16.gmra.mrb[16].mxu0 %vm393_vm2, %v5412_v43  ;;  %v5453_v43 = vshll.u32 %v11527_v63, 16  ;;  %v5448_v45 = vsel %vm5359_vm9, %v5438_v9, %v5447_v41  ;;  %v1859_v9 = vrot.slane %v5459_v58, 1 }
 0x1e1   : > { %9143 = vmatprep.mubr.msk.bf16.mxu0 %vm10791_vm1, %v10790_v1 }
 0x1e2   : > { %v5455_v49 = vrot.slane %v5453_v43, 4  ;;  %v1853_v26 = vrot.slane %v5453_v43, 2 }
 0x1e4   : > { %8584 = vmatmul.mubr.msk.bf16.gmra.mrb[20].mxu1 %vm393_vm2, %v1801_v39  ;;  %v5452_v39 = vrot.slane %v5450_v33, 3  ;;  %v1854_v10 = vor.u32 %v1853_v26, %v1850_v60 }
 0x1e5   : > { %8587 = vmatprep.mubr.msk.bf16.mxu1 %vm10791_vm1, %v10790_v1 }
 0x1e6   : > { %v5456_v57 = vor.u32 %v5455_v49, %v5452_v39  ;;  %v1855_v50 = vsel %vm1739_vm8, %v1845_v56, %v1854_v10 }
 0x1e8   : > { %9144 = vmatmul.mubr.msk.bf16.gmra.mrb[20].mxu0 %vm393_vm2, %v5421_v52  ;;  %v5462_v52 = vshll.u32 %v11542_v28, 16  ;;  %v5457_v55 = vsel %vm5359_vm9, %v5447_v41, %v5456_v57  ;;  %v1868_v41 = vrot.slane %v5468_v3, 1 }
 0x1e9   : > { %9147 = vmatprep.mubr.msk.bf16.mxu0 %vm10791_vm1, %v10790_v1 }
 0x1ea   : > { %v5464_v8 = vrot.slane %v5462_v52, 4  ;;  %v1862_v31 = vrot.slane %v5462_v52, 2 }
 0x1ec   : > { %8588 = vmatmul.mubr.msk.bf16.gmra.mrb[24].mxu1 %vm393_vm2, %v1810_v6  ;;  %v5461_v6 = vrot.slane %v5459_v58, 3  ;;  %v1863_v32 = vor.u32 %v1862_v31, %v1859_v9  ;;  %v1877_v58 = vrot.slane %v5477_v24, 1 }
 0x1ed   : > { %8591 = vmatprep.mubr.msk.bf16.mxu1 %vm10791_vm1, %v10790_v1 }
 0x1ee   : > { %v5465_v2 = vor.u32 %v5464_v8, %v5461_v6  ;;  %v1864_v36 = vsel %vm1739_vm8, %v1854_v10, %v1863_v32  ;;  %v5498_v6 = vshll.u32 %v11769_v46, 16 }
 0x1f0   : > { %9148 = vmatmul.mubr.msk.bf16.gmra.mrb[24].mxu0 %vm393_vm2, %v5430_v0  ;;  %v5471_v0 = vshll.u32 %v11557_v20, 16  ;;  %v5466_v37 = vsel %vm5359_vm9, %v5456_v57, %v5465_v2  ;;  %v5500_v26 = vrot.slane %v5498_v6, 4  ;;  %v7862_v6 = vld [vmem:[%s12778_s1 + $0xa] sm:$0x3] }
 0x1f1   : > { %9151 = vmatprep.mubr.msk.bf16.mxu0 %vm10791_vm1, %v10790_v1 }
 0x1f2   : > { %v5473_v15 = vrot.slane %v5471_v0, 4  ;;  %v1871_v33 = vrot.slane %v5471_v0, 2  ;;  %v1886_v0 = vrot.slane %v5486_v14, 1 }
 0x1f4   : > { %8592 = vmatmul.mubr.msk.bf16.gmra.mrb[28].mxu1 %vm393_vm2, %v1819_v4  ;;  %v5470_v4 = vrot.slane %v5468_v3, 3  ;;  %v1872_v39 = vor.u32 %v1871_v33, %v1868_v41 }
 0x1f5   : > { %8595 = vmatprep.mubr.msk.bf16.mxu1 %vm10791_vm1, %v10790_v1 }
 0x1f6   : > { %v5474_v48 = vor.u32 %v5473_v15, %v5470_v4  ;;  %v1873_v57 = vsel %vm1739_vm8, %v1863_v32, %v1872_v39 }
 0x1f8   : > { %9152 = vmatmul.mubr.msk.bf16.gmra.mrb[28].mxu0 %vm393_vm2, %v5439_v29  ;;  %v5480_v29 = vshll.u32 %v11572_v40, 16  ;;  %v5475_v34 = vsel %vm5359_vm9, %v5465_v2, %v5474_v48  ;;  %v11781_v2 = vld [vmem:[#allocation2 + $0x90] sm:$0xff] }
 0x1f9   : > { %9155 = vmatprep.mubr.msk.bf16.mxu0 %vm10791_vm1, %v10790_v1  ;;  %v5504_v4 = vshrl.u32 %v11781_v2, 16  ;;  %v5507_v15 = vshll.u32 %v11781_v2, 16 }
 0x1fa   : > { %v5482_v21 = vrot.slane %v5480_v29, 4  ;;  %v1880_v52 = vrot.slane %v5480_v29, 2 }
 0x1fb   : > { %v5506_v29 = vrot.slane %v5504_v4, 3  ;;  %v5509_v32 = vrot.slane %v5507_v15, 4 }
 0x1fc   : > { %8596 = vmatmul.mubr.msk.bf16.gmra.mrb[32].mxu1 %vm393_vm2, %v1828_v17  ;;  %v5479_v17 = vrot.slane %v5477_v24, 3  ;;  %v1881_v8 = vor.u32 %v1880_v52, %v1877_v58  ;;  %v10709_v58 = vld [vmem:[%s10891_s7 + $0xa0] sm:$0xff]  }
 0x1fd   : > { %8599 = vmatprep.mubr.msk.bf16.mxu1 %vm10791_vm1, %v10790_v1  ;;  %v11800_v41 = vor.u32 %v5509_v32, %v5506_v29  ;;  %414 = vst.msk [vmem:[#allocation2 + $0xa0] sm:$0xff] %vm393_vm2, %v10709_v58 }
 0x1fe   : > { %v5483_v43 = vor.u32 %v5482_v21, %v5479_v17  ;;  %v1882_v3 = vsel %vm1739_vm8, %v1872_v39, %v1881_v8 }
 0x200   : > { %9156 = vmatmul.mubr.msk.bf16.gmra.mrb[32].mxu0 %vm393_vm2, %v5448_v45  ;;  %v5489_v45 = vshll.u32 %v11587_v16, 16  ;;  %v5484_v49 = vsel %vm5359_vm9, %v5474_v48, %v5483_v43 }
 0x201   : > { %9159 = vmatprep.mubr.msk.bf16.mxu0 %vm10791_vm1, %v10790_v1 }
 0x202   : > { %v5491_v23 = vrot.slane %v5489_v45, 4  ;;  %v1889_v10 = vrot.slane %v5489_v45, 2 }
 0x204   : > { %8600 = vmatmul.mubr.msk.bf16.gmra.mrb[36].mxu1 %vm393_vm2, %v1837_v51  ;;  %v5488_v51 = vrot.slane %v5486_v14, 3  ;;  %v1890_v9 = vor.u32 %v1889_v10, %v1886_v0 }
 0x205   : > { %8603 = vmatprep.mubr.msk.bf16.mxu1 %vm10791_vm1, %v10790_v1 }
 0x206   : > { %v5492_v56 = vor.u32 %v5491_v23, %v5488_v51  ;;  %v1891_v17 = vsel %vm1739_vm8, %v1881_v8, %v1890_v9  ;;  %v5812_v8 = vld [vmem:[#allocation2 + $0x18] sm:$0xf8] }
 0x208   : > { %9160 = vmatmul.mubr.msk.bf16.gmra.mrb[36].mxu0 %vm393_vm2, %v5457_v55  ;;  %v5495_v55 = vshrl.u32 %v11769_v46, 16 }
 0x209   : > { %9163 = vmatprep.mubr.msk.bf16.mxu0 %vm10791_vm1, %v10790_v1 }
 0x20a   : > { %v5497_v60 = vrot.slane %v5495_v55, 3 }
 0x20c   : > { %8604 = vmatmul.mubr.msk.bf16.gmra.mrb[40].mxu1 %vm393_vm2, %v1846_v7  ;;  %v5493_v7 = vsel %vm5359_vm9, %v5483_v43, %v5492_v56 }
 0x20d   : > { %8607 = vmatprep.mubr.msk.bf16.mxu1 %vm10791_vm1, %v10790_v1 }
 0x210   : > { %9164 = vmatmul.mubr.msk.bf16.gmra.mrb[40].mxu0 %vm393_vm2, %v5466_v37  ;;  %v11787_v37 = vor.u32 %v5500_v26, %v5497_v60  ;;  %v2857_v60 = vsel %vm559_vm0, %v7862_v6, 0  ;;  %v11831_v26 = vld [vmem:[#allocation2 + $0x18] sm:$0xff] }
 0x211   : > { %9167 = vmatprep.mubr.msk.bf16.mxu0 %vm10791_vm1, %v10790_v1  ;;  %v2267_v0 = vrot.slane %v11831_v26, 1  ;;  %v6210_v6 = vld [vmem:[#allocation2 + $0x18] sm:$0xf8] }
 0x212   : > { %v5502_v24 = vsel %vm5359_vm9, %v5492_v56, %v11787_v37  ;;  %v11808_v45 = vsel %vm5359_vm9, %v11787_v37, %v11800_v41  ;;  %v2265_v56 = vrot.slane %v11617_v59, 1  ;;  %v5884_v59 = vrot.slane %v5812_v8, 3 }
 0x214   : > { %8608 = vmatmul.mubr.msk.bf16.gmra.mrb[44].mxu1 %vm393_vm2, %v1855_v50  ;;  %v1702_v50 = vld [vmem:[#allocation2 + $0x88] sm:$0x3]  ;;  %v5886_v10 = vsel %vm4978_vm7, %v5884_v59, %v11393_v5  ;;  %v2268_v15 = vsel %vm1358_vm6, %v2265_v56, %v2267_v0  ;;  %v6265_v59 = vshrl.u32 %v6210_v6, 16 }
 0x215   : > { %8611 = vmatprep.mubr.msk.bf16.mxu1 %vm10791_vm1, %v10790_v1  ;;  %v1893_v31 = vshrl.u32 %v1702_v50, 16  ;;  %v1896_v48 = vshll.u32 %v1702_v50, 16  ;;  %v11848_v50 = vld [vmem:[#allocation2 + $0x20] sm:$0xff] }
 0x216   : > { %v2269_v5 = vrot.slane %v11848_v50, 1 }
 0x217   : > { %v1895_v21 = vrot.slane %v1893_v31, 1  ;;  %v11860_v31 = vld [vmem:[#allocation2 + $0x28] sm:$0xff] }
 0x218   : > { %9168 = vmatmul.mubr.msk.bf16.gmra.mrb[44].mxu0 %vm393_vm2, %v5475_v34  ;;  %v5322_v34 = vld [vmem:[#allocation2 + $0x98] sm:$0xf] }
 0x219   : > { %9171 = vmatprep.mubr.msk.bf16.mxu0 %vm10791_vm1, %v10790_v1  ;;  %v5513_v33 = vshrl.u32 %v5322_v34, 16  ;;  %v5516_v43 = vshll.u32 %v5322_v34, 16 }
 0x21b   : > { %v5515_v39 = vrot.slane %v5513_v33, 3 }
 0x21c   : > { %8612 = vmatmul.mubr.msk.bf16.gmra.mrb[48].mxu1 %vm393_vm2, %v1864_v36  ;;  %v1898_v36 = vrot.slane %v1896_v48, 2  ;;  %v2271_v48 = vrot.slane %v11860_v31, 1 }
 0x21d   : > { %8615 = vmatprep.mubr.msk.bf16.mxu1 %vm10791_vm1, %v10790_v1 }
 0x21e   : > { %v1899_v14 = vor.u32 %v1898_v36, %v1895_v21  ;;  %v11894_v21 = vld [vmem:[#allocation2 + $0x40] sm:$0xff] }
 0x21f   : > { %v2277_v36 = vrot.slane %v11894_v21, 1 }
 0x220   : > { %9172 = vmatmul.mubr.msk.bf16.gmra.mrb[48].mxu0 %vm393_vm2, %v5484_v49  ;;  %v5518_v49 = vrot.slane %v5516_v43, 4  ;;  %v1900_v51 = vsel %vm1739_vm8, %v1890_v9, %v1899_v14  ;;  %v2270_v9 = vsel %vm1358_vm6, %v2267_v0, %v2269_v5  ;;  %v5899_v14 = vrot.slane %v11512_v54, 3 }
 0x221   : > { %9175 = vmatprep.mubr.msk.bf16.mxu0 %vm10791_vm1, %v10790_v1  ;;  %v5903_v54 = vrot.slane %v11542_v28, 3  ;;  %v5907_v28 = vrot.slane %v11572_v40, 3  ;;  %v5911_v40 = vrot.slane %v11769_v46, 3  ;;  %v6273_v0 = vshrl.u32 %v11848_v50, 16 }
 0x222   : > { %v5519_v23 = vor.u32 %v5518_v49, %v5515_v39  ;;  %v5901_v39 = vrot.slane %v11527_v63, 3  ;;  %v5905_v63 = vrot.slane %v11557_v20, 3  ;;  %v5909_v20 = vrot.slane %v11587_v16, 3 }
 0x223   : > { %v5913_v16 = vrot.slane %v11781_v2, 3 }
 0x224   : > { %8616 = vmatmul.mubr.msk.bf16.gmra.mrb[52].mxu1 %vm393_vm2, %v1873_v57  ;;  %v2192_v57 = vld [vmem:[#allocation2 + $0x8] sm:$0xfe]  ;;  %v5520_v55 = vsel %vm5359_vm9, %v11800_v41, %v5519_v23 }
 0x225   : > { %8619 = vmatprep.mubr.msk.bf16.mxu1 %vm10791_vm1, %v10790_v1  ;;  %v2264_v52 = vrot.slane %v2192_v57, 1  ;;  %v5914_v49 = vsel %vm4978_vm7, %v5911_v40, %v5913_v16  ;;  %v2590_v57 = vld [vmem:[#allocation2 + $0x8] sm:$0xfe] }
 0x226   : > { %v2645_v58 = vshrl.u32 %v2590_v57, 16 }
 0x228   : > { %9176 = vmatmul.mubr.msk.bf16.gmra.mrb[52].mxu0 %vm393_vm2, %v5493_v7  ;;  %v2266_v7 = vsel %vm1358_vm6, %v2264_v52, %v2265_v56  ;;  %v2648_v52 = vshll.u32 %v2590_v57, 16 }
 0x229   : > { %9179 = vmatprep.mubr.msk.bf16.mxu0 %vm10791_vm1, %v10790_v1 }
 0x22c   : > { %8620 = vmatmul.mubr.msk.bf16.gmra.mrb[56].mxu1 %vm393_vm2, %v1882_v3  ;;  %v8006_v3 = vld [vmem:[%s12778_s1 + $0x1a] sm:$0x3] }
 0x22d   : > { %8623 = vmatprep.mubr.msk.bf16.mxu1 %vm10791_vm1, %v10790_v1  ;;  %v6477_v4 = vsel %vm559_vm0, %v8006_v3, 0  ;;  %v6268_v3 = vshll.u32 %v6210_v6, 16 }
 0x230   : > { %9180 = vmatmul.mubr.msk.bf16.gmra.mrb[56].mxu0 %vm393_vm2, %v5502_v24  ;;  %v2272_v24 = vsel %vm1358_vm6, %v2269_v5, %v2271_v48  ;;  %v2662_v5 = vshrl.u32 %v11831_v26, 16 }
 0x231   : > { %9183 = vmatprep.mubr.msk.bf16.mxu0 %vm10791_vm1, %v10790_v1 }
 0x234   : > { %8624 = vmatmul.mubr.msk.bf16.gmra.mrb[60].mxu1 %vm393_vm2, %v1891_v17 }
 0x235   : > { %8627 = vmatprep.mubr.msk.bf16.mxu1 %vm10791_vm1, %v10790_v1 }
 0x238   : > { %9184 = vmatmul.mubr.msk.bf16.gmra.mrb[60].mxu0 %vm393_vm2, %v11808_v45 }
 0x239   : > { %9187 = vmatprep.mubr.msk.bf16.mxu0 %vm10791_vm1, %v10790_v1 }
 0x23c   : > { %8628 = vmatmul.mubr.msk.bf16.gmra.mrb[64].mxu1 %vm393_vm2, %v1900_v51  ;;  %v11985_v51 = vld [vmem:[#allocation2 + $0x98] sm:$0xff] }
 0x23d   : > { %8633 = vmatprep.mubr.msk.bf16.mxu1 %vm10791_vm1, %v10790_v1  ;;  %v5915_v2 = vrot.slane %v11985_v51, 3 }
 0x23f   : > { %v5916_v56 = vsel %vm4978_vm7, %v5913_v16, %v5915_v2 }
 0x240   : > { %9188 = vmatmul.mubr.msk.bf16.gmra.mrb[64].mxu0 %vm393_vm2, %v5520_v55  ;;  %v5829_v55 = vld [vmem:[#allocation2 + $0xa0] sm:$0x7] }
 0x241   : > { %9193 = vmatprep.mubr.msk.bf16.mxu0 %vm10791_vm1, %v10790_v1  ;;  %v5917_v8 = vrot.slane %v5829_v55, 3 }
 0x244   : > { %8634 = vmatmul.mubr.msk.bf16.vlgmr.msra.gmra.mrb[0].mxu1 %vm393_vm2, %v2266_v7  ;;  %v2647_v7 = vrot.slane %v2645_v58, 1 }
 0x245   : > { %8702 = vmatpush3.bf16.msra.mxu1 %v2857_v60  ;;  %8637 = vmatprep.mubr.msk.bf16.mxu1 %vm10791_vm1, %v10790_v1  ;;  %v2650_v60 = vrot.slane %v2648_v52, 2 }
 0x246   : > { %8771 = vmatprep.subr.bf16.mxu1 %v10790_v1 }
 0x248   : > { %9194 = vmatmul.mubr.msk.bf16.vlgmr.msra.gmra.mrb[0].mxu0 %vm393_vm2, %v5886_v10  ;;  %v6276_v10 = vshll.u32 %v11848_v50, 16 }
 0x249   : > { %9197 = vmatprep.mubr.msk.bf16.mxu0 %vm10791_vm1, %v10790_v1  ;;  %9262 = vmatpush3.bf16.msra.mxu0 %v6477_v4  ;;  %v5918_v4 = vsel %vm4978_vm7, %v5915_v2, %v5917_v8  ;;  %v6309_v8 = vshrl.u32 %v11894_v21, 16 }
 0x24a   : > { %9331 = vmatprep.subr.bf16.mxu0 %v10790_v1 }
 0x24c   : > { %8638 = vmatmul.mubr.msk.bf16.gmra.mrb[4].mxu1 %vm393_vm2, %v2268_v15  ;;  %v2651_v15 = vor.u32 %v2650_v60, %v2647_v7  ;;  %v6312_v7 = vshll.u32 %v11894_v21, 16 }
 0x24d   : > { %8641 = vmatprep.mubr.msk.bf16.mxu1 %vm10791_vm1, %v10790_v1 }
 0x250   : > { %9198 = vmatmul.mubr.msk.bf16.gmra.mrb[4].mxu0 %vm393_vm2, %v11415_v11  ;;  %v11871_v11 = vld [vmem:[#allocation2 + $0x30] sm:$0xff] }
 0x251   : > { %9201 = vmatprep.mubr.msk.bf16.mxu0 %vm10791_vm1, %v10790_v1  ;;  %v2273_v29 = vrot.slane %v11871_v11, 1 }
 0x253   : > { %v2274_v32 = vsel %vm1358_vm6, %v2271_v48, %v2273_v29  ;;  %v7880_v48 = vld [vmem:[%s12778_s1 + $0xc] sm:$0x3] }
 0x254   : > { %8642 = vmatmul.mubr.msk.bf16.gmra.mrb[8].mxu1 %vm393_vm2, %v2270_v9  ;;  %v2665_v9 = vshll.u32 %v11831_v26, 16 }
 0x255   : > { %8645 = vmatprep.mubr.msk.bf16.mxu1 %vm10791_vm1, %v10790_v1 }
 0x258   : > { %9202 = vmatmul.mubr.msk.bf16.gmra.mrb[8].mxu0 %vm393_vm2, %v11430_v19  ;;  %v11882_v19 = vld [vmem:[#allocation2 + $0x38] sm:$0xff] }
 0x259   : > { %9205 = vmatprep.mubr.msk.bf16.mxu0 %vm10791_vm1, %v10790_v1  ;;  %v2275_v34 = vrot.slane %v11882_v19, 1  ;;  %v6300_v2 = vshrl.u32 %v11882_v19, 16 }
 0x25b   : > { %v2276_v17 = vsel %vm1358_vm6, %v2273_v29, %v2275_v34  ;;  %v6270_v29 = vrot.slane %v6268_v3, 4  ;;  %v6302_v58 = vrot.slane %v6300_v2, 3  ;;  %v6311_v3 = vrot.slane %v6309_v8, 3 }
 0x25c   : > { %8646 = vmatmul.mubr.msk.bf16.gmra.mrb[12].mxu1 %vm393_vm2, %v2272_v24  ;;  %v6267_v24 = vrot.slane %v6265_v59, 3 }
 0x25d   : > { %8649 = vmatprep.mubr.msk.bf16.mxu1 %vm10791_vm1, %v10790_v1 }
 0x25e   : > { %v6271_v26 = vor.u32 %v6270_v29, %v6267_v24 }
 0x260   : > { %9206 = vmatmul.mubr.msk.bf16.gmra.mrb[12].mxu0 %vm393_vm2, %v11445_v22  ;;  %v5895_v22 = vrot.slane %v11482_v25, 3  ;;  %v5897_v25 = vrot.slane %v11497_v47, 3 }
 0x261   : > { %9209 = vmatprep.mubr.msk.bf16.mxu0 %vm10791_vm1, %v10790_v1 }
 0x262   : > { %v5896_v33 = vsel %vm4978_vm7, %v11455_v27, %v5895_v22  ;;  %v5898_v43 = vsel %vm4978_vm7, %v5895_v22, %v5897_v25  ;;  %v2280_v27 = vsel %vm1358_vm6, %v2277_v36, %v11488_v42  ;;  %v5900_v47 = vsel %vm4978_vm7, %v5897_v25, %v5899_v14 }
 0x263   : > { %v5902_v42 = vsel %vm4978_vm7, %v5899_v14, %v5901_v39  ;;  %v3256_v22 = vsel %vm559_vm0, %v7880_v48, 0  ;;  %v6282_v25 = vshrl.u32 %v11860_v31, 16 }
 0x264   : > { %8650 = vmatmul.mubr.msk.bf16.gmra.mrb[16].mxu1 %vm393_vm2, %v2274_v32  ;;  %v6275_v32 = vrot.slane %v6273_v0, 3 }
 0x265   : > { %8653 = vmatprep.mubr.msk.bf16.mxu1 %vm10791_vm1, %v10790_v1 }
 0x268   : > { %9210 = vmatmul.mubr.msk.bf16.gmra.mrb[16].mxu0 %vm393_vm2, %v11463_v30  ;;  %v2278_v30 = vsel %vm1358_vm6, %v2275_v34, %v2277_v36  ;;  %v6278_v34 = vrot.slane %v6276_v10, 4  ;;  %v2664_v36 = vrot.slane %v2662_v5, 1 }
 0x269   : > { %9213 = vmatprep.mubr.msk.bf16.mxu0 %vm10791_vm1, %v10790_v1 }
 0x26c   : > { %8654 = vmatmul.mubr.msk.bf16.gmra.mrb[20].mxu1 %vm393_vm2, %v2276_v17  ;;  %v2660_v17 = vsel %vm1739_vm8, %v2651_v15, %v11641_v35  ;;  %v2700_v15 = vrot.slane %v6300_v2, 1 }
 0x26d   : > { %8657 = vmatprep.mubr.msk.bf16.mxu1 %vm10791_vm1, %v10790_v1 }
 0x270   : > { %9214 = vmatmul.mubr.msk.bf16.gmra.mrb[20].mxu0 %vm393_vm2, %v5896_v33  ;;  %v2667_v33 = vrot.slane %v2665_v9, 2 }
 0x271   : > { %9217 = vmatprep.mubr.msk.bf16.mxu0 %vm10791_vm1, %v10790_v1 }
 0x272   : > { %v2668_v14 = vor.u32 %v2667_v33, %v2664_v36  ;;  %v2709_v33 = vrot.slane %v6309_v8, 1 }
 0x274   : > { %8658 = vmatmul.mubr.msk.bf16.gmra.mrb[24].mxu1 %vm393_vm2, %v2278_v30  ;;  %v6279_v30 = vor.u32 %v6278_v34, %v6275_v32 }
 0x275   : > { %8661 = vmatprep.mubr.msk.bf16.mxu1 %vm10791_vm1, %v10790_v1 }
 0x278   : > { %9218 = vmatmul.mubr.msk.bf16.gmra.mrb[24].mxu0 %vm393_vm2, %v5898_v43  ;;  %v6285_v43 = vshll.u32 %v11860_v31, 16 }
 0x279   : > { %9221 = vmatprep.mubr.msk.bf16.mxu0 %vm10791_vm1, %v10790_v1 }
 0x27c   : > { %8662 = vmatmul.mubr.msk.bf16.gmra.mrb[28].mxu1 %vm393_vm2, %v2280_v27  ;;  %v8024_v27 = vld [vmem:[%s12778_s1 + $0x1c] sm:$0x3] }
 0x27d   : > { %8665 = vmatprep.mubr.msk.bf16.mxu1 %vm10791_vm1, %v10790_v1 }
 0x280   : > { %9222 = vmatmul.mubr.msk.bf16.gmra.mrb[28].mxu0 %vm393_vm2, %v5900_v47  ;;  %v6280_v47 = vsel %vm5359_vm9, %v6271_v26, %v6279_v30  ;;  %v2712_v26 = vrot.slane %v6312_v7, 2 }
 0x281   : > { %9225 = vmatprep.mubr.msk.bf16.mxu0 %vm10791_vm1, %v10790_v1 }
 0x284   : > { %8666 = vmatmul.mubr.msk.bf16.gmra.mrb[32].mxu1 %vm393_vm2, %v11507_v53  ;;  %v5904_v53 = vsel %vm4978_vm7, %v5901_v39, %v5903_v54  ;;  %v6284_v39 = vrot.slane %v6282_v25, 3 }
 0x285   : > { %8669 = vmatprep.mubr.msk.bf16.mxu1 %vm10791_vm1, %v10790_v1 }
 0x288   : > { %9226 = vmatmul.mubr.msk.bf16.gmra.mrb[32].mxu0 %vm393_vm2, %v5902_v42  ;;  %v6287_v42 = vrot.slane %v6285_v43, 4 }
 0x289   : > { %9229 = vmatprep.mubr.msk.bf16.mxu0 %vm10791_vm1, %v10790_v1 }
 0x28c   : > { %8670 = vmatmul.mubr.msk.bf16.gmra.mrb[36].mxu1 %vm393_vm2, %v11522_v61  ;;  %v5906_v61 = vsel %vm4978_vm7, %v5903_v54, %v5905_v63  ;;  %v6876_v54 = vsel %vm559_vm0, %v8024_v27, 0  ;;  %v2713_v27 = vor.u32 %v2712_v26, %v2709_v33 }
 0x28d   : > { %8673 = vmatprep.mubr.msk.bf16.mxu1 %vm10791_vm1, %v10790_v1 }
 0x290   : > { %9230 = vmatmul.mubr.msk.bf16.gmra.mrb[36].mxu0 %vm393_vm2, %v5904_v53  ;;  %v2669_v53 = vsel %vm1739_vm8, %v11641_v35, %v2668_v14 }
 0x291   : > { %9233 = vmatprep.mubr.msk.bf16.mxu0 %vm10791_vm1, %v10790_v1 }
 0x294   : > { %8674 = vmatmul.mubr.msk.bf16.gmra.mrb[40].mxu1 %vm393_vm2, %v11537_v62  ;;  %v5908_v62 = vsel %vm4978_vm7, %v5905_v63, %v5907_v28  ;;  %v2673_v63 = vrot.slane %v6273_v0, 1  ;;  %v6314_v0 = vrot.slane %v6312_v7, 4 }
 0x295   : > { %8677 = vmatprep.mubr.msk.bf16.mxu1 %vm10791_vm1, %v10790_v1 }
 0x296   : > { %v6315_v9 = vor.u32 %v6314_v0, %v6311_v3 }
 0x298   : > { %9234 = vmatmul.mubr.msk.bf16.gmra.mrb[40].mxu0 %vm393_vm2, %v5906_v61  ;;  %v2676_v61 = vrot.slane %v6276_v10, 2  ;;  %v12061_v10 = vld [vmem:[#allocation2 + $0x48] sm:$0xff] }
 0x299   : > { %9237 = vmatprep.mubr.msk.bf16.mxu0 %vm10791_vm1, %v10790_v1  ;;  %v12068_v48 = vshrl.u32 %v12061_v10, 16  ;;  %v12071_v24 = vshll.u32 %v12061_v10, 16 }
 0x29b   : > { %v6320_v34 = vrot.slane %v12068_v48, 3 }
 0x29c   : > { %8678 = vmatmul.mubr.msk.bf16.gmra.mrb[44].mxu1 %vm393_vm2, %v11552_v13  ;;  %v5910_v13 = vsel %vm4978_vm7, %v5907_v28, %v5909_v20  ;;  %v6288_v28 = vor.u32 %v6287_v42, %v6284_v39  ;;  %v12097_v42 = vld [vmem:[#allocation2 + $0x58] sm:$0xff] }
 0x29d   : > { %8681 = vmatprep.mubr.msk.bf16.mxu1 %vm10791_vm1, %v10790_v1 }
 0x29e   : > { %v6289_v35 = vsel %vm5359_vm9, %v6279_v30, %v6288_v28 }
 0x2a0   : > { %9238 = vmatmul.mubr.msk.bf16.gmra.mrb[44].mxu0 %vm393_vm2, %v5908_v62  ;;  %v6291_v62 = vshrl.u32 %v11871_v11, 16 }
 0x2a1   : > { %9241 = vmatprep.mubr.msk.bf16.mxu0 %vm10791_vm1, %v10790_v1 }
 0x2a2   : > { %v2691_v55 = vrot.slane %v6291_v62, 1 }
 0x2a4   : > { %8682 = vmatmul.mubr.msk.bf16.gmra.mrb[48].mxu1 %vm393_vm2, %v11567_v38  ;;  %v5912_v38 = vsel %vm4978_vm7, %v5909_v20, %v5911_v40  ;;  %v6294_v20 = vshll.u32 %v11871_v11, 16  ;;  %v6293_v40 = vrot.slane %v6291_v62, 3  ;;  %v12109_v62 = vshll.u32 %v12097_v42, 16 }
 0x2a5   : > { %8685 = vmatprep.mubr.msk.bf16.mxu1 %vm10791_vm1, %v10790_v1 }
 0x2a6   : > { %v2694_v6 = vrot.slane %v6294_v20, 2 }
 0x2a8   : > { %9242 = vmatmul.mubr.msk.bf16.gmra.mrb[48].mxu0 %vm393_vm2, %v5910_v13  ;;  %v2677_v13 = vor.u32 %v2676_v61, %v2673_v63  ;;  %v2695_v60 = vor.u32 %v2694_v6, %v2691_v55  ;;  %v2721_v63 = vrot.slane %v12071_v24, 2 }
 0x2a9   : > { %9245 = vmatprep.mubr.msk.bf16.mxu0 %vm10791_vm1, %v10790_v1 }
 0x2aa   : > { %v2678_v16 = vsel %vm1739_vm8, %v2668_v14, %v2677_v13 }
 0x2ac   : > { %8686 = vmatmul.mubr.msk.bf16.gmra.mrb[52].mxu1 %vm393_vm2, %v11582_v44  ;;  %v2295_v44 = vrot.slane %v11769_v46, 1 }
 0x2ad   : > { %8689 = vmatprep.mubr.msk.bf16.mxu1 %vm10791_vm1, %v10790_v1 }
 0x2ae   : > { %v2296_v23 = vsel %vm1358_vm6, %v11594_v18, %v2295_v44 }
 0x2b0   : > { %9246 = vmatmul.mubr.msk.bf16.gmra.mrb[52].mxu0 %vm393_vm2, %v5912_v38  ;;  %v6296_v38 = vrot.slane %v6294_v20, 4 }
 0x2b1   : > { %9249 = vmatprep.mubr.msk.bf16.mxu0 %vm10791_vm1, %v10790_v1 }
 0x2b4   : > { %8690 = vmatmul.mubr.msk.bf16.gmra.mrb[56].mxu1 %vm393_vm2, %v11600_v12  ;;  %v2209_v12 = vld [vmem:[#allocation2 + $0x90] sm:$0x1] }
 0x2b5   : > { %8693 = vmatprep.mubr.msk.bf16.mxu1 %vm10791_vm1, %v10790_v1  ;;  %v2297_v46 = vrot.slane %v2209_v12, 1  ;;  %v6303_v12 = vshll.u32 %v11882_v19, 16 }
 0x2b7   : > { %v2298_v18 = vsel %vm1358_vm6, %v2295_v44, %v2297_v46  ;;  %v2682_v44 = vrot.slane %v6282_v25, 1  ;;  %v6305_v52 = vrot.slane %v6303_v12, 4  ;;  %v2703_v5 = vrot.slane %v6303_v12, 2 }
 0x2b8   : > { %9250 = vmatmul.mubr.msk.bf16.gmra.mrb[56].mxu0 %vm393_vm2, %v5914_v49  ;;  %v2685_v49 = vrot.slane %v6285_v43, 2 }
 0x2b9   : > { %9253 = vmatprep.mubr.msk.bf16.mxu0 %vm10791_vm1, %v10790_v1  ;;  %v2704_v29 = vor.u32 %v2703_v5, %v2700_v15  ;;  %v12157_v15 = vld [vmem:[#allocation2 + $0x70] sm:$0xff] }
 0x2ba   : > { %v2686_v57 = vor.u32 %v2685_v49, %v2682_v44 }
 0x2bb   : > { %v2705_v36 = vsel %vm1739_vm8, %v2695_v60, %v2704_v29 }
 0x2bc   : > { %8694 = vmatmul.mubr.msk.bf16.gmra.mrb[60].mxu1 %vm393_vm2, %v2296_v23  ;;  %v6297_v23 = vor.u32 %v6296_v38, %v6293_v40  ;;  %v6341_v40 = vrot.slane %v12109_v62, 4  ;;  %v12117_v38 = vld [vmem:[#allocation2 + $0x60] sm:$0xff] }
 0x2bd   : > { %8697 = vmatprep.mubr.msk.bf16.mxu1 %vm10791_vm1, %v10790_v1  ;;  %v12126_v2 = vshrl.u32 %v12117_v38, 16  ;;  %v12129_v12 = vshll.u32 %v12117_v38, 16 }
 0x2be   : > { %v6298_v46 = vsel %vm5359_vm9, %v6288_v28, %v6297_v23  ;;  %v12106_v28 = vshrl.u32 %v12097_v42, 16 }
 0x2c0   : > { %9254 = vmatmul.mubr.msk.bf16.gmra.mrb[60].mxu0 %vm393_vm2, %v5916_v56  ;;  %v2687_v56 = vsel %vm1739_vm8, %v2677_v13, %v2686_v57  ;;  %v2736_v6 = vrot.slane %v12106_v28, 1 }
 0x2c1   : > { %9257 = vmatprep.mubr.msk.bf16.mxu0 %vm10791_vm1, %v10790_v1 }
 0x2c4   : > { %8698 = vmatmul.mubr.msk.bf16.gmra.mrb[64].mxu1 %vm393_vm2, %v2298_v18  ;;  %v6306_v18 = vor.u32 %v6305_v52, %v6302_v58  ;;  %v6347_v58 = vrot.slane %v12126_v2, 3  ;;  %v6350_v52 = vrot.slane %v12129_v12, 4 }
 0x2c5   : > { %8703 = vmatprep.mubr.msk.bf16.mxu1 %vm10791_vm1, %v10790_v1 }
 0x2c6   : > { %v6307_v59 = vsel %vm5359_vm9, %v6297_v23, %v6306_v18  ;;  %v6316_v32 = vsel %vm5359_vm9, %v6306_v18, %v6315_v9  ;;  %v2739_v18 = vrot.slane %v12109_v62, 2  ;;  %v6351_v8 = vor.u32 %v6350_v52, %v6347_v58 }
 0x2c8   : > { %9258 = vmatmul.mubr.msk.bf16.gmra.mrb[64].mxu0 %vm393_vm2, %v5918_v4  ;;  %v2696_v4 = vsel %vm1739_vm8, %v2686_v57, %v2695_v60 }
 0x2c9   : > { %9263 = vmatprep.mubr.msk.bf16.mxu0 %vm10791_vm1, %v10790_v1 }
 0x2cc   : > { %8704 = vmatmul.mubr.msk.bf16.vlgmr.msra.gmra.mrb[0].mxu1 %vm393_vm2, %v2660_v17  ;;  %v6323_v17 = vrot.slane %v12071_v24, 4 }
 0x2cd   : > { %8772 = vmatpush3.bf16.msra.mxu1 %v3256_v22  ;;  %8707 = vmatprep.mubr.msk.bf16.mxu1 %vm10791_vm1, %v10790_v1  ;;  %v12079_v22 = vld [vmem:[#allocation2 + $0x50] sm:$0xff] }
 0x2ce   : > { %8841 = vmatprep.subr.bf16.mxu1 %v10790_v1  ;;  %v6324_v30 = vor.u32 %v6323_v17, %v6320_v34  ;;  %v12086_v25 = vshrl.u32 %v12079_v22, 16  ;;  %v12089_v43 = vshll.u32 %v12079_v22, 16  ;;  %v12166_v34 = vshrl.u32 %v12157_v15, 16 }
 0x2cf   : > { %v12169_v17 = vshll.u32 %v12157_v15, 16 }
 0x2d0   : > { %9264 = vmatmul.mubr.msk.bf16.vlgmr.msra.gmra.mrb[0].mxu0 %vm393_vm2, %v6280_v47  ;;  %v6325_v14 = vsel %vm5359_vm9, %v6315_v9, %v6324_v30  ;;  %v6329_v47 = vrot.slane %v12086_v25, 3  ;;  %v6332_v39 = vrot.slane %v12089_v43, 4  ;;  %v2727_v44 = vrot.slane %v12086_v25, 1 }
 0x2d1   : > { %9267 = vmatprep.mubr.msk.bf16.mxu0 %vm10791_vm1, %v10790_v1  ;;  %9332 = vmatpush3.bf16.msra.mxu0 %v6876_v54  ;;  %v2714_v54 = vsel %vm1739_vm8, %v2704_v29, %v2713_v27  ;;  %v2730_v49 = vrot.slane %v12089_v43, 2  ;;  %v2745_v9 = vrot.slane %v12126_v2, 1  ;;  %v2748_v29 = vrot.slane %v12129_v12, 2 }
 0x2d2   : > { %9401 = vmatprep.subr.bf16.mxu0 %v10790_v1  ;;  %v6333_v61 = vor.u32 %v6332_v39, %v6329_v47  ;;  %v6365_v26 = vrot.slane %v12166_v34, 3 }
 0x2d3   : > { %v2731_v57 = vor.u32 %v2730_v49, %v2727_v44  ;;  %v2763_v44 = vrot.slane %v12166_v34, 1  ;;  %v2766_v49 = vrot.slane %v12169_v17, 2 }
 0x2d4   : > { %8708 = vmatmul.mubr.msk.bf16.gmra.mrb[4].mxu1 %vm393_vm2, %v2669_v53  ;;  %v2718_v53 = vrot.slane %v12068_v48, 1  ;;  %v6334_v13 = vsel %vm5359_vm9, %v6324_v30, %v6333_v61  ;;  %v6368_v30 = vrot.slane %v12169_v17, 4 }
 0x2d5   : > { %8711 = vmatprep.mubr.msk.bf16.mxu1 %vm10791_vm1, %v10790_v1  ;;  %v2767_v58 = vor.u32 %v2766_v49, %v2763_v44  ;;  %v6227_v49 = vld [vmem:[#allocation2 + $0xa0] sm:$0xf] }
 0x2d6   : > { %v2722_v20 = vor.u32 %v2721_v63, %v2718_v53 }
 0x2d8   : > { %9268 = vmatmul.mubr.msk.bf16.gmra.mrb[4].mxu0 %vm393_vm2, %v6289_v35  ;;  %v6338_v35 = vrot.slane %v12106_v28, 3  ;;  %v2732_v55 = vsel %vm1739_vm8, %v2722_v20, %v2731_v57 }
 0x2d9   : > { %9271 = vmatprep.mubr.msk.bf16.mxu0 %vm10791_vm1, %v10790_v1 }
 0x2da   : > { %v6342_v23 = vor.u32 %v6341_v40, %v6338_v35  ;;  %v12197_v40 = vld [vmem:[#allocation2 + $0x80] sm:$0xff] }
 0x2dc   : > { %8712 = vmatmul.mubr.msk.bf16.gmra.mrb[8].mxu1 %vm393_vm2, %v2678_v16  ;;  %v2723_v16 = vsel %vm1739_vm8, %v2713_v27, %v2722_v20  ;;  %v6352_v3 = vsel %vm5359_vm9, %v6342_v23, %v6351_v8  ;;  %v12177_v27 = vld [vmem:[#allocation2 + $0x78] sm:$0xff] }
 0x2dd   : > { %8715 = vmatprep.mubr.msk.bf16.mxu1 %vm10791_vm1, %v10790_v1  ;;  %v12186_v53 = vshrl.u32 %v12177_v27, 16  ;;  %v12189_v63 = vshll.u32 %v12177_v27, 16 }
 0x2df   : > { %v6377_v35 = vrot.slane %v12189_v63, 4 }
 0x2e0   : > { %9272 = vmatmul.mubr.msk.bf16.gmra.mrb[8].mxu0 %vm393_vm2, %v6298_v46  ;;  %v6343_v46 = vsel %vm5359_vm9, %v6333_v61, %v6342_v23 }
 0x2e1   : > { %9275 = vmatprep.mubr.msk.bf16.mxu0 %vm10791_vm1, %v10790_v1 }
 0x2e4   : > { %8716 = vmatmul.mubr.msk.bf16.gmra.mrb[12].mxu1 %vm393_vm2, %v2687_v56  ;;  %v12137_v56 = vld [vmem:[#allocation2 + $0x68] sm:$0xff] }
 0x2e5   : > { %8719 = vmatprep.mubr.msk.bf16.mxu1 %vm10791_vm1, %v10790_v1  ;;  %v12146_v7 = vshrl.u32 %v12137_v56, 16  ;;  %v12149_v60 = vshll.u32 %v12137_v56, 16 }
 0x2e7   : > { %v6356_v0 = vrot.slane %v12146_v7, 3  ;;  %v2754_v47 = vrot.slane %v12146_v7, 1  ;;  %v2757_v39 = vrot.slane %v12149_v60, 2 }
 0x2e8   : > { %9276 = vmatmul.mubr.msk.bf16.gmra.mrb[12].mxu0 %vm393_vm2, %v6307_v59  ;;  %v2740_v59 = vor.u32 %v2739_v18, %v2736_v6 }
 0x2e9   : > { %9279 = vmatprep.mubr.msk.bf16.mxu0 %vm10791_vm1, %v10790_v1  ;;  %v2758_v61 = vor.u32 %v2757_v39, %v2754_v47 }
 0x2ea   : > { %v2741_v5 = vsel %vm1739_vm8, %v2731_v57, %v2740_v59  ;;  %v12206_v57 = vshrl.u32 %v12197_v40, 16 }
 0x2eb   : > { %v2768_v18 = vsel %vm1739_vm8, %v2758_v61, %v2767_v58 }
 0x2ec   : > { %8720 = vmatmul.mubr.msk.bf16.gmra.mrb[16].mxu1 %vm393_vm2, %v2696_v4  ;;  %v6359_v4 = vrot.slane %v12149_v60, 4 }
 0x2ed   : > { %8723 = vmatprep.mubr.msk.bf16.mxu1 %vm10791_vm1, %v10790_v1 }
 0x2f0   : > { %9280 = vmatmul.mubr.msk.bf16.gmra.mrb[16].mxu0 %vm393_vm2, %v6316_v32  ;;  %v6360_v32 = vor.u32 %v6359_v4, %v6356_v0 }
 0x2f1   : > { %9283 = vmatprep.mubr.msk.bf16.mxu0 %vm10791_vm1, %v10790_v1 }
 0x2f2   : > { %v6361_v33 = vsel %vm5359_vm9, %v6351_v8, %v6360_v32  ;;  %v2772_v8 = vrot.slane %v12186_v53, 1 }
 0x2f4   : > { %8724 = vmatmul.mubr.msk.bf16.gmra.mrb[20].mxu1 %vm393_vm2, %v2705_v36  ;;  %v2749_v36 = vor.u32 %v2748_v29, %v2745_v9  ;;  %v2781_v9 = vrot.slane %v12206_v57, 1 }
 0x2f5   : > { %8727 = vmatprep.mubr.msk.bf16.mxu1 %vm10791_vm1, %v10790_v1 }
 0x2f8   : > { %9284 = vmatmul.mubr.msk.bf16.gmra.mrb[20].mxu0 %vm393_vm2, %v6325_v14  ;;  %v2750_v14 = vsel %vm1739_vm8, %v2740_v59, %v2749_v36  ;;  %v2775_v59 = vrot.slane %v12189_v63, 2 }
 0x2f9   : > { %9287 = vmatprep.mubr.msk.bf16.mxu0 %vm10791_vm1, %v10790_v1 }
 0x2fa   : > { %v2776_v0 = vor.u32 %v2775_v59, %v2772_v8 }
 0x2fc   : > { %8728 = vmatmul.mubr.msk.bf16.gmra.mrb[24].mxu1 %vm393_vm2, %v2714_v54  ;;  %v6369_v54 = vor.u32 %v6368_v30, %v6365_v26 }
 0x2fd   : > { %8731 = vmatprep.mubr.msk.bf16.mxu1 %vm10791_vm1, %v10790_v1 }
 0x2fe   : > { %v6370_v20 = vsel %vm5359_vm9, %v6360_v32, %v6369_v54  ;;  %v12233_v32 = vld [vmem:[#allocation2 + $0x88] sm:$0xff] }
 0x2ff   : > { %v12242_v26 = vshll.u32 %v12233_v32, 16 }
 0x300   : > { %9288 = vmatmul.mubr.msk.bf16.gmra.mrb[24].mxu0 %vm393_vm2, %v6334_v13  ;;  %v6374_v13 = vrot.slane %v12186_v53, 3 }
 0x301   : > { %9291 = vmatprep.mubr.msk.bf16.mxu0 %vm10791_vm1, %v10790_v1  ;;  %v2793_v39 = vrot.slane %v12242_v26, 2 }
 0x302   : > { %v6378_v23 = vor.u32 %v6377_v35, %v6374_v13 }
 0x304   : > { %8732 = vmatmul.mubr.msk.bf16.gmra.mrb[28].mxu1 %vm393_vm2, %v2723_v16  ;;  %v2759_v16 = vsel %vm1739_vm8, %v2749_v36, %v2758_v61  ;;  %v6379_v52 = vsel %vm5359_vm9, %v6369_v54, %v6378_v23  ;;  %v6408_v54 = vshrl.u32 %v11985_v51, 16  ;;  %v6411_v61 = vshll.u32 %v11985_v51, 16 }
 0x305   : > { %8735 = vmatprep.mubr.msk.bf16.mxu1 %vm10791_vm1, %v10790_v1 }
 0x306   : > { %v6413_v44 = vrot.slane %v6411_v61, 4  ;;  %v12287_v61 = vld [vmem:[#allocation2 + $0x18] sm:$0xff] }
 0x308   : > { %9292 = vmatmul.mubr.msk.bf16.gmra.mrb[28].mxu0 %vm393_vm2, %v6343_v46  ;;  %v12209_v46 = vshll.u32 %v12197_v40, 16 }
 0x309   : > { %9295 = vmatprep.mubr.msk.bf16.mxu0 %vm10791_vm1, %v10790_v1 }
 0x30a   : > { %v6386_v6 = vrot.slane %v12209_v46, 4  ;;  %v2784_v29 = vrot.slane %v12209_v46, 2 }
 0x30c   : > { %8736 = vmatmul.mubr.msk.bf16.gmra.mrb[32].mxu1 %vm393_vm2, %v2732_v55  ;;  %v6383_v55 = vrot.slane %v12206_v57, 3  ;;  %v2785_v36 = vor.u32 %v2784_v29, %v2781_v9 }
 0x30d   : > { %8739 = vmatprep.mubr.msk.bf16.mxu1 %vm10791_vm1, %v10790_v1 }
 0x310   : > { %9296 = vmatmul.mubr.msk.bf16.gmra.mrb[32].mxu0 %vm393_vm2, %v6352_v3  ;;  %v6387_v3 = vor.u32 %v6386_v6, %v6383_v55  ;;  %v6417_v55 = vshrl.u32 %v6227_v49, 16  ;;  %v6420_v6 = vshll.u32 %v6227_v49, 16 }
 0x311   : > { %9299 = vmatprep.mubr.msk.bf16.mxu0 %vm10791_vm1, %v10790_v1 }
 0x312   : > { %v6388_v4 = vsel %vm5359_vm9, %v6378_v23, %v6387_v3  ;;  %v6397_v30 = vsel %vm5359_vm9, %v6387_v3, %v11787_v37  ;;  %v6422_v59 = vrot.slane %v6420_v6, 4 }
 0x314   : > { %8740 = vmatmul.mubr.msk.bf16.gmra.mrb[36].mxu1 %vm393_vm2, %v2741_v5  ;;  %v2777_v5 = vsel %vm1739_vm8, %v2767_v58, %v2776_v0 }
 0x315   : > { %8743 = vmatprep.mubr.msk.bf16.mxu1 %vm10791_vm1, %v10790_v1 }
 0x318   : > { %9300 = vmatmul.mubr.msk.bf16.gmra.mrb[36].mxu0 %vm393_vm2, %v6361_v33  ;;  %v12239_v33 = vshrl.u32 %v12233_v32, 16 }
 0x319   : > { %9303 = vmatprep.mubr.msk.bf16.mxu0 %vm10791_vm1, %v10790_v1 }
 0x31a   : > { %v2790_v47 = vrot.slane %v12239_v33, 1 }
 0x31c   : > { %8744 = vmatmul.mubr.msk.bf16.gmra.mrb[40].mxu1 %vm393_vm2, %v2750_v14  ;;  %v2786_v14 = vsel %vm1739_vm8, %v2776_v0, %v2785_v36  ;;  %v2794_v37 = vor.u32 %v2793_v39, %v2790_v47 }
 0x31d   : > { %8747 = vmatprep.mubr.msk.bf16.mxu1 %vm10791_vm1, %v10790_v1 }
 0x31e   : > { %v2795_v23 = vsel %vm1739_vm8, %v2785_v36, %v2794_v37  ;;  %v7898_v36 = vld [vmem:[%s12778_s1 + $0xe] sm:$0x3] }
 0x31f   : > { %v3763_v47 = vsel %vm559_vm0, %v7898_v36, 0 }
 0x320   : > { %9304 = vmatmul.mubr.msk.bf16.gmra.mrb[40].mxu0 %vm393_vm2, %v6370_v20  ;;  %v2607_v20 = vld [vmem:[#allocation2 + $0x90] sm:$0x3] }
 0x321   : > { %9307 = vmatprep.mubr.msk.bf16.mxu0 %vm10791_vm1, %v10790_v1  ;;  %v2797_v13 = vshrl.u32 %v2607_v20, 16  ;;  %v2800_v35 = vshll.u32 %v2607_v20, 16  ;;  %v8042_v20 = vld [vmem:[%s12778_s1 + $0x1e] sm:$0x3] }
 0x323   : > { %v2799_v58 = vrot.slane %v2797_v13, 1 }
 0x324   : > { %8748 = vmatmul.mubr.msk.bf16.gmra.mrb[44].mxu1 %vm393_vm2, %v2759_v16  ;;  %v6410_v16 = vrot.slane %v6408_v54, 3  ;;  %v6790_v54 = vrot.slane %v11848_v50, 4 }
 0x325   : > { %8751 = vmatprep.mubr.msk.bf16.mxu1 %vm10791_vm1, %v10790_v1 }
 0x326   : > { %v6414_v51 = vor.u32 %v6413_v44, %v6410_v16  ;;  %v6792_v16 = vrot.slane %v11860_v31, 4  ;;  %v12303_v44 = vld [vmem:[#allocation2 + $0x20] sm:$0xff]  ;;  %v6794_v31 = vrot.slane %v11871_v11, 4  ;;  %v6796_v11 = vrot.slane %v11882_v19, 4 }
 0x327   : > { %v3174_v49 = vrot.slane %v12303_v44, 2  ;;  %v6798_v19 = vrot.slane %v11894_v21, 4  ;;  %v6800_v21 = vrot.slane %v12061_v10, 4 }
 0x328   : > { %9308 = vmatmul.mubr.msk.bf16.gmra.mrb[44].mxu0 %vm393_vm2, %v6379_v52  ;;  %v2802_v52 = vrot.slane %v2800_v35, 2  ;;  %v6415_v8 = vsel %vm5359_vm9, %v11800_v41, %v6414_v51  ;;  %v7383_v35 = vsel %vm559_vm0, %v8042_v20, 0  ;;  %v6804_v20 = vrot.slane %v12097_v42, 4 }
 0x329   : > { %9311 = vmatprep.mubr.msk.bf16.mxu0 %vm10791_vm1, %v10790_v1  ;;  %v6801_v36 = vsel %vm6788_vm10, %v6798_v19, %v6800_v21 }
 0x32c   : > { %8752 = vmatmul.mubr.msk.bf16.gmra.mrb[48].mxu1 %vm393_vm2, %v2768_v18  ;;  %v2803_v18 = vor.u32 %v2802_v52, %v2799_v58  ;;  %v12315_v52 = vld [vmem:[#allocation2 + $0x28] sm:$0xff] }
 0x32d   : > { %8755 = vmatprep.mubr.msk.bf16.mxu1 %vm10791_vm1, %v10790_v1 }
 0x32e   : > { %v2804_v3 = vsel %vm1739_vm8, %v2794_v37, %v2803_v18  ;;  %v3172_v37 = vrot.slane %v12287_v61, 2  ;;  %v12327_v18 = vld [vmem:[#allocation2 + $0x30] sm:$0xff] }
 0x330   : > { %9312 = vmatmul.mubr.msk.bf16.gmra.mrb[48].mxu0 %vm393_vm2, %v6388_v4  ;;  %v3096_v4 = vld [vmem:[#allocation2 + $0x8] sm:$0xfc]  ;;  %v3175_v58 = vsel %vm3168_vm3, %v3172_v37, %v3174_v49 }
 0x331   : > { %9315 = vmatprep.mubr.msk.bf16.mxu0 %vm10791_vm1, %v10790_v1  ;;  %v3169_v9 = vrot.slane %v3096_v4, 2  ;;  %v6799_v4 = vsel %vm6788_vm10, %v6796_v11, %v6798_v19 }
 0x334   : > { %8756 = vmatmul.mubr.msk.bf16.gmra.mrb[52].mxu1 %vm393_vm2, %v2777_v5  ;;  %v12271_v5 = vld [vmem:[#allocation2 + $0x10] sm:$0xff] }
 0x335   : > { %8759 = vmatprep.mubr.msk.bf16.mxu1 %vm10791_vm1, %v10790_v1  ;;  %v3170_v41 = vrot.slane %v12271_v5, 2 }
 0x337   : > { %v3173_v50 = vsel %vm3168_vm3, %v3170_v41, %v3172_v37  ;;  %v3186_v37 = vrot.slane %v12079_v22, 2 }
 0x338   : > { %9316 = vmatmul.mubr.msk.bf16.gmra.mrb[52].mxu0 %vm393_vm2, %v6397_v30  ;;  %v6716_v30 = vld [vmem:[#allocation2 + $0x18] sm:$0xf0] }
 0x339   : > { %9319 = vmatprep.mubr.msk.bf16.mxu0 %vm10791_vm1, %v10790_v1  ;;  %v6789_v39 = vrot.slane %v6716_v30, 4 }
 0x33b   : > { %v6791_v13 = vsel %vm6788_vm10, %v6789_v39, %v6790_v54 }
 0x33c   : > { %8760 = vmatmul.mubr.msk.bf16.gmra.mrb[56].mxu1 %vm393_vm2, %v2786_v14  ;;  %v3171_v14 = vsel %vm3168_vm3, %v3169_v9, %v3170_v41  ;;  %v12351_v41 = vld [vmem:[#allocation2 + $0x40] sm:$0xff] }
 0x33d   : > { %8763 = vmatprep.mubr.msk.bf16.mxu1 %vm10791_vm1, %v10790_v1 }
 0x340   : > { %9320 = vmatmul.mubr.msk.bf16.gmra.mrb[56].mxu0 %vm393_vm2, %v11808_v45  ;;  %v6419_v45 = vrot.slane %v6417_v55, 3  ;;  %v6795_v55 = vsel %vm6788_vm10, %v6792_v16, %v6794_v31 }
 0x341   : > { %9323 = vmatprep.mubr.msk.bf16.mxu0 %vm10791_vm1, %v10790_v1 }
 0x342   : > { %v6423_v0 = vor.u32 %v6422_v59, %v6419_v45  ;;  %v6797_v45 = vsel %vm6788_vm10, %v6794_v31, %v6796_v11  ;;  %v6810_v31 = vrot.slane %v12157_v15, 4  ;;  %v3194_v11 = vrot.slane %v12157_v15, 2 }
 0x344   : > { %8764 = vmatmul.mubr.msk.bf16.gmra.mrb[60].mxu1 %vm393_vm2, %v2795_v23  ;;  %v6424_v29 = vsel %vm5359_vm9, %v6414_v51, %v6423_v0  ;;  %v6793_v23 = vsel %vm6788_vm10, %v6790_v54, %v6792_v16  ;;  %v3176_v51 = vrot.slane %v12315_v52, 2 }
 0x345   : > { %8767 = vmatprep.mubr.msk.bf16.mxu1 %vm10791_vm1, %v10790_v1 }
 0x346   : > { %v3177_v6 = vsel %vm3168_vm3, %v3174_v49, %v3176_v51  ;;  %v6808_v49 = vrot.slane %v12137_v56, 4 }
 0x348   : > { %9324 = vmatmul.mubr.msk.bf16.gmra.mrb[60].mxu0 %vm393_vm2, %v6415_v8  ;;  %v3178_v8 = vrot.slane %v12327_v18, 2 }
 0x349   : > { %9327 = vmatprep.mubr.msk.bf16.mxu0 %vm10791_vm1, %v10790_v1 }
 0x34a   : > { %v3179_v59 = vsel %vm3168_vm3, %v3176_v51, %v3178_v8  ;;  %v3192_v51 = vrot.slane %v12137_v56, 2 }
 0x34c   : > { %8768 = vmatmul.mubr.msk.bf16.gmra.mrb[64].mxu1 %vm393_vm2, %v2804_v3  ;;  %v12339_v3 = vld [vmem:[#allocation2 + $0x38] sm:$0xff] }
 0x34d   : > { %8773 = vmatprep.mubr.msk.bf16.mxu1 %vm10791_vm1, %v10790_v1  ;;  %v3180_v0 = vrot.slane %v12339_v3, 2 }
 0x34f   : > { %v3181_v9 = vsel %vm3168_vm3, %v3178_v8, %v3180_v0  ;;  %v3195_v8 = vsel %vm3168_vm3, %v3192_v51, %v3194_v11 }
 0x350   : > { %9328 = vmatmul.mubr.msk.bf16.gmra.mrb[64].mxu0 %vm393_vm2, %v6424_v29  ;;  %v3182_v29 = vrot.slane %v12351_v41, 2 }
 0x351   : > { %9333 = vmatprep.mubr.msk.bf16.mxu0 %vm10791_vm1, %v10790_v1 }
 0x352   : > { %v3183_v30 = vsel %vm3168_vm3, %v3180_v0, %v3182_v29  ;;  %v6816_v0 = vrot.slane %v12233_v32, 4 }
 0x354   : > { %8774 = vmatmul.mubr.msk.bf16.vlgmr.msra.gmra.mrb[0].mxu1 %vm393_vm2, %v3171_v14  ;;  %v6802_v14 = vrot.slane %v12079_v22, 4 }
 0x355   : > { %8842 = vmatpush3.bf16.msra.mxu1 %v3763_v47  ;;  %8777 = vmatprep.mubr.msk.bf16.mxu1 %vm10791_vm1, %v10790_v1  ;;  %v3184_v47 = vrot.slane %v12061_v10, 2 }
 0x356   : > { %v6803_v39 = vsel %vm6788_vm10, %v6800_v21, %v6802_v14  ;;  %v6805_v10 = vsel %vm6788_vm10, %v6802_v14, %v6804_v20 }
 0x357   : > { %v3185_v54 = vsel %vm3168_vm3, %v3182_v29, %v3184_v47 }
 0x358   : > { %9334 = vmatmul.mubr.msk.bf16.vlgmr.msra.gmra.mrb[0].mxu0 %vm393_vm2, %v6791_v13  ;;  %v3187_v13 = vsel %vm3168_vm3, %v3184_v47, %v3186_v37  ;;  %v3113_v47 = vld [vmem:[#allocation2 + $0x90] sm:$0x3] }
 0x359   : > { %9337 = vmatprep.mubr.msk.bf16.mxu0 %vm10791_vm1, %v10790_v1  ;;  %9402 = vmatpush3.bf16.msra.mxu0 %v7383_v35  ;;  %v6806_v35 = vrot.slane %v12117_v38, 4 }
 0x35b   : > { %v6807_v22 = vsel %vm6788_vm10, %v6804_v20, %v6806_v35  ;;  %v3202_v20 = vrot.slane %v3113_v47, 2 }
 0x35c   : > { %8778 = vmatmul.mubr.msk.bf16.gmra.mrb[4].mxu1 %vm393_vm2, %v3173_v50  ;;  %v3188_v50 = vrot.slane %v12097_v42, 2  ;;  %v6809_v42 = vsel %vm6788_vm10, %v6806_v35, %v6808_v49  ;;  %v3562_v35 = vshll.u32 %v12271_v5, 16 }
 0x35d   : > { %8781 = vmatprep.mubr.msk.bf16.mxu1 %vm10791_vm1, %v10790_v1 }
 0x35e   : > { %v3189_v16 = vsel %vm3168_vm3, %v3186_v37, %v3188_v50 }
 0x360   : > { %9338 = vmatmul.mubr.msk.bf16.gmra.mrb[4].mxu0 %vm393_vm2, %v6793_v23  ;;  %v3190_v23 = vrot.slane %v12117_v38, 2  ;;  %v6811_v38 = vsel %vm6788_vm10, %v6808_v49, %v6810_v31 }
 0x361   : > { %9341 = vmatprep.mubr.msk.bf16.mxu0 %vm10791_vm1, %v10790_v1 }
 0x364   : > { %8782 = vmatmul.mubr.msk.bf16.gmra.mrb[8].mxu1 %vm393_vm2, %v3175_v58  ;;  %v3191_v58 = vsel %vm3168_vm3, %v3188_v50, %v3190_v23 }
 0x365   : > { %8785 = vmatprep.mubr.msk.bf16.mxu1 %vm10791_vm1, %v10790_v1 }
 0x368   : > { %9342 = vmatmul.mubr.msk.bf16.gmra.mrb[8].mxu0 %vm393_vm2, %v6795_v55  ;;  %v3193_v55 = vsel %vm3168_vm3, %v3190_v23, %v3192_v51 }
 0x369   : > { %9345 = vmatprep.mubr.msk.bf16.mxu0 %vm10791_vm1, %v10790_v1 }
 0x36c   : > { %8786 = vmatmul.mubr.msk.bf16.gmra.mrb[12].mxu1 %vm393_vm2, %v3177_v6  ;;  %v6812_v6 = vrot.slane %v12177_v27, 4 }
 0x36d   : > { %8789 = vmatprep.mubr.msk.bf16.mxu1 %vm10791_vm1, %v10790_v1 }
 0x36e   : > { %v6813_v56 = vsel %vm6788_vm10, %v6810_v31, %v6812_v6  ;;  %v3564_v31 = vrot.slane %v3562_v35, 3 }
 0x370   : > { %9346 = vmatmul.mubr.msk.bf16.gmra.mrb[12].mxu0 %vm393_vm2, %v6797_v45  ;;  %v6814_v45 = vrot.slane %v12197_v40, 4 }
 0x371   : > { %9349 = vmatprep.mubr.msk.bf16.mxu0 %vm10791_vm1, %v10790_v1 }
 0x372   : > { %v6815_v15 = vsel %vm6788_vm10, %v6812_v6, %v6814_v45 }
 0x374   : > { %8790 = vmatmul.mubr.msk.bf16.gmra.mrb[16].mxu1 %vm393_vm2, %v3179_v59  ;;  %v3196_v59 = vrot.slane %v12177_v27, 2  ;;  %v6817_v27 = vsel %vm6788_vm10, %v6814_v45, %v6816_v0  ;;  %v3571_v45 = vshll.u32 %v12287_v61, 16 }
 0x375   : > { %8793 = vmatprep.mubr.msk.bf16.mxu1 %vm10791_vm1, %v10790_v1 }
 0x376   : > { %v3197_v19 = vsel %vm3168_vm3, %v3194_v11, %v3196_v59 }
 0x378   : > { %9350 = vmatmul.mubr.msk.bf16.gmra.mrb[16].mxu0 %vm393_vm2, %v6799_v4  ;;  %v3198_v4 = vrot.slane %v12197_v40, 2  ;;  %v3200_v40 = vrot.slane %v12233_v32, 2  ;;  %v6733_v32 = vld [vmem:[#allocation2 + $0xa0] sm:$0xf] }
 0x379   : > { %9353 = vmatprep.mubr.msk.bf16.mxu0 %vm10791_vm1, %v10790_v1  ;;  %v6822_v49 = vrot.slane %v6733_v32, 4 }
 0x37a   : > { %v3199_v21 = vsel %vm3168_vm3, %v3196_v59, %v3198_v4  ;;  %v3201_v14 = vsel %vm3168_vm3, %v3198_v4, %v3200_v40 }
 0x37c   : > { %8794 = vmatmul.mubr.msk.bf16.gmra.mrb[20].mxu1 %vm393_vm2, %v3181_v9  ;;  %v12438_v9 = vld [vmem:[#allocation2 + $0x90] sm:$0xff] }
 0x37d   : > { %8797 = vmatprep.mubr.msk.bf16.mxu1 %vm10791_vm1, %v10790_v1  ;;  %v6818_v29 = vrot.slane %v12438_v9, 4 }
 0x380   : > { %9354 = vmatmul.mubr.msk.bf16.gmra.mrb[20].mxu0 %vm393_vm2, %v6801_v36  ;;  %v6819_v36 = vsel %vm6788_vm10, %v6816_v0, %v6818_v29 }
 0x381   : > { %9357 = vmatprep.mubr.msk.bf16.mxu0 %vm10791_vm1, %v10790_v1 }
 0x384   : > { %8798 = vmatmul.mubr.msk.bf16.gmra.mrb[24].mxu1 %vm393_vm2, %v3183_v30  ;;  %v12450_v30 = vld [vmem:[#allocation2 + $0x98] sm:$0xff] }
 0x385   : > { %8801 = vmatprep.mubr.msk.bf16.mxu1 %vm10791_vm1, %v10790_v1 }
 0x388   : > { %9358 = vmatmul.mubr.msk.bf16.gmra.mrb[24].mxu0 %vm393_vm2, %v6803_v39  ;;  %v6820_v39 = vrot.slane %v12450_v30, 4 }
 0x389   : > { %9361 = vmatprep.mubr.msk.bf16.mxu0 %vm10791_vm1, %v10790_v1 }
 0x38a   : > { %v6821_v50 = vsel %vm6788_vm10, %v6818_v29, %v6820_v39  ;;  %v6823_v6 = vsel %vm6788_vm10, %v6820_v39, %v6822_v49 }
 0x38c   : > { %8802 = vmatmul.mubr.msk.bf16.gmra.mrb[28].mxu1 %vm393_vm2, %v3185_v54  ;;  %v3495_v54 = vld [vmem:[#allocation2 + $0x8] sm:$0xfc] }
 0x38d   : > { %8805 = vmatprep.mubr.msk.bf16.mxu1 %vm10791_vm1, %v10790_v1  ;;  %v3551_v37 = vshrl.u32 %v3495_v54, 16 }
 0x38f   : > { %v3553_v23 = vrot.slane %v3551_v37, 2  ;;  %v7197_v37 = vshrl.u32 %v12327_v18, 16 }
 0x390   : > { %9362 = vmatmul.mubr.msk.bf16.gmra.mrb[28].mxu0 %vm393_vm2, %v6805_v10  ;;  %v3554_v10 = vshll.u32 %v3495_v54, 16 }
 0x391   : > { %9365 = vmatprep.mubr.msk.bf16.mxu0 %vm10791_vm1, %v10790_v1 }
 0x394   : > { %8806 = vmatmul.mubr.msk.bf16.gmra.mrb[32].mxu1 %vm393_vm2, %v3187_v13  ;;  %v3559_v13 = vshrl.u32 %v12271_v5, 16  ;;  %v7182_v5 = vshll.u32 %v12303_v44, 16 }
 0x395   : > { %8809 = vmatprep.mubr.msk.bf16.mxu1 %vm10791_vm1, %v10790_v1 }
 0x396   : > { %v7184_v0 = vrot.slane %v7182_v5, 5  ;;  %v3582_v32 = vrot.slane %v7182_v5, 3 }
 0x398   : > { %9366 = vmatmul.mubr.msk.bf16.gmra.mrb[32].mxu0 %vm393_vm2, %v6807_v22  ;;  %v7115_v22 = vld [vmem:[#allocation2 + $0x18] sm:$0xf0] }
 0x399   : > { %9369 = vmatprep.mubr.msk.bf16.mxu0 %vm10791_vm1, %v10790_v1  ;;  %v7171_v51 = vshrl.u32 %v7115_v22, 16 }
 0x39b   : > { %v7173_v59 = vrot.slane %v7171_v51, 4 }
 0x39c   : > { %8810 = vmatmul.mubr.msk.bf16.gmra.mrb[36].mxu1 %vm393_vm2, %v3189_v16  ;;  %v3203_v16 = vsel %vm3168_vm3, %v3200_v40, %v3202_v20  ;;  %v7188_v40 = vshrl.u32 %v12315_v52, 16 }
 0x39d   : > { %8813 = vmatprep.mubr.msk.bf16.mxu1 %vm10791_vm1, %v10790_v1 }
 0x39e   : > { %v7190_v47 = vrot.slane %v7188_v40, 4  ;;  %v3588_v49 = vrot.slane %v7188_v40, 2  ;;  %v7229_v40 = vrot.slane %v12071_v24, 5 }
 0x3a0   : > { %9370 = vmatmul.mubr.msk.bf16.gmra.mrb[36].mxu0 %vm393_vm2, %v6809_v42  ;;  %v3556_v42 = vrot.slane %v3554_v10, 3  ;;  %v7200_v10 = vshll.u32 %v12327_v18, 16 }
 0x3a1   : > { %9373 = vmatprep.mubr.msk.bf16.mxu0 %vm10791_vm1, %v10790_v1 }
 0x3a2   : > { %v3557_v11 = vor.u32 %v3556_v42, %v3553_v23  ;;  %v7206_v42 = vshrl.u32 %v12339_v3, 16 }
 0x3a4   : > { %8814 = vmatmul.mubr.msk.bf16.gmra.mrb[40].mxu1 %vm393_vm2, %v3191_v58  ;;  %v3561_v58 = vrot.slane %v3559_v13, 2 }
 0x3a5   : > { %8817 = vmatprep.mubr.msk.bf16.mxu1 %vm10791_vm1, %v10790_v1 }
 0x3a8   : > { %9374 = vmatmul.mubr.msk.bf16.gmra.mrb[40].mxu0 %vm393_vm2, %v6811_v38  ;;  %v7174_v38 = vshll.u32 %v7115_v22, 16  ;;  %v7202_v22 = vrot.slane %v7200_v10, 5 }
 0x3a9   : > { %9377 = vmatprep.mubr.msk.bf16.mxu0 %vm10791_vm1, %v10790_v1 }
 0x3ac   : > { %8818 = vmatmul.mubr.msk.bf16.gmra.mrb[44].mxu1 %vm393_vm2, %v3193_v55  ;;  %v7179_v55 = vshrl.u32 %v12303_v44, 16 }
 0x3ad   : > { %8821 = vmatprep.mubr.msk.bf16.mxu1 %vm10791_vm1, %v10790_v1 }
 0x3ae   : > { %v3579_v20 = vrot.slane %v7179_v55, 2 }
 0x3b0   : > { %9378 = vmatmul.mubr.msk.bf16.gmra.mrb[44].mxu0 %vm393_vm2, %v6813_v56  ;;  %v3565_v56 = vor.u32 %v3564_v31, %v3561_v58  ;;  %v3583_v13 = vor.u32 %v3582_v32, %v3579_v20  ;;  %v7209_v58 = vshll.u32 %v12339_v3, 16  ;;  %v7235_v32 = vrot.slane %v12086_v25, 4 }
 0x3b1   : > { %9381 = vmatprep.mubr.msk.bf16.mxu0 %vm10791_vm1, %v10790_v1 }
 0x3b2   : > { %v3566_v44 = vsel %vm3549_vm4, %v3557_v11, %v3565_v56  ;;  %v3600_v11 = vrot.slane %v7200_v10, 3 }
 0x3b4   : > { %8822 = vmatmul.mubr.msk.bf16.gmra.mrb[48].mxu1 %vm393_vm2, %v3195_v8  ;;  %v3568_v8 = vshrl.u32 %v12287_v61, 16 }
 0x3b5   : > { %8825 = vmatprep.mubr.msk.bf16.mxu1 %vm10791_vm1, %v10790_v1 }
 0x3b6   : > { %v3570_v4 = vrot.slane %v3568_v8, 2  ;;  %v7218_v8 = vshll.u32 %v12351_v41, 16 }
 0x3b8   : > { %9382 = vmatmul.mubr.msk.bf16.gmra.mrb[48].mxu0 %vm393_vm2, %v6815_v15  ;;  %v7176_v15 = vrot.slane %v7174_v38, 5  ;;  %v7208_v38 = vrot.slane %v7206_v42, 4 }
 0x3b9   : > { %9385 = vmatprep.mubr.msk.bf16.mxu0 %vm10791_vm1, %v10790_v1 }
 0x3bc   : > { %8826 = vmatmul.mubr.msk.bf16.gmra.mrb[52].mxu1 %vm393_vm2, %v3197_v19  ;;  %v7181_v19 = vrot.slane %v7179_v55, 4  ;;  %v7211_v55 = vrot.slane %v7209_v58, 5 }
 0x3bd   : > { %8829 = vmatprep.mubr.msk.bf16.mxu1 %vm10791_vm1, %v10790_v1 }
 0x3be   : > { %v7185_v29 = vor.u32 %v7184_v0, %v7181_v19  ;;  %v7212_v3 = vor.u32 %v7211_v55, %v7208_v38  ;;  %v7220_v19 = vrot.slane %v7218_v8, 5 }
 0x3c0   : > { %9386 = vmatmul.mubr.msk.bf16.gmra.mrb[52].mxu0 %vm393_vm2, %v6817_v27  ;;  %v3573_v27 = vrot.slane %v3571_v45, 3 }
 0x3c1   : > { %9389 = vmatprep.mubr.msk.bf16.mxu0 %vm10791_vm1, %v10790_v1 }
 0x3c2   : > { %v3574_v61 = vor.u32 %v3573_v27, %v3570_v4  ;;  %v3609_v4 = vrot.slane %v7209_v58, 3 }
 0x3c4   : > { %8830 = vmatmul.mubr.msk.bf16.gmra.mrb[56].mxu1 %vm393_vm2, %v3199_v21  ;;  %v7177_v21 = vor.u32 %v7176_v15, %v7173_v59  ;;  %v3575_v54 = vsel %vm3549_vm4, %v3565_v56, %v3574_v61  ;;  %v7215_v56 = vshrl.u32 %v12351_v41, 16 }
 0x3c5   : > { %8833 = vmatprep.mubr.msk.bf16.mxu1 %vm10791_vm1, %v10790_v1 }
 0x3c6   : > { %v7217_v15 = vrot.slane %v7215_v56, 4 }
 0x3c8   : > { %9390 = vmatmul.mubr.msk.bf16.gmra.mrb[56].mxu0 %vm393_vm2, %v6819_v36  ;;  %v7191_v36 = vshll.u32 %v12315_v52, 16  ;;  %v7221_v41 = vor.u32 %v7220_v19, %v7217_v15  ;;  %v7262_v19 = vrot.slane %v12146_v7, 4 }
 0x3c9   : > { %9393 = vmatprep.mubr.msk.bf16.mxu0 %vm10791_vm1, %v10790_v1 }
 0x3ca   : > { %v7193_v39 = vrot.slane %v7191_v36, 5  ;;  %v3591_v23 = vrot.slane %v7191_v36, 3 }
 0x3cc   : > { %8834 = vmatmul.mubr.msk.bf16.gmra.mrb[60].mxu1 %vm393_vm2, %v3201_v14  ;;  %v7186_v14 = vsel %vm7169_vm11, %v7177_v21, %v7185_v29  ;;  %v7194_v52 = vor.u32 %v7193_v39, %v7190_v47  ;;  %v3592_v31 = vor.u32 %v3591_v23, %v3588_v49  ;;  %v7222_v21 = vsel %vm7169_vm11, %v7212_v3, %v7221_v41  ;;  %v3503_v39 = vld [vmem:[#allocation2 + $0x48] sm:$0xff] }
 0x3cd   : > { %8837 = vmatprep.mubr.msk.bf16.mxu1 %vm10791_vm1, %v10790_v1  ;;  %v3625_v20 = vshll.u32 %v3503_v39, 16  ;;  %v7244_v49 = vrot.slane %v12106_v28, 4  ;;  %v7247_v23 = vrot.slane %v12109_v62, 5 }
 0x3ce   : > { %v7195_v35 = vsel %vm7169_vm11, %v7185_v29, %v7194_v52  ;;  %v3593_v5 = vsel %vm3549_vm4, %v3583_v13, %v3592_v31  ;;  %v7226_v29 = vrot.slane %v12068_v48, 4  ;;  %v3622_v48 = vshrl.u32 %v3503_v39, 16 }
 0x3d0   : > { %9394 = vmatmul.mubr.msk.bf16.gmra.mrb[60].mxu0 %vm393_vm2, %v6821_v50  ;;  %v7199_v50 = vrot.slane %v7197_v37, 4  ;;  %v7230_v47 = vor.u32 %v7229_v40, %v7226_v29  ;;  %v3624_v10 = vrot.slane %v3622_v48, 2  ;;  %v3508_v48 = vld [vmem:[#allocation2 + $0x70] sm:$0xff] }
 0x3d1   : > { %9397 = vmatprep.mubr.msk.bf16.mxu0 %vm10791_vm1, %v10790_v1 }
 0x3d2   : > { %v7203_v18 = vor.u32 %v7202_v22, %v7199_v50  ;;  %v7231_v24 = vsel %vm7169_vm11, %v7221_v41, %v7230_v47  ;;  %v3504_v50 = vld [vmem:[#allocation2 + $0x50] sm:$0xff] }
 0x3d3   : > { %v3631_v25 = vshrl.u32 %v3504_v50, 16 }
 0x3d4   : > { %8838 = vmatmul.mubr.msk.bf16.gmra.mrb[64].mxu1 %vm393_vm2, %v3203_v16  ;;  %v3584_v16 = vsel %vm3549_vm4, %v3574_v61, %v3583_v13  ;;  %v7204_v51 = vsel %vm7169_vm11, %v7194_v52, %v7203_v18  ;;  %v7213_v59 = vsel %vm7169_vm11, %v7203_v18, %v7212_v3  ;;  %v3615_v61 = vrot.slane %v7215_v56, 2 }
 0x3d5   : > { %8843 = vmatprep.mubr.msk.bf16.mxu1 %vm10791_vm1, %v10790_v1  ;;  %v7238_v52 = vrot.slane %v12089_v43, 5  ;;  %v3627_v13 = vrot.slane %v3625_v20, 3 }
 0x3d7   : > { %v3628_v22 = vor.u32 %v3627_v13, %v3624_v10 }
 0x3d8   : > { %9398 = vmatmul.mubr.msk.bf16.gmra.mrb[64].mxu0 %vm393_vm2, %v6823_v6  ;;  %v3597_v6 = vrot.slane %v7197_v37, 2 }
 0x3d9   : > { %9403 = vmatprep.mubr.msk.bf16.mxu0 %vm10791_vm1, %v10790_v1 }
 0x3da   : > { %v3601_v45 = vor.u32 %v3600_v11, %v3597_v6  ;;  %v7256_v6 = vrot.slane %v12129_v12, 5 }
 0x3dc   : > { %8844 = vmatmul.mubr.msk.bf16.vlgmr.msra.gmra.mrb[0].mxu1 %vm393_vm2, %v3566_v44  ;;  %v3602_v0 = vsel %vm3549_vm4, %v3592_v31, %v3601_v45  ;;  %v3606_v44 = vrot.slane %v7206_v42, 2  ;;  %v3633_v42 = vrot.slane %v3631_v25, 2  ;;  %v7248_v31 = vor.u32 %v7247_v23, %v7244_v49 }
 0x3dd   : > { %8847 = vmatprep.mubr.msk.bf16.mxu1 %vm10791_vm1, %v10790_v1 }
 0x3de   : > { %v3610_v27 = vor.u32 %v3609_v4, %v3606_v44 }
 0x3e0   : > { %9404 = vmatmul.mubr.msk.bf16.vlgmr.msra.gmra.mrb[0].mxu0 %vm393_vm2, %v7186_v14  ;;  %v3611_v36 = vsel %vm3549_vm4, %v3601_v45, %v3610_v27  ;;  %v3618_v14 = vrot.slane %v7218_v8, 3  ;;  %v3506_v45 = vld [vmem:[#allocation2 + $0x60] sm:$0xff] }
 0x3e1   : > { %9407 = vmatprep.mubr.msk.bf16.mxu0 %vm10791_vm1, %v10790_v1  ;;  %v3652_v15 = vshll.u32 %v3506_v45, 16 }
 0x3e3   : > { %v3654_v41 = vrot.slane %v3652_v15, 3  ;;  %v3696_v15 = vrot.slane %v12239_v33, 2 }
 0x3e4   : > { %8848 = vmatmul.mubr.msk.bf16.gmra.mrb[4].mxu1 %vm393_vm2, %v3575_v54  ;;  %v3619_v54 = vor.u32 %v3618_v14, %v3615_v61  ;;  %v7274_v61 = vrot.slane %v12169_v17, 5 }
 0x3e5   : > { %8851 = vmatprep.mubr.msk.bf16.mxu1 %vm10791_vm1, %v10790_v1 }
 0x3e6   : > { %v3620_v37 = vsel %vm3549_vm4, %v3610_v27, %v3619_v54  ;;  %v3629_v18 = vsel %vm3549_vm4, %v3619_v54, %v3628_v22 }
 0x3e8   : > { %9408 = vmatmul.mubr.msk.bf16.gmra.mrb[4].mxu0 %vm393_vm2, %v7195_v35  ;;  %v7239_v35 = vor.u32 %v7238_v52, %v7235_v32  ;;  %v7280_v32 = vrot.slane %v12186_v53, 4  ;;  %v7283_v52 = vrot.slane %v12189_v63, 5 }
 0x3e9   : > { %9411 = vmatprep.mubr.msk.bf16.mxu0 %vm10791_vm1, %v10790_v1 }
 0x3ea   : > { %v7240_v43 = vsel %vm7169_vm11, %v7230_v47, %v7239_v35  ;;  %v7249_v62 = vsel %vm7169_vm11, %v7239_v35, %v7248_v31  ;;  %v7284_v35 = vor.u32 %v7283_v52, %v7280_v32 }
 0x3ec   : > { %8852 = vmatmul.mubr.msk.bf16.gmra.mrb[8].mxu1 %vm393_vm2, %v3584_v16  ;;  %v3634_v16 = vshll.u32 %v3504_v50, 16  ;;  %v3509_v50 = vld [vmem:[#allocation2 + $0x78] sm:$0xff] }
 0x3ed   : > { %8855 = vmatprep.mubr.msk.bf16.mxu1 %vm10791_vm1, %v10790_v1  ;;  %v3676_v53 = vshrl.u32 %v3509_v50, 16  ;;  %v3679_v25 = vshll.u32 %v3509_v50, 16 }
 0x3ee   : > { %v3636_v58 = vrot.slane %v3634_v16, 3  ;;  %v7289_v16 = vrot.slane %v12206_v57, 4 }
 0x3ef   : > { %v3678_v23 = vrot.slane %v3676_v53, 2 }
 0x3f0   : > { %9412 = vmatmul.mubr.msk.bf16.gmra.mrb[8].mxu0 %vm393_vm2, %v7204_v51  ;;  %v3505_v51 = vld [vmem:[#allocation2 + $0x58] sm:$0xff]  ;;  %v3637_v38 = vor.u32 %v3636_v58, %v3633_v42  ;;  %v3510_v58 = vld [vmem:[#allocation2 + $0x80] sm:$0xff] }
 0x3f1   : > { %9415 = vmatprep.mubr.msk.bf16.mxu0 %vm10791_vm1, %v10790_v1  ;;  %v3640_v28 = vshrl.u32 %v3505_v51, 16  ;;  %v3643_v55 = vshll.u32 %v3505_v51, 16  ;;  %v3685_v57 = vshrl.u32 %v3510_v58, 16  ;;  %v3688_v51 = vshll.u32 %v3510_v58, 16 }
 0x3f2   : > { %v3638_v11 = vsel %vm3549_vm4, %v3628_v22, %v3637_v38 }
 0x3f3   : > { %v3642_v3 = vrot.slane %v3640_v28, 2  ;;  %v3645_v56 = vrot.slane %v3643_v55, 3  ;;  %v7301_v28 = vrot.slane %v12242_v26, 5 }
 0x3f4   : > { %8856 = vmatmul.mubr.msk.bf16.gmra.mrb[12].mxu1 %vm393_vm2, %v3593_v5  ;;  %v7253_v5 = vrot.slane %v12126_v2, 4  ;;  %v3649_v2 = vshrl.u32 %v3506_v45, 16 }
 0x3f5   : > { %8859 = vmatprep.mubr.msk.bf16.mxu1 %vm10791_vm1, %v10790_v1 }
 0x3f6   : > { %v7257_v8 = vor.u32 %v7256_v6, %v7253_v5  ;;  %v3651_v4 = vrot.slane %v3649_v2, 2  ;;  %v3690_v5 = vrot.slane %v3688_v51, 3 }
 0x3f8   : > { %9416 = vmatmul.mubr.msk.bf16.gmra.mrb[12].mxu0 %vm393_vm2, %v7213_v59  ;;  %v3646_v59 = vor.u32 %v3645_v56, %v3642_v3  ;;  %v7258_v12 = vsel %vm7169_vm11, %v7248_v31, %v7257_v8  ;;  %v3655_v29 = vor.u32 %v3654_v41, %v3651_v4  ;;  %v7308_v3 = vshll.u32 %v12438_v9, 16 }
 0x3f9   : > { %9419 = vmatprep.mubr.msk.bf16.mxu0 %vm10791_vm1, %v10790_v1 }
 0x3fa   : > { %v3647_v44 = vsel %vm3549_vm4, %v3637_v38, %v3646_v59  ;;  %v3656_v14 = vsel %vm3549_vm4, %v3646_v59, %v3655_v29  ;;  %v7298_v38 = vrot.slane %v12239_v33, 4  ;;  %v7310_v59 = vrot.slane %v7308_v3, 5 }
 0x3fc   : > { %8860 = vmatmul.mubr.msk.bf16.gmra.mrb[16].mxu1 %vm393_vm2, %v3602_v0  ;;  %v7265_v0 = vrot.slane %v12149_v60, 5  ;;  %v7302_v6 = vor.u32 %v7301_v28, %v7298_v38 }
 0x3fd   : > { %8863 = vmatprep.mubr.msk.bf16.mxu1 %vm10791_vm1, %v10790_v1 }
 0x3fe   : > { %v7266_v27 = vor.u32 %v7265_v0, %v7262_v19  ;;  %v7314_v19 = vshrl.u32 %v12450_v30, 16  ;;  %v7317_v0 = vshll.u32 %v12450_v30, 16 }
 0x400   : > { %9420 = vmatmul.mubr.msk.bf16.gmra.mrb[16].mxu0 %vm393_vm2, %v7222_v21  ;;  %v3507_v21 = vld [vmem:[#allocation2 + $0x68] sm:$0xff]  ;;  %v7267_v60 = vsel %vm7169_vm11, %v7257_v8, %v7266_v27 }
 0x401   : > { %9423 = vmatprep.mubr.msk.bf16.mxu0 %vm10791_vm1, %v10790_v1  ;;  %v3658_v7 = vshrl.u32 %v3507_v21, 16  ;;  %v3661_v40 = vshll.u32 %v3507_v21, 16  ;;  %v7319_v21 = vrot.slane %v7317_v0, 5 }
 0x403   : > { %v3660_v47 = vrot.slane %v3658_v7, 2  ;;  %v3663_v39 = vrot.slane %v3661_v40, 3 }
 0x404   : > { %8864 = vmatmul.mubr.msk.bf16.gmra.mrb[20].mxu1 %vm393_vm2, %v3611_v36  ;;  %v7271_v36 = vrot.slane %v12166_v34, 4  ;;  %v3667_v34 = vshrl.u32 %v3508_v48, 16 }
 0x405   : > { %8867 = vmatprep.mubr.msk.bf16.mxu1 %vm10791_vm1, %v10790_v1  ;;  %v3664_v20 = vor.u32 %v3663_v39, %v3660_v47 }
 0x406   : > { %v7275_v54 = vor.u32 %v7274_v61, %v7271_v36  ;;  %v3669_v10 = vrot.slane %v3667_v34, 2 }
 0x408   : > { %9424 = vmatmul.mubr.msk.bf16.gmra.mrb[20].mxu0 %vm393_vm2, %v7231_v24  ;;  %v3670_v24 = vshll.u32 %v3508_v48, 16  ;;  %v7276_v17 = vsel %vm7169_vm11, %v7266_v27, %v7275_v54  ;;  %v7285_v63 = vsel %vm7169_vm11, %v7275_v54, %v7284_v35 }
 0x409   : > { %9427 = vmatprep.mubr.msk.bf16.mxu0 %vm10791_vm1, %v10790_v1 }
 0x40a   : > { %v3672_v13 = vrot.slane %v3670_v24, 3  ;;  %v12646_v24 = vld [vmem:[%s12779_s2] ss:$0 sm:$0xff] }
 0x40c   : > { %8868 = vmatmul.mubr.msk.bf16.gmra.mrb[24].mxu1 %vm393_vm2, %v3620_v37  ;;  %v3665_v37 = vsel %vm3549_vm4, %v3655_v29, %v3664_v20  ;;  %v3673_v22 = vor.u32 %v3672_v13, %v3669_v10  ;;  %v7132_v29 = vld [vmem:[#allocation2 + $0xa0] sm:$0x1f] }
 0x40d   : > { %8871 = vmatprep.mubr.msk.bf16.mxu1 %vm10791_vm1, %v10790_v1  ;;  %v7323_v36 = vshrl.u32 %v7132_v29, 16  ;;  %v7326_v61 = vshll.u32 %v7132_v29, 16 }
 0x40e   : > { %v3674_v49 = vsel %vm3549_vm4, %v3664_v20, %v3673_v22 }
 0x40f   : > { %v7325_v39 = vrot.slane %v7323_v36, 4  ;;  %v7328_v54 = vrot.slane %v7326_v61, 5 }
 0x410   : > { %9428 = vmatmul.mubr.msk.bf16.gmra.mrb[24].mxu0 %vm393_vm2, %v7240_v43  ;;  %v7292_v43 = vrot.slane %v12209_v46, 5 }
 0x411   : > { %9431 = vmatprep.mubr.msk.bf16.mxu0 %vm10791_vm1, %v10790_v1  ;;  %v7329_v20 = vor.u32 %v7328_v54, %v7325_v39 }
 0x412   : > { %v7293_v42 = vor.u32 %v7292_v43, %v7289_v16 }
 0x414   : > { %8872 = vmatmul.mubr.msk.bf16.gmra.mrb[28].mxu1 %vm393_vm2, %v3629_v18  ;;  %v3681_v18 = vrot.slane %v3679_v25, 3  ;;  %v7294_v46 = vsel %vm7169_vm11, %v7284_v35, %v7293_v42  ;;  %v7303_v8 = vsel %vm7169_vm11, %v7293_v42, %v7302_v6 }
 0x415   : > { %8875 = vmatprep.mubr.msk.bf16.mxu1 %vm10791_vm1, %v10790_v1 }
 0x416   : > { %v3682_v31 = vor.u32 %v3681_v18, %v3678_v23 }
 0x418   : > { %9432 = vmatmul.mubr.msk.bf16.gmra.mrb[28].mxu0 %vm393_vm2, %v7249_v62  ;;  %v3683_v55 = vsel %vm3549_vm4, %v3673_v22, %v3682_v31  ;;  %v3687_v62 = vrot.slane %v3685_v57, 2 }
 0x419   : > { %9435 = vmatprep.mubr.msk.bf16.mxu0 %vm10791_vm1, %v10790_v1 }
 0x41a   : > { %v3691_v56 = vor.u32 %v3690_v5, %v3687_v62 }
 0x41c   : > { %8876 = vmatmul.mubr.msk.bf16.gmra.mrb[32].mxu1 %vm393_vm2, %v3638_v11  ;;  %v7305_v11 = vshrl.u32 %v12438_v9, 16  ;;  %v3692_v2 = vsel %vm3549_vm4, %v3682_v31, %v3691_v56 }
 0x41d   : > { %8879 = vmatprep.mubr.msk.bf16.mxu1 %vm10791_vm1, %v10790_v1 }
 0x41e   : > { %v7307_v45 = vrot.slane %v7305_v11, 4 }
 0x420   : > { %9436 = vmatmul.mubr.msk.bf16.gmra.mrb[32].mxu0 %vm393_vm2, %v7258_v12  ;;  %v3699_v12 = vrot.slane %v12242_v26, 3  ;;  %v7311_v9 = vor.u32 %v7310_v59, %v7307_v45  ;;  %v7316_v26 = vrot.slane %v7314_v19, 4 }
 0x421   : > { %9439 = vmatprep.mubr.msk.bf16.mxu0 %vm10791_vm1, %v10790_v1 }
 0x422   : > { %v3700_v4 = vor.u32 %v3699_v12, %v3696_v15  ;;  %v7312_v33 = vsel %vm7169_vm11, %v7302_v6, %v7311_v9 }
 0x424   : > { %8880 = vmatmul.mubr.msk.bf16.gmra.mrb[36].mxu1 %vm393_vm2, %v3647_v44  ;;  %v3512_v44 = vld [vmem:[#allocation2 + $0x90] sm:$0x7]  ;;  %v3701_v7 = vsel %vm3549_vm4, %v3691_v56, %v3700_v4 }
 0x425   : > { %8883 = vmatprep.mubr.msk.bf16.mxu1 %vm10791_vm1, %v10790_v1  ;;  %v3703_v41 = vshrl.u32 %v3512_v44, 16  ;;  %v3706_v27 = vshll.u32 %v3512_v44, 16 }
 0x427   : > { %v3705_v40 = vrot.slane %v3703_v41, 2  ;;  %v3708_v30 = vrot.slane %v3706_v27, 3 }
 0x428   : > { %9440 = vmatmul.mubr.msk.bf16.gmra.mrb[36].mxu0 %vm393_vm2, %v7267_v60  ;;  %v7320_v60 = vor.u32 %v7319_v21, %v7316_v26 }
 0x429   : > { %9443 = vmatprep.mubr.msk.bf16.mxu0 %vm10791_vm1, %v10790_v1 }
 0x42a   : > { %v7321_v47 = vsel %vm7169_vm11, %v7311_v9, %v7320_v60  ;;  %v7330_v34 = vsel %vm7169_vm11, %v7320_v60, %v7329_v20 }
 0x42c   : > { %8884 = vmatmul.mubr.msk.bf16.gmra.mrb[40].mxu1 %vm393_vm2, %v3656_v14  ;;  %v3709_v14 = vor.u32 %v3708_v30, %v3705_v40 }
 0x42d   : > { %8887 = vmatprep.mubr.msk.bf16.mxu1 %vm10791_vm1, %v10790_v1 }
 0x42e   : > { %v3710_v48 = vsel %vm3549_vm4, %v3700_v4, %v3709_v14 }
 0x430   : > { %9444 = vmatmul.mubr.msk.bf16.gmra.mrb[40].mxu0 %vm393_vm2, %v7276_v17 }
 0x431   : > { %9447 = vmatprep.mubr.msk.bf16.mxu0 %vm10791_vm1, %v10790_v1 }
 0x434   : > { %8888 = vmatmul.mubr.msk.bf16.gmra.mrb[44].mxu1 %vm393_vm2, %v3665_v37 }
 0x435   : > { %8891 = vmatprep.mubr.msk.bf16.mxu1 %vm10791_vm1, %v10790_v1 }
 0x438   : > { %9448 = vmatmul.mubr.msk.bf16.gmra.mrb[44].mxu0 %vm393_vm2, %v7285_v63 }
 0x439   : > { %9451 = vmatprep.mubr.msk.bf16.mxu0 %vm10791_vm1, %v10790_v1 }
 0x43c   : > { %8892 = vmatmul.mubr.msk.bf16.gmra.mrb[48].mxu1 %vm393_vm2, %v3674_v49 }
 0x43d   : > { %8895 = vmatprep.mubr.msk.bf16.mxu1 %vm10791_vm1, %v10790_v1 }
 0x440   : > { %9452 = vmatmul.mubr.msk.bf16.gmra.mrb[48].mxu0 %vm393_vm2, %v7294_v46 }
 0x441   : > { %9455 = vmatprep.mubr.msk.bf16.mxu0 %vm10791_vm1, %v10790_v1 }
 0x444   : > { %8896 = vmatmul.mubr.msk.bf16.gmra.mrb[52].mxu1 %vm393_vm2, %v3683_v55 }
 0x445   : > { %8899 = vmatprep.mubr.msk.bf16.mxu1 %vm10791_vm1, %v10790_v1 }
 0x448   : > { %9456 = vmatmul.mubr.msk.bf16.gmra.mrb[52].mxu0 %vm393_vm2, %v7303_v8 }
 0x449   : > { %9459 = vmatprep.mubr.msk.bf16.mxu0 %vm10791_vm1, %v10790_v1 }
 0x44c   : > { %8900 = vmatmul.mubr.msk.bf16.gmra.mrb[56].mxu1 %vm393_vm2, %v3692_v2 }
 0x44d   : > { %8903 = vmatprep.mubr.msk.bf16.mxu1 %vm10791_vm1, %v10790_v1 }
 0x450   : > { %9460 = vmatmul.mubr.msk.bf16.gmra.mrb[56].mxu0 %vm393_vm2, %v7312_v33 }
 0x451   : > { %9463 = vmatprep.mubr.msk.bf16.mxu0 %vm10791_vm1, %v10790_v1 }
 0x454   : > { %8904 = vmatmul.mubr.msk.bf16.gmra.mrb[60].mxu1 %vm393_vm2, %v3701_v7 }
 0x455   : > { %8907 = vmatprep.mubr.msk.bf16.mxu1 %vm10791_vm1, %v10790_v1 }
 0x458   : > { %9464 = vmatmul.mubr.msk.bf16.gmra.mrb[60].mxu0 %vm393_vm2, %v7321_v47 }
 0x459   : > { %9467 = vmatprep.mubr.msk.bf16.mxu0 %vm10791_vm1, %v10790_v1 }
 0x45c   : > { %8908 = vmatmul.mubr.msk.bf16.gmra.mrb[64].mxu1 %vm393_vm2, %v3710_v48 }
 0x460   : > { %9468 = vmatmul.mubr.msk.bf16.gmra.mrb[64].mxu0 %vm393_vm2, %v7330_v34 }
 0x4af   : > { %v3799_v17 = vpop.f32.mrb[0].mxu1 }
 0x4b0   : > { %v8845_v32 = vpop.f32.mrb[1].mxu1  ;;  %v9473_v52 = vadd.f32 %v12646_v24, %v3799_v17 }
 0x4b1   : > { %v3802_v1 = vpop.f32.mrb[2].mxu1 }
 0x4b2   : > { %v8846_v37 = vpop.f32.mrb[3].mxu1  ;;  %v9479_v10 = vadd.f32 %v12646_v24, %v3802_v1 }
 0x4b3   : > { %v7419_v13 = vpop.f32.mrb[0].mxu0 }
 0x4b4   : > { %v9476_v35 = vadd.f32 %v9473_v52, %v7419_v13  ;;  %v9405_v50 = vpop.f32.mrb[1].mxu0 }
 0x4b5   : > { %v7422_v22 = vpop.f32.mrb[2].mxu0 }
 0x4b6   : > { %7588 = vst [vmem:[%s12652_s6] sm:$0xff] %v9476_v35  ;;  %v9482_v53 = vadd.f32 %v9479_v10, %v7422_v22  ;;  %v9406_v25 = vpop.f32.mrb[3].mxu0 }
 0x4b7   : > { %v3807_v63 = vpop.f32.mrb[4].mxu1 }
 0x4b8   : > { %v8849_v16 = vpop.f32.mrb[5].mxu1  ;;  %7589 = vst [vmem:[%s12652_s6 + $0x8] sm:$0xff] %v9482_v53  ;;  %v9485_v43 = vadd.f32 %v12646_v24, %v3807_v63 }
 0x4b9   : > { %v3810_v49 = vpop.f32.mrb[6].mxu1 }
 0x4ba   : > { %v8850_v23 = vpop.f32.mrb[7].mxu1  ;;  %v9491_v18 = vadd.f32 %v12646_v24, %v3810_v49 }
 0x4bb   : > { %v7427_v42 = vpop.f32.mrb[4].mxu0 }
 0x4bc   : > { %v9488_v58 = vadd.f32 %v9485_v43, %v7427_v42  ;;  %v9409_v31 = vpop.f32.mrb[5].mxu0 }
 0x4bd   : > { %v7430_v57 = vpop.f32.mrb[6].mxu0 }
 0x4be   : > { %7590 = vst [vmem:[%s12652_s6 + $0x10] sm:$0xff] %v9488_v58  ;;  %v9494_v51 = vadd.f32 %v9491_v18, %v7430_v57  ;;  %v9410_v46 = vpop.f32.mrb[7].mxu0 }
 0x4bf   : > { %v3815_v38 = vpop.f32.mrb[8].mxu1 }
 0x4c0   : > { %v8853_v28 = vpop.f32.mrb[9].mxu1  ;;  %7591 = vst [vmem:[%s12652_s6 + $0x18] sm:$0xff] %v9494_v51  ;;  %v9497_v55 = vadd.f32 %v12646_v24, %v3815_v38 }
 0x4c1   : > { %v3818_v62 = vpop.f32.mrb[10].mxu1 }
 0x4c2   : > { %v8854_v5 = vpop.f32.mrb[11].mxu1  ;;  %v9503_v6 = vadd.f32 %v12646_v24, %v3818_v62 }
 0x4c3   : > { %v7435_v11 = vpop.f32.mrb[8].mxu0 }
 0x4c4   : > { %v9500_v3 = vadd.f32 %v9497_v55, %v7435_v11  ;;  %v9413_v56 = vpop.f32.mrb[9].mxu0 }
 0x4c5   : > { %v7438_v8 = vpop.f32.mrb[10].mxu0 }
 0x4c6   : > { %7592 = vst [vmem:[%s12652_s6 + $0x20] sm:$0xff] %v9500_v3  ;;  %v9506_v45 = vadd.f32 %v9503_v6, %v7438_v8  ;;  %v9414_v59 = vpop.f32.mrb[11].mxu0 }
 0x4c7   : > { %v3823_v2 = vpop.f32.mrb[12].mxu1 }
 0x4c8   : > { %v8857_v15 = vpop.f32.mrb[13].mxu1  ;;  %7593 = vst [vmem:[%s12652_s6 + $0x28] sm:$0xff] %v9506_v45  ;;  %v9509_v12 = vadd.f32 %v12646_v24, %v3823_v2 }
 0x4c9   : > { %v3826_v9 = vpop.f32.mrb[14].mxu1 }
 0x4ca   : > { %v8858_v19 = vpop.f32.mrb[15].mxu1  ;;  %v9515_v0 = vadd.f32 %v12646_v24, %v3826_v9 }
 0x4cb   : > { %v7443_v44 = vpop.f32.mrb[12].mxu0 }
 0x4cc   : > { %v9512_v4 = vadd.f32 %v9509_v12, %v7443_v44  ;;  %v9417_v41 = vpop.f32.mrb[13].mxu0 }
 0x4cd   : > { %v7446_v27 = vpop.f32.mrb[14].mxu0 }
 0x4ce   : > { %7594 = vst [vmem:[%s12652_s6 + $0x30] sm:$0xff] %v9512_v4  ;;  %v9518_v33 = vadd.f32 %v9515_v0, %v7446_v27  ;;  %v9418_v26 = vpop.f32.mrb[15].mxu0 }
 0x4cf   : > { %v3831_v21 = vpop.f32.mrb[16].mxu1 }
 0x4d0   : > { %v8861_v29 = vpop.f32.mrb[17].mxu1  ;;  %7595 = vst [vmem:[%s12652_s6 + $0x38] sm:$0xff] %v9518_v33  ;;  %v9521_v7 = vadd.f32 %v12646_v24, %v3831_v21 }
 0x4d1   : > { %v3834_v40 = vpop.f32.mrb[18].mxu1 }
 0x4d2   : > { %v8862_v30 = vpop.f32.mrb[19].mxu1  ;;  %v9527_v60 = vadd.f32 %v12646_v24, %v3834_v40 }
 0x4d3   : > { %v7451_v36 = vpop.f32.mrb[16].mxu0 }
 0x4d4   : > { %v9524_v61 = vadd.f32 %v9521_v7, %v7451_v36  ;;  %v9421_v14 = vpop.f32.mrb[17].mxu0 }
 0x4d5   : > { %v7454_v47 = vpop.f32.mrb[18].mxu0 }
 0x4d6   : > { %7596 = vst [vmem:[%s12652_s6 + $0x40] sm:$0xff] %v9524_v61  ;;  %v9530_v39 = vadd.f32 %v9527_v60, %v7454_v47  ;;  %v9422_v54 = vpop.f32.mrb[19].mxu0 }
 0x4d7   : > { %v3839_v48 = vpop.f32.mrb[20].mxu1 }
 0x4d8   : > { %v8865_v20 = vpop.f32.mrb[21].mxu1  ;;  %7597 = vst [vmem:[%s12652_s6 + $0x48] sm:$0xff] %v9530_v39  ;;  %v9533_v34 = vadd.f32 %v12646_v24, %v3839_v48 }
 0x4d9   : > { %v3842_v17 = vpop.f32.mrb[22].mxu1 }
 0x4da   : > { %v8866_v32 = vpop.f32.mrb[23].mxu1  ;;  %v9539_v52 = vadd.f32 %v12646_v24, %v3842_v17 }
 0x4db   : > { %v7459_v1 = vpop.f32.mrb[20].mxu0 }
 0x4dc   : > { %v9536_v37 = vadd.f32 %v9533_v34, %v7459_v1  ;;  %v9425_v10 = vpop.f32.mrb[21].mxu0 }
 0x4dd   : > { %v7462_v13 = vpop.f32.mrb[22].mxu0 }
 0x4de   : > { %7598 = vst [vmem:[%s12652_s6 + $0x50] sm:$0xff] %v9536_v37  ;;  %v9542_v35 = vadd.f32 %v9539_v52, %v7462_v13  ;;  %v9426_v50 = vpop.f32.mrb[23].mxu0 }
 0x4df   : > { %v3847_v22 = vpop.f32.mrb[24].mxu1 }
 0x4e0   : > { %v8869_v53 = vpop.f32.mrb[25].mxu1  ;;  %7599 = vst [vmem:[%s12652_s6 + $0x58] sm:$0xff] %v9542_v35  ;;  %v9545_v25 = vadd.f32 %v12646_v24, %v3847_v22 }
 0x4e1   : > { %v3850_v63 = vpop.f32.mrb[26].mxu1 }
 0x4e2   : > { %v8870_v16 = vpop.f32.mrb[27].mxu1  ;;  %v9551_v43 = vadd.f32 %v12646_v24, %v3850_v63 }
 0x4e3   : > { %v7467_v49 = vpop.f32.mrb[24].mxu0 }
 0x4e4   : > { %v9548_v23 = vadd.f32 %v9545_v25, %v7467_v49  ;;  %v9429_v18 = vpop.f32.mrb[25].mxu0 }
 0x4e5   : > { %v7470_v42 = vpop.f32.mrb[26].mxu0 }
 0x4e6   : > { %7600 = vst [vmem:[%s12652_s6 + $0x60] sm:$0xff] %v9548_v23  ;;  %v9554_v58 = vadd.f32 %v9551_v43, %v7470_v42  ;;  %v9430_v31 = vpop.f32.mrb[27].mxu0 }
 0x4e7   : > { %v3855_v57 = vpop.f32.mrb[28].mxu1 }
 0x4e8   : > { %v8873_v51 = vpop.f32.mrb[29].mxu1  ;;  %7601 = vst [vmem:[%s12652_s6 + $0x68] sm:$0xff] %v9554_v58  ;;  %v9557_v46 = vadd.f32 %v12646_v24, %v3855_v57 }
 0x4e9   : > { %v3858_v38 = vpop.f32.mrb[30].mxu1 }
 0x4ea   : > { %v8874_v28 = vpop.f32.mrb[31].mxu1  ;;  %v9563_v55 = vadd.f32 %v12646_v24, %v3858_v38 }
 0x4eb   : > { %v7475_v62 = vpop.f32.mrb[28].mxu0 }
 0x4ec   : > { %v9560_v5 = vadd.f32 %v9557_v46, %v7475_v62  ;;  %v9433_v6 = vpop.f32.mrb[29].mxu0 }
 0x4ed   : > { %v7478_v11 = vpop.f32.mrb[30].mxu0 }
 0x4ee   : > { %7602 = vst [vmem:[%s12652_s6 + $0x70] sm:$0xff] %v9560_v5  ;;  %v9566_v3 = vadd.f32 %v9563_v55, %v7478_v11  ;;  %v9434_v56 = vpop.f32.mrb[31].mxu0 }
 0x4ef   : > { %v3863_v8 = vpop.f32.mrb[32].mxu1 }
 0x4f0   : > { %v8877_v45 = vpop.f32.mrb[33].mxu1  ;;  %7603 = vst [vmem:[%s12652_s6 + $0x78] sm:$0xff] %v9566_v3  ;;  %v9569_v59 = vadd.f32 %v12646_v24, %v3863_v8 }
 0x4f1   : > { %v3866_v2 = vpop.f32.mrb[34].mxu1 }
 0x4f2   : > { %v8878_v15 = vpop.f32.mrb[35].mxu1  ;;  %v9575_v12 = vadd.f32 %v12646_v24, %v3866_v2 }
 0x4f3   : > { %v7483_v9 = vpop.f32.mrb[32].mxu0 }
 0x4f4   : > { %v9572_v19 = vadd.f32 %v9569_v59, %v7483_v9  ;;  %v9437_v0 = vpop.f32.mrb[33].mxu0 }
 0x4f5   : > { %v7486_v44 = vpop.f32.mrb[34].mxu0 }
 0x4f6   : > { %7604 = vst [vmem:[%s12652_s6 + $0x80] sm:$0xff] %v9572_v19  ;;  %v9578_v4 = vadd.f32 %v9575_v12, %v7486_v44  ;;  %v9438_v41 = vpop.f32.mrb[35].mxu0 }
 0x4f7   : > { %v3871_v27 = vpop.f32.mrb[36].mxu1 }
 0x4f8   : > { %v8881_v33 = vpop.f32.mrb[37].mxu1  ;;  %7605 = vst [vmem:[%s12652_s6 + $0x88] sm:$0xff] %v9578_v4  ;;  %v9581_v26 = vadd.f32 %v12646_v24, %v3871_v27 }
 0x4f9   : > { %v3874_v21 = vpop.f32.mrb[38].mxu1 }
 0x4fa   : > { %v8882_v29 = vpop.f32.mrb[39].mxu1  ;;  %v9587_v7 = vadd.f32 %v12646_v24, %v3874_v21 }
 0x4fb   : > { %v7491_v40 = vpop.f32.mrb[36].mxu0 }
 0x4fc   : > { %v9584_v30 = vadd.f32 %v9581_v26, %v7491_v40  ;;  %v9441_v60 = vpop.f32.mrb[37].mxu0 }
 0x4fd   : > { %v7494_v36 = vpop.f32.mrb[38].mxu0 }
 0x4fe   : > { %7606 = vst [vmem:[%s12652_s6 + $0x90] sm:$0xff] %v9584_v30  ;;  %v9590_v61 = vadd.f32 %v9587_v7, %v7494_v36  ;;  %v9442_v14 = vpop.f32.mrb[39].mxu0 }
 0x4ff   : > { %v3879_v47 = vpop.f32.mrb[40].mxu1 }
 0x500   : > { %v8885_v39 = vpop.f32.mrb[41].mxu1  ;;  %7607 = vst [vmem:[%s12652_s6 + $0x98] sm:$0xff] %v9590_v61  ;;  %v9593_v54 = vadd.f32 %v12646_v24, %v3879_v47 }
 0x501   : > { %v3882_v48 = vpop.f32.mrb[42].mxu1 }
 0x502   : > { %v8886_v20 = vpop.f32.mrb[43].mxu1  ;;  %v9599_v34 = vadd.f32 %v12646_v24, %v3882_v48 }
 0x503   : > { %v7499_v17 = vpop.f32.mrb[40].mxu0 }
 0x504   : > { %v9596_v32 = vadd.f32 %v9593_v54, %v7499_v17  ;;  %v9445_v52 = vpop.f32.mrb[41].mxu0 }
 0x505   : > { %v7502_v1 = vpop.f32.mrb[42].mxu0 }
 0x506   : > { %7608 = vst [vmem:[%s12652_s6 + $0xa0] sm:$0xff] %v9596_v32  ;;  %v9602_v37 = vadd.f32 %v9599_v34, %v7502_v1  ;;  %v9446_v10 = vpop.f32.mrb[43].mxu0 }
 0x507   : > { %v3887_v13 = vpop.f32.mrb[44].mxu1 }
 0x508   : > { %v8889_v35 = vpop.f32.mrb[45].mxu1  ;;  %7609 = vst [vmem:[%s12652_s6 + $0xa8] sm:$0xff] %v9602_v37  ;;  %v9605_v50 = vadd.f32 %v12646_v24, %v3887_v13 }
 0x509   : > { %v3890_v22 = vpop.f32.mrb[46].mxu1 }
 0x50a   : > { %v8890_v53 = vpop.f32.mrb[47].mxu1  ;;  %v9611_v25 = vadd.f32 %v12646_v24, %v3890_v22 }
 0x50b   : > { %v7507_v63 = vpop.f32.mrb[44].mxu0 }
 0x50c   : > { %v9608_v16 = vadd.f32 %v9605_v50, %v7507_v63  ;;  %v9449_v43 = vpop.f32.mrb[45].mxu0 }
 0x50d   : > { %v7510_v49 = vpop.f32.mrb[46].mxu0 }
 0x50e   : > { %7610 = vst [vmem:[%s12652_s6 + $0xb0] sm:$0xff] %v9608_v16  ;;  %v9614_v23 = vadd.f32 %v9611_v25, %v7510_v49  ;;  %v9450_v18 = vpop.f32.mrb[47].mxu0 }
 0x50f   : > { %v3895_v42 = vpop.f32.mrb[48].mxu1 }
 0x510   : > { %v8893_v58 = vpop.f32.mrb[49].mxu1  ;;  %7611 = vst [vmem:[%s12652_s6 + $0xb8] sm:$0xff] %v9614_v23  ;;  %v9617_v31 = vadd.f32 %v12646_v24, %v3895_v42 }
 0x511   : > { %v3898_v57 = vpop.f32.mrb[50].mxu1 }
 0x512   : > { %v8894_v51 = vpop.f32.mrb[51].mxu1  ;;  %v9623_v46 = vadd.f32 %v12646_v24, %v3898_v57 }
 0x513   : > { %v7515_v38 = vpop.f32.mrb[48].mxu0 }
 0x514   : > { %v9620_v28 = vadd.f32 %v9617_v31, %v7515_v38  ;;  %v9453_v55 = vpop.f32.mrb[49].mxu0 }
 0x515   : > { %v7518_v62 = vpop.f32.mrb[50].mxu0 }
 0x516   : > { %7612 = vst [vmem:[%s12652_s6 + $0xc0] sm:$0xff] %v9620_v28  ;;  %v9626_v5 = vadd.f32 %v9623_v46, %v7518_v62  ;;  %v9454_v6 = vpop.f32.mrb[51].mxu0 }
 0x517   : > { %v3903_v11 = vpop.f32.mrb[52].mxu1 }
 0x518   : > { %v8897_v3 = vpop.f32.mrb[53].mxu1  ;;  %7613 = vst [vmem:[%s12652_s6 + $0xc8] sm:$0xff] %v9626_v5  ;;  %v9629_v56 = vadd.f32 %v12646_v24, %v3903_v11 }
 0x519   : > { %v3906_v8 = vpop.f32.mrb[54].mxu1 }
 0x51a   : > { %v8898_v45 = vpop.f32.mrb[55].mxu1  ;;  %v9635_v59 = vadd.f32 %v12646_v24, %v3906_v8 }
 0x51b   : > { %v7523_v2 = vpop.f32.mrb[52].mxu0 }
 0x51c   : > { %v9632_v15 = vadd.f32 %v9629_v56, %v7523_v2  ;;  %v9457_v12 = vpop.f32.mrb[53].mxu0 }
 0x51d   : > { %v7526_v9 = vpop.f32.mrb[54].mxu0 }
 0x51e   : > { %7614 = vst [vmem:[%s12652_s6 + $0xd0] sm:$0xff] %v9632_v15  ;;  %v9638_v19 = vadd.f32 %v9635_v59, %v7526_v9  ;;  %v9458_v0 = vpop.f32.mrb[55].mxu0 }
 0x51f   : > { %v3911_v44 = vpop.f32.mrb[56].mxu1 }
 0x520   : > { %v8901_v4 = vpop.f32.mrb[57].mxu1  ;;  %7615 = vst [vmem:[%s12652_s6 + $0xd8] sm:$0xff] %v9638_v19  ;;  %v9641_v41 = vadd.f32 %v12646_v24, %v3911_v44 }
 0x521   : > { %v3914_v27 = vpop.f32.mrb[58].mxu1 }
 0x522   : > { %v8902_v33 = vpop.f32.mrb[59].mxu1  ;;  %v9647_v26 = vadd.f32 %v12646_v24, %v3914_v27 }
 0x523   : > { %v7531_v21 = vpop.f32.mrb[56].mxu0 }
 0x524   : > { %v9644_v29 = vadd.f32 %v9641_v41, %v7531_v21  ;;  %v9461_v7 = vpop.f32.mrb[57].mxu0 }
 0x525   : > { %v7534_v40 = vpop.f32.mrb[58].mxu0 }
 0x526   : > { %7616 = vst [vmem:[%s12652_s6 + $0xe0] sm:$0xff] %v9644_v29  ;;  %v9650_v30 = vadd.f32 %v9647_v26, %v7534_v40  ;;  %v9462_v60 = vpop.f32.mrb[59].mxu0 }
 0x527   : > { %v3919_v36 = vpop.f32.mrb[60].mxu1 }
 0x528   : > { %v8905_v61 = vpop.f32.mrb[61].mxu1  ;;  %7617 = vst [vmem:[%s12652_s6 + $0xe8] sm:$0xff] %v9650_v30  ;;  %v9653_v14 = vadd.f32 %v12646_v24, %v3919_v36 }
 0x529   : > { %v3922_v47 = vpop.f32.mrb[62].mxu1 }
 0x52a   : > { %v8906_v39 = vpop.f32.mrb[63].mxu1  ;;  %v9659_v54 = vadd.f32 %v12646_v24, %v3922_v47 }
 0x52b   : > { %v7539_v48 = vpop.f32.mrb[60].mxu0 }
 0x52c   : > { %v9656_v20 = vadd.f32 %v9653_v14, %v7539_v48  ;;  %v9465_v34 = vpop.f32.mrb[61].mxu0 }
 0x52d   : > { %v7542_v17 = vpop.f32.mrb[62].mxu0 }
 0x52e   : > { %7618 = vst [vmem:[%s12652_s6 + $0xf0] sm:$0xff] %v9656_v20  ;;  %v9662_v32 = vadd.f32 %v9659_v54, %v7542_v17  ;;  %v9466_v52 = vpop.f32.mrb[63].mxu0 }
 0x52f   : > { %v3927_v1 = vpop.f32.mrb[64].mxu1 }
 0x530   : > { %v8909_v37 = vpop.f32.mrb[65].mxu1  ;;  %7619 = vst [vmem:[%s12652_s6 + $0xf8] sm:$0xff] %v9662_v32  ;;  %v9665_v10 = vadd.f32 %v12646_v24, %v3927_v1 }
 0x531   : > { %v3930_v13 = vpop.f32.mrb[66].mxu1 }
 0x532   : > { %v8910_v35 = vpop.f32.mrb[67].mxu1  ;;  %v9671_v50 = vadd.f32 %v12646_v24, %v3930_v13 }
 0x533   : > { %v7547_v22 = vpop.f32.mrb[64].mxu0 }
 0x534   : > { %v9668_v53 = vadd.f32 %v9665_v10, %v7547_v22  ;;  %v9469_v25 = vpop.f32.mrb[65].mxu0 }
 0x535   : > { %v7550_v63 = vpop.f32.mrb[66].mxu0 }
 0x536   : > { %7620 = vst [vmem:[%s12652_s6 + $0x100] sm:$0xff] %v9668_v53  ;;  %v9674_v16 = vadd.f32 %v9671_v50, %v7550_v63  ;;  %v9470_v43 = vpop.f32.mrb[67].mxu0 }
 0x538   : > { %7621 = vst [vmem:[%s12652_s6 + $0x108] sm:$0xff] %v9674_v16 }
 0x539   : > { %10723 = shalt.err (!%p10720_p5)
}
 0x53a   : > { %s10724_s26 = scalar_lea.hbm %s12723_s11, 4352  ;;  %s10728_s29 = scalar_lea.hbm %s12780_s3, 8704 }
 0x53b   : > { %p10725_p6 = scmp.ne.s32.totalorder %s12723_s11, %s10724_s26  ;;  %p10729_p10 = scmp.lt.u32.totalorder %s12723_s11, %s12780_s3 }
 0x53c   : > { %p10730_p11 = scmp.lt.u32.totalorder %s10728_s29, %s10724_s26  ;;  %p10732_p13 = scmp.lt.u32.totalorder %s10724_s26, %s12723_s11 }
 0x53d   : > { %p10726_p7 = pnand %p10725_p6, %p10855_p4 }
 0x53e   : > { %p10731_p12 = por %p10730_p11, %p10729_p10 }
 0x53f   : > { %p10727_p9 = pneg %p10726_p7 }
 0x540   : > { %p10733_p0 = por %p10732_p13, %p10731_p12 }
 0x542   : > { %p10734_p1 = pnand %p10733_p0, %p10727_p9 }
 0x544   : > { %10737 = shalt.err (!%p10734_p1)
}
 0x545   : > { %s10793_s5 = smov 128   ;;  %s10794_s6 = smov 8  }
 0x546   : > { %10630 = dma.vmem_to_hbm [thread:$0]  (%p10855_p4), %s12725_s9, 4352, %s12723_s11, %s12731_s15, %s10793_s5, %s10793_s5, %s10794_s6  }
 0x547 PF: > { %p10636_p2 = scmp.ge.s32.totalorder %s10788_s17, 2  ;;  %s7654_s8 = sand.u32 1, %s10768_s12  }
 0x548   : > { %s7655_s7 = scalar_lea.sflag [#allocation4], %s7654_s8 }
 0x549   : > { %p10633_p3 = pnand %p10636_p2, %p10862_p8 }
 0x54b   : > { %10763 = dma.done.wait (!%p10633_p3), %s7655_s7, 4352  }
 0x54c   : > { %10765 = vsyncadd (!%p10633_p3), %s7655_s7, 4294962944  ;;  %s16_s17 = sadd.s32 1, %s10788_s17   ;;  %s12783_s12 = smov %s10772_s13 }
 0x54d   : > { %p13_p5 = scmp.ge.s32.totalorder %s16_s17, 4   ;;  %s12784_s13 = smov %s10776_s14 }
 0x54e   : > { %s12785_s14 = smov %s10868_s25  ;;  %s12786_s15 = smov %s10784_s16 }
 0x54f   : > { %s12787_s16 = smov %s12789_s20  ;;  %15 = sbr.rel (!%p13_p5) target bundleno = 4 (0x4), region = 88 }
 0x556   :  { %7660 = vsyncpa [#allocation4], 1 }
 0x557   :  { %7662 = vsyncpa [#allocation4 + $0x1], 1 }

</bundles_post_ra>
